<compile_context>
chip_gen: v7x
topology: tpu7x:2x2x1
jax: 0.10.0
libtpu: 0.0.40
codegen_flags: <defaults>
</compile_context>

<pallas_src>
import functools

import jax
import jax.numpy as jnp
from jax.experimental import pallas as pl
from jax.experimental.pallas import tpu as pltpu


def _round_up(x, m):
    return (x + m - 1) // m * m


# ----------------------------------------------------------------------------
# Fused encoder+decoder LSTM kernel (single pallas_call, in-kernel time loop)
# ----------------------------------------------------------------------------
def _fused_lstm_kernel(embs_ref, mask_ref,
                       ewih_ref, eb_ref, ewhh_ref,
                       dwih_ref, dwhh_ref, db_ref,
                       dec_sum_ref, xg_ref, *, hp, t_steps):
    """Runs both LSTMs step-by-step; emits only sum_t dec_h[t] (shape (Bp,Hp)).

    hp is the 128-padded hidden size, so the four gate slices below are exact
    128-lane-aligned slices (no XLU relayout).
    """
    bp = dec_sum_ref.shape[0]
    e = embs_ref.shape[-1]

    # --- Hoisted, non-recurrent encoder input projection: ONE big matmul
    # (T*Bp, E) x (E, 4Hp) instead of T tiny M=Bp MXU pushes in the loop. ---
    x_flat = embs_ref[...].reshape(t_steps * bp, e)
    xg_ref[...] = (jnp.dot(x_flat, ewih_ref[...],
                           preferred_element_type=jnp.float32)
                   + eb_ref[...]).reshape(t_steps, bp, 4 * hp)

    # --- Loop-invariant loads / broadcasts hoisted out of the unrolled loop
    # (JAX does not CSE broadcast_in_dim inside unrolled bodies). ---
    ewhh = ewhh_ref[...]
    dwih = dwih_ref[...]
    dwhh = dwhh_ref[...]
    db_b = jnp.broadcast_to(db_ref[...], (bp, 4 * hp))

    def gates_to_hc(gates, c):
        i = jax.nn.sigmoid(gates[:, 0 * hp:1 * hp])
        f = jax.nn.sigmoid(gates[:, 1 * hp:2 * hp])
        g = jnp.tanh(gates[:, 2 * hp:3 * hp])
        o = jax.nn.sigmoid(gates[:, 3 * hp:4 * hp])
        c_new = f * c + i * g
        h_new = o * jnp.tanh(c_new)
        return h_new, c_new

    def step(t, carry):
        h_e, c_e, h_d, c_d, acc = carry
        m = mask_ref[t] != 0.0                           # (Bp, 1) bool (vselect)

        # --- encoder step: only the recurrent matmul stays inside the loop ---
        gates_e = xg_ref[t] + jnp.dot(h_e, ewhh,
                                      preferred_element_type=jnp.float32)
        h_new, c_new = gates_to_hc(gates_e, c_e)
        h_e = jnp.where(m, h_new, h_e)                   # freeze past length
        c_e = jnp.where(m, c_new, c_e)
        enc_out = jnp.where(m, h_new, 0.0)               # zero-padded output

        # --- decoder step on the (zero-padded) encoder output ---
        gates_d = (jnp.dot(enc_out, dwih, preferred_element_type=jnp.float32)
                   + jnp.dot(h_d, dwhh, preferred_element_type=jnp.float32)
                   + db_b)
        h_d, c_d = gates_to_hc(gates_d, c_d)
        acc = acc + h_d
        return (h_e, c_e, h_d, c_d, acc)

    z = jnp.zeros((bp, hp), jnp.float32)
    carry = jax.lax.fori_loop(0, t_steps, step, (z, z, z, z, z),
                              unroll=min(t_steps, 8))    # bounded unroll
    dec_sum_ref[...] = carry[4]


def fused_lstm(embs, mask, enc_w, dec_w, hp):
    """embs: (T, Bp, E) fp32; mask: (T, Bp, 1) fp32; returns dec_sum (Bp, Hp)."""
    T, Bp, E = embs.shape
    ewih, eb, ewhh = enc_w
    dwih, dwhh, db = dec_w
    # NOTE: whole sequence + weights live in VMEM (tiny here).  For production
    # T*B*E stream embs/mask via pltpu.emit_pipeline; for production H mark the
    # weight BlockSpecs pipeline_mode=pl.Buffered(1) to avoid double-buffering.
    return pl.pallas_call(
        functools.partial(_fused_lstm_kernel, hp=hp, t_steps=T),
        out_shape=jax.ShapeDtypeStruct((Bp, hp), jnp.float32),
        grid=(1,),
        in_specs=[
            pl.BlockSpec((T, Bp, E), lambda i: (0, 0, 0)),
            pl.BlockSpec((T, Bp, 1), lambda i: (0, 0, 0)),
            pl.BlockSpec((E, 4 * hp), lambda i: (0, 0)),     # enc W_ih
            pl.BlockSpec((1, 4 * hp), lambda i: (0, 0)),     # enc bias
            pl.BlockSpec((hp, 4 * hp), lambda i: (0, 0)),    # enc W_hh
            pl.BlockSpec((hp, 4 * hp), lambda i: (0, 0)),    # dec W_ih
            pl.BlockSpec((hp, 4 * hp), lambda i: (0, 0)),    # dec W_hh
            pl.BlockSpec((1, 4 * hp), lambda i: (0, 0)),     # dec bias
        ],
        out_specs=pl.BlockSpec((Bp, hp), lambda i: (0, 0)),
        scratch_shapes=[pltpu.VMEM((T, Bp, 4 * hp), jnp.float32)],
        compiler_params=pltpu.CompilerParams(
            dimension_semantics=("arbitrary",)),
    )(embs, mask, ewih, eb, ewhh, dwih, dwhh, db)


# ----------------------------------------------------------------------------
# Scores kernel: stream the (pre-transposed, bf16) item table, one matmul/tile
# ----------------------------------------------------------------------------
def _scores_kernel(q_ref, item_t_ref, bias_ref, out_ref):
    """out_tile = q @ item_t_tile + bias   with q:(Bp,E), item_t:(E,tile_n)."""
    out_ref[...] = (jnp.dot(q_ref[...], item_t_ref[...],
                            preferred_element_type=jnp.float32)
                    + bias_ref[...]).astype(out_ref.dtype)


def compute_scores(q, item_t, bias, tile_n):
    Bp, E = q.shape
    _, Np = item_t.shape
    assert Np % tile_n == 0
    # Explicit VMEM sizing: double-buffered table + output tiles plus headroom,
    # clamped to 64 MiB so the limit is valid on v7x as well as v5e/v6e.
    vmem_needed = (2 * E * tile_n * item_t.dtype.itemsize
                   + 2 * Bp * tile_n * 4
                   + 2 * Bp * E * q.dtype.itemsize
                   + 2 * Bp * 4
                   + (2 << 20))
    vmem_limit = int(min(max(vmem_needed, 32 << 20), 64 << 20))
    return pl.pallas_call(
        _scores_kernel,
        out_shape=jax.ShapeDtypeStruct((Bp, Np), jnp.float32),
        grid=(Np // tile_n,),
        in_specs=[
            pl.BlockSpec((Bp, E), lambda j: (0, 0)),
            pl.BlockSpec((E, tile_n), lambda j: (0, j)),
            pl.BlockSpec((Bp, 1), lambda j: (0, 0)),
        ],
        out_specs=pl.BlockSpec((Bp, tile_n), lambda j: (0, j)),
        compiler_params=pltpu.CompilerParams(
            dimension_semantics=("parallel",),
            vmem_limit_bytes=vmem_limit),
    )(q, item_t, bias)


# ----------------------------------------------------------------------------
# Weight / table preparation (done ONCE, hoisted out of the per-call forward)
# ----------------------------------------------------------------------------
def _pad_gate_cols(w, h, hp):
    """(..., 4*h) -> (..., 4*hp): each gate block zero-padded to width hp."""
    cfg = [(0, 0)] * (w.ndim - 1) + [(0, hp - h)]
    parts = [jnp.pad(w[..., k * h:(k + 1) * h], cfg) for k in range(4)]
    return jnp.concatenate(parts, axis=-1)


def prepare_forward_constants(params, hidden, tile_n=8192):
    """One-time prep: pad LSTM gate blocks to 128-lane width and pre-pad /
    pre-transpose / bf16-quantize the item table for the HBM-bound scores
    stream (doing the table transpose per call would cost as much HBM traffic
    as the scores kernel itself)."""
    H = hidden
    Hp = _round_up(H, 128)
    # Padded gate/bias columns are exactly zero => sigmoid(0)*tanh(0) keeps the
    # padded hidden/cell lanes at 0 through the recurrence (do NOT quantize
    # these weights without re-zeroing the padded columns).
    ewih = _pad_gate_cols(params["enc_wih_t"], H, Hp)                     # (E,4Hp)
    ewhh = jnp.pad(_pad_gate_cols(params["enc_whh_t"], H, Hp),
                   ((0, Hp - H), (0, 0)))                                 # (Hp,4Hp)
    eb = _pad_gate_cols(params["enc_b"], H, Hp)                           # (1,4Hp)
    dwih = jnp.pad(_pad_gate_cols(params["dec_wih_t"], H, Hp),
                   ((0, Hp - H), (0, 0)))
    dwhh = jnp.pad(_pad_gate_cols(params["dec_whh_t"], H, Hp),
                   ((0, Hp - H), (0, 0)))
    db = _pad_gate_cols(params["dec_b"], H, Hp)

    emb = params["emb"]                                                   # (N,E)
    N, E = emb.shape
    tn = min(tile_n, _round_up(N, 128))
    Np = _round_up(N, tn)
    # bf16 table halves the dominant HBM stream; the MXU consumes bf16 natively
    # (f32 matmul inputs are rounded to bf16 at default precision anyway).
    # TODO(synk): fp8 table on v7x (4x HBM reduction), gated on a top-k check.
    item_t = jnp.pad(emb, ((0, Np - N), (0, 0))).T.astype(jnp.bfloat16)   # (E,Np)

    return dict(Hp=Hp, enc=(ewih, eb, ewhh), dec=(dwih, dwhh, db),
                item_t=item_t, tile_n=tn, n_itens=N)


# ----------------------------------------------------------------------------
# Forward pass
# ----------------------------------------------------------------------------
def autoencoder_embedding_forward(seq, lengths, params, hidden,
                                  consts=None, tile_n=8192):
    """seq: (T, B) int32 item ids; lengths: (B,) with lengths <= T."""
    T, B = seq.shape
    if consts is None:
        # NOTE: in production call prepare_forward_constants() once at load.
        consts = prepare_forward_constants(params, hidden, tile_n)
    Hp = consts["Hp"]
    Bp = _round_up(B, 8)          # full sublanes

    # Embedding lookup (glue).
    # TODO(synk): training-mode dropout (p=0.25 Bernoulli mask) not implemented
    # (eval mode => identity).
    embs = jnp.take(params["emb"], seq, axis=0)                  # (T, B, E)

    # Pad batch + build packed-sequence mask (works for any lengths <= T).
    if Bp != B:
        embs = jnp.pad(embs, ((0, 0), (0, Bp - B), (0, 0)))
        lengths_p = jnp.pad(lengths.astype(jnp.int32), (0, Bp - B))
    else:
        lengths_p = lengths.astype(jnp.int32)
    mask = (jnp.arange(T)[:, None] < lengths_p[None, :]).astype(jnp.float32)
    mask = mask.reshape(T, Bp, 1)

    dec_sum_p = fused_lstm(embs, mask, consts["enc"], consts["dec"], Hp)  # (Bp,Hp)
    dec_sum = dec_sum_p[:, :hidden]                                       # (Bp,H)

    # Scores, algebraically refactored:
    #   scores = dec_sum @ (item_embs @ Wout^T + b)^T
    #          = (dec_sum @ Wout) @ item_embs^T + dec_sum @ b
    # Tiny projections in the wrapper at HIGHEST precision (negligible cost).
    q = jnp.dot(dec_sum, params["wout_t"].T,
                precision=jax.lax.Precision.HIGHEST)                      # (Bp,E)
    bias = jnp.dot(dec_sum, params["bout"][0],
                   precision=jax.lax.Precision.HIGHEST).reshape(Bp, 1)    # (Bp,1)

    item_t = consts["item_t"]
    scores_p = compute_scores(q.astype(item_t.dtype), item_t, bias,
                              consts["tile_n"])                           # (Bp,Np)
    return scores_p[:B, :consts["n_itens"]]


# ----------------------------------------------------------------------------
# Pure-JAX reference (faithful to the PyTorch forward)
# ----------------------------------------------------------------------------
def _lstm_ref(x, wih_t, whh_t, b, hidden, lengths=None):
    T, B, _ = x.shape

    def step(carry, inp):
        h, c = carry
        x_t, t = inp
        gates = x_t @ wih_t + h @ whh_t + b
        i = jax.nn.sigmoid(gates[:, :hidden])
        f = jax.nn.sigmoid(gates[:, hidden:2 * hidden])
        g = jnp.tanh(gates[:, 2 * hidden:3 * hidden])
        o = jax.nn.sigmoid(gates[:, 3 * hidden:])
        c_new = f * c + i * g
        h_new = o * jnp.tanh(c_new)
        if lengths is not None:
            m = (t < lengths)[:, None]
            out = jnp.where(m, h_new, 0.0)
            h = jnp.where(m, h_new, h)
            c = jnp.where(m, c_new, c)
        else:
            out, h, c = h_new, h_new, c_new
        return (h, c), out

    init = (jnp.zeros((B, hidden), jnp.float32),
            jnp.zeros((B, hidden), jnp.float32))
    _, outs = jax.lax.scan(step, init, (x, jnp.arange(T)))
    return outs


def _forward_ref(seq, lengths, params, hidden):
    embs = jnp.take(params["emb"], seq, axis=0)
    enc = _lstm_ref(embs, params["enc_wih_t"], params["enc_whh_t"],
                    params["enc_b"], hidden, lengths=lengths)
    dec = _lstm_ref(enc, params["dec_wih_t"], params["dec_whh_t"],
                    params["dec_b"], hidden)
    dec_sum = dec.sum(axis=0)                                    # (B, H)
    proj = params["emb"] @ params["wout_t"] + params["bout"]     # (N, H)
    return dec_sum @ proj.T


# ----------------------------------------------------------------------------
# Deterministic parameter init (mirrors the PyTorch module's shapes/inits)
# ----------------------------------------------------------------------------
def init_params(key, n_itens, embedding_dim, hidden_dim):
    keys = jax.random.split(key, 10)
    k = 1.0 / jnp.sqrt(hidden_dim)

    def lstm_weights(k1, k2, k3, k4, in_dim):
        wih = jax.random.uniform(k1, (4 * hidden_dim, in_dim), jnp.float32, -k, k)
        whh = jax.random.uniform(k2, (4 * hidden_dim, hidden_dim), jnp.float32, -k, k)
        bih = jax.random.uniform(k3, (4 * hidden_dim,), jnp.float32, -k, k)
        bhh = jax.random.uniform(k4, (4 * hidden_dim,), jnp.float32, -k, k)
        return wih.T, whh.T, (bih + bhh).reshape(1, -1)

    enc_wih_t, enc_whh_t, enc_b = lstm_weights(keys[0], keys[1], keys[2], keys[3],
                                               embedding_dim)
    dec_wih_t, dec_whh_t, dec_b = lstm_weights(keys[4], keys[5], keys[6], keys[7],
                                               hidden_dim)

    # nn.Embedding default init: N(0, 1)
    emb = jax.random.normal(keys[8], (n_itens, embedding_dim), jnp.float32)

    # nn.Linear(embedding_dim, hidden_dim) with xavier_uniform_ weight, zero bias
    limit = jnp.sqrt(6.0 / (embedding_dim + hidden_dim))
    wout = jax.random.uniform(keys[9], (hidden_dim, embedding_dim),
                              jnp.float32, -limit, limit)
    return {
        "emb": emb,
        "enc_wih_t": enc_wih_t, "enc_whh_t": enc_whh_t, "enc_b": enc_b,
        "dec_wih_t": dec_wih_t, "dec_whh_t": dec_whh_t, "dec_b": dec_b,
        "wout_t": wout.T,                       # (E, H)
        "bout": jnp.zeros((1, hidden_dim), jnp.float32),
    }


# ----------------------------------------------------------------------------
# Main
# ----------------------------------------------------------------------------
if __name__ == "__main__":
    T, B = 8, 2                 # seq len, batch
    HIDDEN = 32                 # hidden_dim (=embedding_dim, as in the module)
    EMB = 32                    # embedding_dim
    N_ITENS = 256               # small stand-in for 43098

    key = jax.random.PRNGKey(0)
    pkey, skey = jax.random.split(key)
    params = init_params(pkey, N_ITENS, EMB, HIDDEN)

    # One-time parameter prep (padded LSTM weights + pre-transposed bf16 table),
    # hoisted out of the per-call forward.
    consts = prepare_forward_constants(params, HIDDEN, tile_n=8192)

    seq = jax.random.randint(skey, (T, B), 0, N_ITENS, dtype=jnp.int32)
    lengths = jnp.array([T, 5], dtype=jnp.int32)   # sorted descending, max == T

    scores = autoencoder_embedding_forward(seq, lengths, params, HIDDEN,
                                           consts=consts)
    scores = jax.block_until_ready(scores)

    ref = _forward_ref(seq, lengths, params, HIDDEN)
    assert scores.shape == (B, N_ITENS)
    # The scores matmul is algebraically reassociated vs. the reference, runs
    # on a bf16 item table, and both paths see TPU default (bf16-pass) matmul
    # precision, so the rounding no longer cancels exactly; compare at 2% of
    # the score dynamic range.
    max_err = jnp.max(jnp.abs(scores - ref))
    tol = 2e-2 * jnp.max(jnp.abs(ref)) + 1e-3
    assert float(max_err) <= float(tol), f"mismatch: err={max_err}, tol={tol}"

    print("KERNEL_OK")
</pallas_src>

<mosaic_0001>
module attributes {stable_mosaic.version = 11 : i64} {
  func.func @_fused_lstm_kernel(%arg0: i32, %arg1: memref<8x8x32xf32, #tpu.memory_space<vmem>>, %arg2: memref<8x8x1xf32, #tpu.memory_space<vmem>>, %arg3: memref<32x512xf32, #tpu.memory_space<vmem>>, %arg4: memref<1x512xf32, #tpu.memory_space<vmem>>, %arg5: memref<128x512xf32, #tpu.memory_space<vmem>>, %arg6: memref<128x512xf32, #tpu.memory_space<vmem>>, %arg7: memref<128x512xf32, #tpu.memory_space<vmem>>, %arg8: memref<1x512xf32, #tpu.memory_space<vmem>>, %arg9: memref<8x128xf32, #tpu.memory_space<vmem>>, %arg10: memref<8x8x512xf32, #tpu.memory_space<vmem>>) attributes {dimension_semantics = [#tpu.dimension_semantics<arbitrary>], iteration_bounds = array<i64: 1>, scalar_prefetch = 0 : i64, scratch_operands = 1 : i64, tpu.core_type = #tpu.core_type<tc>, window_params = [{pipeline_mode = #tpu.pipeline_mode<synchronous>, transform_indices = @transform_0, window_bounds = array<i64: 8, 8, 32>}, {pipeline_mode = #tpu.pipeline_mode<synchronous>, transform_indices = @transform_1, window_bounds = array<i64: 8, 8, 1>}, {pipeline_mode = #tpu.pipeline_mode<synchronous>, transform_indices = @transform_2, window_bounds = array<i64: 32, 512>}, {pipeline_mode = #tpu.pipeline_mode<synchronous>, transform_indices = @transform_3, window_bounds = array<i64: 1, 512>}, {pipeline_mode = #tpu.pipeline_mode<synchronous>, transform_indices = @transform_4, window_bounds = array<i64: 128, 512>}, {pipeline_mode = #tpu.pipeline_mode<synchronous>, transform_indices = @transform_5, window_bounds = array<i64: 128, 512>}, {pipeline_mode = #tpu.pipeline_mode<synchronous>, transform_indices = @transform_6, window_bounds = array<i64: 128, 512>}, {pipeline_mode = #tpu.pipeline_mode<synchronous>, transform_indices = @transform_7, window_bounds = array<i64: 1, 512>}, {pipeline_mode = #tpu.pipeline_mode<synchronous>, transform_indices = @transform_8, window_bounds = array<i64: 8, 128>}]} {
    %c0 = arith.constant 0 : index
    %c0_0 = arith.constant 0 : index
    %c0_1 = arith.constant 0 : index
    %0 = vector.load %arg1[%c0, %c0_0, %c0_1] : memref<8x8x32xf32, #tpu.memory_space<vmem>>, vector<8x8x32xf32>
    %1 = vector.shape_cast %0 : vector<8x8x32xf32> to vector<64x32xf32>
    %c0_2 = arith.constant 0 : index
    %c0_3 = arith.constant 0 : index
    %2 = vector.load %arg3[%c0_2, %c0_3] : memref<32x512xf32, #tpu.memory_space<vmem>>, vector<32x512xf32>
    %cst = arith.constant dense<0.000000e+00> : vector<64x512xf32>
    %3 = tpu.matmul %1, %2, %cst {dimension_numbers = #tpu.dot_dimension_numbers<[1], [0], [0], [1], [0, 0, 1, 1], [], []>} : vector<64x32xf32>, vector<32x512xf32>, vector<64x512xf32> -> vector<64x512xf32>
    %c0_4 = arith.constant 0 : index
    %c0_5 = arith.constant 0 : index
    %4 = vector.load %arg4[%c0_4, %c0_5] : memref<1x512xf32, #tpu.memory_space<vmem>>, vector<1x512xf32>
    %5 = vector.broadcast %4 : vector<1x512xf32> to vector<64x512xf32>
    %6 = arith.addf %3, %5 : vector<64x512xf32>
    %7 = vector.shape_cast %6 : vector<64x512xf32> to vector<8x8x512xf32>
    %c0_6 = arith.constant 0 : index
    %c0_7 = arith.constant 0 : index
    %c0_8 = arith.constant 0 : index
    %8 = vector.load %arg10[%c0_6, %c0_7, %c0_8] : memref<8x8x512xf32, #tpu.memory_space<vmem>>, vector<8x8x512xf32>
    tpu.vector_store %arg10[%c0_6, %c0_7, %c0_8], %7 {strides = array<i32>} : memref<8x8x512xf32, #tpu.memory_space<vmem>>, vector<8x8x512xf32>,
    %c0_9 = arith.constant 0 : index
    %c0_10 = arith.constant 0 : index
    %9 = vector.load %arg5[%c0_9, %c0_10] : memref<128x512xf32, #tpu.memory_space<vmem>>, vector<128x512xf32>
    %c0_11 = arith.constant 0 : index
    %c0_12 = arith.constant 0 : index
    %10 = vector.load %arg6[%c0_11, %c0_12] : memref<128x512xf32, #tpu.memory_space<vmem>>, vector<128x512xf32>
    %c0_13 = arith.constant 0 : index
    %c0_14 = arith.constant 0 : index
    %11 = vector.load %arg7[%c0_13, %c0_14] : memref<128x512xf32, #tpu.memory_space<vmem>>, vector<128x512xf32>
    %c0_15 = arith.constant 0 : index
    %c0_16 = arith.constant 0 : index
    %12 = vector.load %arg8[%c0_15, %c0_16] : memref<1x512xf32, #tpu.memory_space<vmem>>, vector<1x512xf32>
    %13 = vector.shape_cast %12 : vector<1x512xf32> to vector<1x512xf32>
    %14 = vector.broadcast %13 : vector<1x512xf32> to vector<8x512xf32>
    %cst_17 = arith.constant 0.000000e+00 : f32
    %15 = vector.broadcast %cst_17 : f32 to vector<8x128xf32>
    %c0_i32 = arith.constant 0 : i32
    %16 = arith.index_cast %c0_i32 : i32 to index
    %c0_18 = arith.constant 0 : index
    %c0_19 = arith.constant 0 : index
    %17 = vector.load %arg2[%16, %c0_18, %c0_19] : memref<8x8x1xf32, #tpu.memory_space<vmem>>, vector<1x8x1xf32>
    %18 = vector.shape_cast %17 : vector<1x8x1xf32> to vector<8x1xf32>
    %cst_20 = arith.constant 0.000000e+00 : f32
    %19 = vector.broadcast %cst_20 : f32 to vector<8x1xf32>
    %20 = arith.cmpf one, %18, %19 : vector<8x1xf32>
    %21 = arith.index_cast %c0_i32 : i32 to index
    %c0_21 = arith.constant 0 : index
    %c0_22 = arith.constant 0 : index
    %22 = vector.load %arg10[%21, %c0_21, %c0_22] : memref<8x8x512xf32, #tpu.memory_space<vmem>>, vector<1x8x512xf32>
    %23 = vector.shape_cast %22 : vector<1x8x512xf32> to vector<8x512xf32>
    %cst_23 = arith.constant dense<0.000000e+00> : vector<8x512xf32>
    %24 = tpu.matmul %15, %9, %cst_23 {dimension_numbers = #tpu.dot_dimension_numbers<[1], [0], [0], [1], [0, 0, 1, 1], [], []>} : vector<8x128xf32>, vector<128x512xf32>, vector<8x512xf32> -> vector<8x512xf32>
    %25 = arith.addf %23, %24 : vector<8x512xf32>
    %26 = vector.extract_strided_slice %25 {offsets = [0, 0], sizes = [8, 128], strides = [1, 1]} : vector<8x512xf32> to vector<8x128xf32>
    %27 = arith.negf %26 : vector<8x128xf32>
    %28 = math.exp %27 : vector<8x128xf32>
    %cst_24 = arith.constant 1.000000e+00 : f32
    %29 = vector.broadcast %cst_24 : f32 to vector<8x128xf32>
    %30 = arith.addf %29, %28 : vector<8x128xf32>
    %31 = arith.divf %29, %30 : vector<8x128xf32>
    %32 = vector.extract_strided_slice %25 {offsets = [0, 128], sizes = [8, 128], strides = [1, 1]} : vector<8x512xf32> to vector<8x128xf32>
    %33 = arith.negf %32 : vector<8x128xf32>
    %34 = math.exp %33 : vector<8x128xf32>
    %cst_25 = arith.constant 1.000000e+00 : f32
    %35 = vector.broadcast %cst_25 : f32 to vector<8x128xf32>
    %36 = arith.addf %35, %34 : vector<8x128xf32>
    %37 = arith.divf %35, %36 : vector<8x128xf32>
    %38 = vector.extract_strided_slice %25 {offsets = [0, 256], sizes = [8, 128], strides = [1, 1]} : vector<8x512xf32> to vector<8x128xf32>
    %39 = math.tanh %38 : vector<8x128xf32>
    %40 = vector.extract_strided_slice %25 {offsets = [0, 384], sizes = [8, 128], strides = [1, 1]} : vector<8x512xf32> to vector<8x128xf32>
    %41 = arith.negf %40 : vector<8x128xf32>
    %42 = math.exp %41 : vector<8x128xf32>
    %cst_26 = arith.constant 1.000000e+00 : f32
    %43 = vector.broadcast %cst_26 : f32 to vector<8x128xf32>
    %44 = arith.addf %43, %42 : vector<8x128xf32>
    %45 = arith.divf %43, %44 : vector<8x128xf32>
    %46 = arith.mulf %37, %15 : vector<8x128xf32>
    %47 = arith.mulf %31, %39 : vector<8x128xf32>
    %48 = arith.addf %46, %47 : vector<8x128xf32>
    %49 = math.tanh %48 : vector<8x128xf32>
    %50 = arith.mulf %45, %49 : vector<8x128xf32>
    %51 = vector.shape_cast %20 : vector<8x1xi1> to vector<8x1xi1>
    %52 = vector.broadcast %51 : vector<8x1xi1> to vector<8x128xi1>
    %53 = arith.select %52, %50, %15 : vector<8x128xi1>, vector<8x128xf32>
    %54 = vector.shape_cast %20 : vector<8x1xi1> to vector<8x1xi1>
    %55 = vector.broadcast %54 : vector<8x1xi1> to vector<8x128xi1>
    %56 = arith.select %55, %48, %15 : vector<8x128xi1>, vector<8x128xf32>
    %cst_27 = arith.constant 0.000000e+00 : f32
    %57 = vector.shape_cast %20 : vector<8x1xi1> to vector<8x1xi1>
    %58 = vector.broadcast %57 : vector<8x1xi1> to vector<8x128xi1>
    %59 = vector.broadcast %cst_27 : f32 to vector<8x128xf32>
    %60 = arith.select %58, %50, %59 : vector<8x128xi1>, vector<8x128xf32>
    %cst_28 = arith.constant dense<0.000000e+00> : vector<8x512xf32>
    %61 = tpu.matmul %60, %10, %cst_28 {dimension_numbers = #tpu.dot_dimension_numbers<[1], [0], [0], [1], [0, 0, 1, 1], [], []>} : vector<8x128xf32>, vector<128x512xf32>, vector<8x512xf32> -> vector<8x512xf32>
    %cst_29 = arith.constant dense<0.000000e+00> : vector<8x512xf32>
    %62 = tpu.matmul %15, %11, %cst_29 {dimension_numbers = #tpu.dot_dimension_numbers<[1], [0], [0], [1], [0, 0, 1, 1], [], []>} : vector<8x128xf32>, vector<128x512xf32>, vector<8x512xf32> -> vector<8x512xf32>
    %63 = arith.addf %61, %62 : vector<8x512xf32>
    %64 = arith.addf %63, %14 : vector<8x512xf32>
    %65 = vector.extract_strided_slice %64 {offsets = [0, 0], sizes = [8, 128], strides = [1, 1]} : vector<8x512xf32> to vector<8x128xf32>
    %66 = arith.negf %65 : vector<8x128xf32>
    %67 = math.exp %66 : vector<8x128xf32>
    %cst_30 = arith.constant 1.000000e+00 : f32
    %68 = vector.broadcast %cst_30 : f32 to vector<8x128xf32>
    %69 = arith.addf %68, %67 : vector<8x128xf32>
    %70 = arith.divf %68, %69 : vector<8x128xf32>
    %71 = vector.extract_strided_slice %64 {offsets = [0, 128], sizes = [8, 128], strides = [1, 1]} : vector<8x512xf32> to vector<8x128xf32>
    %72 = arith.negf %71 : vector<8x128xf32>
    %73 = math.exp %72 : vector<8x128xf32>
    %cst_31 = arith.constant 1.000000e+00 : f32
    %74 = vector.broadcast %cst_31 : f32 to vector<8x128xf32>
    %75 = arith.addf %74, %73 : vector<8x128xf32>
    %76 = arith.divf %74, %75 : vector<8x128xf32>
    %77 = vector.extract_strided_slice %64 {offsets = [0, 256], sizes = [8, 128], strides = [1, 1]} : vector<8x512xf32> to vector<8x128xf32>
    %78 = math.tanh %77 : vector<8x128xf32>
    %79 = vector.extract_strided_slice %64 {offsets = [0, 384], sizes = [8, 128], strides = [1, 1]} : vector<8x512xf32> to vector<8x128xf32>
    %80 = arith.negf %79 : vector<8x128xf32>
    %81 = math.exp %80 : vector<8x128xf32>
    %cst_32 = arith.constant 1.000000e+00 : f32
    %82 = vector.broadcast %cst_32 : f32 to vector<8x128xf32>
    %83 = arith.addf %82, %81 : vector<8x128xf32>
    %84 = arith.divf %82, %83 : vector<8x128xf32>
    %85 = arith.mulf %76, %15 : vector<8x128xf32>
    %86 = arith.mulf %70, %78 : vector<8x128xf32>
    %87 = arith.addf %85, %86 : vector<8x128xf32>
    %88 = math.tanh %87 : vector<8x128xf32>
    %89 = arith.mulf %84, %88 : vector<8x128xf32>
    %90 = arith.addf %15, %89 : vector<8x128xf32>
    %c1_i32 = arith.constant 1 : i32
    %91 = arith.index_cast %c1_i32 : i32 to index
    %c0_33 = arith.constant 0 : index
    %c0_34 = arith.constant 0 : index
    %92 = vector.load %arg2[%91, %c0_33, %c0_34] : memref<8x8x1xf32, #tpu.memory_space<vmem>>, vector<1x8x1xf32>
    %93 = vector.shape_cast %92 : vector<1x8x1xf32> to vector<8x1xf32>
    %cst_35 = arith.constant 0.000000e+00 : f32
    %94 = vector.broadcast %cst_35 : f32 to vector<8x1xf32>
    %95 = arith.cmpf one, %93, %94 : vector<8x1xf32>
    %96 = arith.index_cast %c1_i32 : i32 to index
    %c0_36 = arith.constant 0 : index
    %c0_37 = arith.constant 0 : index
    %97 = vector.load %arg10[%96, %c0_36, %c0_37] : memref<8x8x512xf32, #tpu.memory_space<vmem>>, vector<1x8x512xf32>
    %98 = vector.shape_cast %97 : vector<1x8x512xf32> to vector<8x512xf32>
    %cst_38 = arith.constant dense<0.000000e+00> : vector<8x512xf32>
    %99 = tpu.matmul %53, %9, %cst_38 {dimension_numbers = #tpu.dot_dimension_numbers<[1], [0], [0], [1], [0, 0, 1, 1], [], []>} : vector<8x128xf32>, vector<128x512xf32>, vector<8x512xf32> -> vector<8x512xf32>
    %100 = arith.addf %98, %99 : vector<8x512xf32>
    %101 = vector.extract_strided_slice %100 {offsets = [0, 0], sizes = [8, 128], strides = [1, 1]} : vector<8x512xf32> to vector<8x128xf32>
    %102 = arith.negf %101 : vector<8x128xf32>
    %103 = math.exp %102 : vector<8x128xf32>
    %cst_39 = arith.constant 1.000000e+00 : f32
    %104 = vector.broadcast %cst_39 : f32 to vector<8x128xf32>
    %105 = arith.addf %104, %103 : vector<8x128xf32>
    %106 = arith.divf %104, %105 : vector<8x128xf32>
    %107 = vector.extract_strided_slice %100 {offsets = [0, 128], sizes = [8, 128], strides = [1, 1]} : vector<8x512xf32> to vector<8x128xf32>
    %108 = arith.negf %107 : vector<8x128xf32>
    %109 = math.exp %108 : vector<8x128xf32>
    %cst_40 = arith.constant 1.000000e+00 : f32
    %110 = vector.broadcast %cst_40 : f32 to vector<8x128xf32>
    %111 = arith.addf %110, %109 : vector<8x128xf32>
    %112 = arith.divf %110, %111 : vector<8x128xf32>
    %113 = vector.extract_strided_slice %100 {offsets = [0, 256], sizes = [8, 128], strides = [1, 1]} : vector<8x512xf32> to vector<8x128xf32>
    %114 = math.tanh %113 : vector<8x128xf32>
    %115 = vector.extract_strided_slice %100 {offsets = [0, 384], sizes = [8, 128], strides = [1, 1]} : vector<8x512xf32> to vector<8x128xf32>
    %116 = arith.negf %115 : vector<8x128xf32>
    %117 = math.exp %116 : vector<8x128xf32>
    %cst_41 = arith.constant 1.000000e+00 : f32
    %118 = vector.broadcast %cst_41 : f32 to vector<8x128xf32>
    %119 = arith.addf %118, %117 : vector<8x128xf32>
    %120 = arith.divf %118, %119 : vector<8x128xf32>
    %121 = arith.mulf %112, %56 : vector<8x128xf32>
    %122 = arith.mulf %106, %114 : vector<8x128xf32>
    %123 = arith.addf %121, %122 : vector<8x128xf32>
    %124 = math.tanh %123 : vector<8x128xf32>
    %125 = arith.mulf %120, %124 : vector<8x128xf32>
    %126 = vector.shape_cast %95 : vector<8x1xi1> to vector<8x1xi1>
    %127 = vector.broadcast %126 : vector<8x1xi1> to vector<8x128xi1>
    %128 = arith.select %127, %125, %53 : vector<8x128xi1>, vector<8x128xf32>
    %129 = vector.shape_cast %95 : vector<8x1xi1> to vector<8x1xi1>
    %130 = vector.broadcast %129 : vector<8x1xi1> to vector<8x128xi1>
    %131 = arith.select %130, %123, %56 : vector<8x128xi1>, vector<8x128xf32>
    %cst_42 = arith.constant 0.000000e+00 : f32
    %132 = vector.shape_cast %95 : vector<8x1xi1> to vector<8x1xi1>
    %133 = vector.broadcast %132 : vector<8x1xi1> to vector<8x128xi1>
    %134 = vector.broadcast %cst_42 : f32 to vector<8x128xf32>
    %135 = arith.select %133, %125, %134 : vector<8x128xi1>, vector<8x128xf32>
    %cst_43 = arith.constant dense<0.000000e+00> : vector<8x512xf32>
    %136 = tpu.matmul %135, %10, %cst_43 {dimension_numbers = #tpu.dot_dimension_numbers<[1], [0], [0], [1], [0, 0, 1, 1], [], []>} : vector<8x128xf32>, vector<128x512xf32>, vector<8x512xf32> -> vector<8x512xf32>
    %cst_44 = arith.constant dense<0.000000e+00> : vector<8x512xf32>
    %137 = tpu.matmul %89, %11, %cst_44 {dimension_numbers = #tpu.dot_dimension_numbers<[1], [0], [0], [1], [0, 0, 1, 1], [], []>} : vector<8x128xf32>, vector<128x512xf32>, vector<8x512xf32> -> vector<8x512xf32>
    %138 = arith.addf %136, %137 : vector<8x512xf32>
    %139 = arith.addf %138, %14 : vector<8x512xf32>
    %140 = vector.extract_strided_slice %139 {offsets = [0, 0], sizes = [8, 128], strides = [1, 1]} : vector<8x512xf32> to vector<8x128xf32>
    %141 = arith.negf %140 : vector<8x128xf32>
    %142 = math.exp %141 : vector<8x128xf32>
    %cst_45 = arith.constant 1.000000e+00 : f32
    %143 = vector.broadcast %cst_45 : f32 to vector<8x128xf32>
    %144 = arith.addf %143, %142 : vector<8x128xf32>
    %145 = arith.divf %143, %144 : vector<8x128xf32>
    %146 = vector.extract_strided_slice %139 {offsets = [0, 128], sizes = [8, 128], strides = [1, 1]} : vector<8x512xf32> to vector<8x128xf32>
    %147 = arith.negf %146 : vector<8x128xf32>
    %148 = math.exp %147 : vector<8x128xf32>
    %cst_46 = arith.constant 1.000000e+00 : f32
    %149 = vector.broadcast %cst_46 : f32 to vector<8x128xf32>
    %150 = arith.addf %149, %148 : vector<8x128xf32>
    %151 = arith.divf %149, %150 : vector<8x128xf32>
    %152 = vector.extract_strided_slice %139 {offsets = [0, 256], sizes = [8, 128], strides = [1, 1]} : vector<8x512xf32> to vector<8x128xf32>
    %153 = math.tanh %152 : vector<8x128xf32>
    %154 = vector.extract_strided_slice %139 {offsets = [0, 384], sizes = [8, 128], strides = [1, 1]} : vector<8x512xf32> to vector<8x128xf32>
    %155 = arith.negf %154 : vector<8x128xf32>
    %156 = math.exp %155 : vector<8x128xf32>
    %cst_47 = arith.constant 1.000000e+00 : f32
    %157 = vector.broadcast %cst_47 : f32 to vector<8x128xf32>
    %158 = arith.addf %157, %156 : vector<8x128xf32>
    %159 = arith.divf %157, %158 : vector<8x128xf32>
    %160 = arith.mulf %151, %87 : vector<8x128xf32>
    %161 = arith.mulf %145, %153 : vector<8x128xf32>
    %162 = arith.addf %160, %161 : vector<8x128xf32>
    %163 = math.tanh %162 : vector<8x128xf32>
    %164 = arith.mulf %159, %163 : vector<8x128xf32>
    %165 = arith.addf %90, %164 : vector<8x128xf32>
    %c2_i32 = arith.constant 2 : i32
    %166 = arith.index_cast %c2_i32 : i32 to index
    %c0_48 = arith.constant 0 : index
    %c0_49 = arith.constant 0 : index
    %167 = vector.load %arg2[%166, %c0_48, %c0_49] : memref<8x8x1xf32, #tpu.memory_space<vmem>>, vector<1x8x1xf32>
    %168 = vector.shape_cast %167 : vector<1x8x1xf32> to vector<8x1xf32>
    %cst_50 = arith.constant 0.000000e+00 : f32
    %169 = vector.broadcast %cst_50 : f32 to vector<8x1xf32>
    %170 = arith.cmpf one, %168, %169 : vector<8x1xf32>
    %171 = arith.index_cast %c2_i32 : i32 to index
    %c0_51 = arith.constant 0 : index
    %c0_52 = arith.constant 0 : index
    %172 = vector.load %arg10[%171, %c0_51, %c0_52] : memref<8x8x512xf32, #tpu.memory_space<vmem>>, vector<1x8x512xf32>
    %173 = vector.shape_cast %172 : vector<1x8x512xf32> to vector<8x512xf32>
    %cst_53 = arith.constant dense<0.000000e+00> : vector<8x512xf32>
    %174 = tpu.matmul %128, %9, %cst_53 {dimension_numbers = #tpu.dot_dimension_numbers<[1], [0], [0], [1], [0, 0, 1, 1], [], []>} : vector<8x128xf32>, vector<128x512xf32>, vector<8x512xf32> -> vector<8x512xf32>
    %175 = arith.addf %173, %174 : vector<8x512xf32>
    %176 = vector.extract_strided_slice %175 {offsets = [0, 0], sizes = [8, 128], strides = [1, 1]} : vector<8x512xf32> to vector<8x128xf32>
    %177 = arith.negf %176 : vector<8x128xf32>
    %178 = math.exp %177 : vector<8x128xf32>
    %cst_54 = arith.constant 1.000000e+00 : f32
    %179 = vector.broadcast %cst_54 : f32 to vector<8x128xf32>
    %180 = arith.addf %179, %178 : vector<8x128xf32>
    %181 = arith.divf %179, %180 : vector<8x128xf32>
    %182 = vector.extract_strided_slice %175 {offsets = [0, 128], sizes = [8, 128], strides = [1, 1]} : vector<8x512xf32> to vector<8x128xf32>
    %183 = arith.negf %182 : vector<8x128xf32>
    %184 = math.exp %183 : vector<8x128xf32>
    %cst_55 = arith.constant 1.000000e+00 : f32
    %185 = vector.broadcast %cst_55 : f32 to vector<8x128xf32>
    %186 = arith.addf %185, %184 : vector<8x128xf32>
    %187 = arith.divf %185, %186 : vector<8x128xf32>
    %188 = vector.extract_strided_slice %175 {offsets = [0, 256], sizes = [8, 128], strides = [1, 1]} : vector<8x512xf32> to vector<8x128xf32>
    %189 = math.tanh %188 : vector<8x128xf32>
    %190 = vector.extract_strided_slice %175 {offsets = [0, 384], sizes = [8, 128], strides = [1, 1]} : vector<8x512xf32> to vector<8x128xf32>
    %191 = arith.negf %190 : vector<8x128xf32>
    %192 = math.exp %191 : vector<8x128xf32>
    %cst_56 = arith.constant 1.000000e+00 : f32
    %193 = vector.broadcast %cst_56 : f32 to vector<8x128xf32>
    %194 = arith.addf %193, %192 : vector<8x128xf32>
    %195 = arith.divf %193, %194 : vector<8x128xf32>
    %196 = arith.mulf %187, %131 : vector<8x128xf32>
    %197 = arith.mulf %181, %189 : vector<8x128xf32>
    %198 = arith.addf %196, %197 : vector<8x128xf32>
    %199 = math.tanh %198 : vector<8x128xf32>
    %200 = arith.mulf %195, %199 : vector<8x128xf32>
    %201 = vector.shape_cast %170 : vector<8x1xi1> to vector<8x1xi1>
    %202 = vector.broadcast %201 : vector<8x1xi1> to vector<8x128xi1>
    %203 = arith.select %202, %200, %128 : vector<8x128xi1>, vector<8x128xf32>
    %204 = vector.shape_cast %170 : vector<8x1xi1> to vector<8x1xi1>
    %205 = vector.broadcast %204 : vector<8x1xi1> to vector<8x128xi1>
    %206 = arith.select %205, %198, %131 : vector<8x128xi1>, vector<8x128xf32>
    %cst_57 = arith.constant 0.000000e+00 : f32
    %207 = vector.shape_cast %170 : vector<8x1xi1> to vector<8x1xi1>
    %208 = vector.broadcast %207 : vector<8x1xi1> to vector<8x128xi1>
    %209 = vector.broadcast %cst_57 : f32 to vector<8x128xf32>
    %210 = arith.select %208, %200, %209 : vector<8x128xi1>, vector<8x128xf32>
    %cst_58 = arith.constant dense<0.000000e+00> : vector<8x512xf32>
    %211 = tpu.matmul %210, %10, %cst_58 {dimension_numbers = #tpu.dot_dimension_numbers<[1], [0], [0], [1], [0, 0, 1, 1], [], []>} : vector<8x128xf32>, vector<128x512xf32>, vector<8x512xf32> -> vector<8x512xf32>
    %cst_59 = arith.constant dense<0.000000e+00> : vector<8x512xf32>
    %212 = tpu.matmul %164, %11, %cst_59 {dimension_numbers = #tpu.dot_dimension_numbers<[1], [0], [0], [1], [0, 0, 1, 1], [], []>} : vector<8x128xf32>, vector<128x512xf32>, vector<8x512xf32> -> vector<8x512xf32>
    %213 = arith.addf %211, %212 : vector<8x512xf32>
    %214 = arith.addf %213, %14 : vector<8x512xf32>
    %215 = vector.extract_strided_slice %214 {offsets = [0, 0], sizes = [8, 128], strides = [1, 1]} : vector<8x512xf32> to vector<8x128xf32>
    %216 = arith.negf %215 : vector<8x128xf32>
    %217 = math.exp %216 : vector<8x128xf32>
    %cst_60 = arith.constant 1.000000e+00 : f32
    %218 = vector.broadcast %cst_60 : f32 to vector<8x128xf32>
    %219 = arith.addf %218, %217 : vector<8x128xf32>
    %220 = arith.divf %218, %219 : vector<8x128xf32>
    %221 = vector.extract_strided_slice %214 {offsets = [0, 128], sizes = [8, 128], strides = [1, 1]} : vector<8x512xf32> to vector<8x128xf32>
    %222 = arith.negf %221 : vector<8x128xf32>
    %223 = math.exp %222 : vector<8x128xf32>
    %cst_61 = arith.constant 1.000000e+00 : f32
    %224 = vector.broadcast %cst_61 : f32 to vector<8x128xf32>
    %225 = arith.addf %224, %223 : vector<8x128xf32>
    %226 = arith.divf %224, %225 : vector<8x128xf32>
    %227 = vector.extract_strided_slice %214 {offsets = [0, 256], sizes = [8, 128], strides = [1, 1]} : vector<8x512xf32> to vector<8x128xf32>
    %228 = math.tanh %227 : vector<8x128xf32>
    %229 = vector.extract_strided_slice %214 {offsets = [0, 384], sizes = [8, 128], strides = [1, 1]} : vector<8x512xf32> to vector<8x128xf32>
    %230 = arith.negf %229 : vector<8x128xf32>
    %231 = math.exp %230 : vector<8x128xf32>
    %cst_62 = arith.constant 1.000000e+00 : f32
    %232 = vector.broadcast %cst_62 : f32 to vector<8x128xf32>
    %233 = arith.addf %232, %231 : vector<8x128xf32>
    %234 = arith.divf %232, %233 : vector<8x128xf32>
    %235 = arith.mulf %226, %162 : vector<8x128xf32>
    %236 = arith.mulf %220, %228 : vector<8x128xf32>
    %237 = arith.addf %235, %236 : vector<8x128xf32>
    %238 = math.tanh %237 : vector<8x128xf32>
    %239 = arith.mulf %234, %238 : vector<8x128xf32>
    %240 = arith.addf %165, %239 : vector<8x128xf32>
    %c3_i32 = arith.constant 3 : i32
    %241 = arith.index_cast %c3_i32 : i32 to index
    %c0_63 = arith.constant 0 : index
    %c0_64 = arith.constant 0 : index
    %242 = vector.load %arg2[%241, %c0_63, %c0_64] : memref<8x8x1xf32, #tpu.memory_space<vmem>>, vector<1x8x1xf32>
    %243 = vector.shape_cast %242 : vector<1x8x1xf32> to vector<8x1xf32>
    %cst_65 = arith.constant 0.000000e+00 : f32
    %244 = vector.broadcast %cst_65 : f32 to vector<8x1xf32>
    %245 = arith.cmpf one, %243, %244 : vector<8x1xf32>
    %246 = arith.index_cast %c3_i32 : i32 to index
    %c0_66 = arith.constant 0 : index
    %c0_67 = arith.constant 0 : index
    %247 = vector.load %arg10[%246, %c0_66, %c0_67] : memref<8x8x512xf32, #tpu.memory_space<vmem>>, vector<1x8x512xf32>
    %248 = vector.shape_cast %247 : vector<1x8x512xf32> to vector<8x512xf32>
    %cst_68 = arith.constant dense<0.000000e+00> : vector<8x512xf32>
    %249 = tpu.matmul %203, %9, %cst_68 {dimension_numbers = #tpu.dot_dimension_numbers<[1], [0], [0], [1], [0, 0, 1, 1], [], []>} : vector<8x128xf32>, vector<128x512xf32>, vector<8x512xf32> -> vector<8x512xf32>
    %250 = arith.addf %248, %249 : vector<8x512xf32>
    %251 = vector.extract_strided_slice %250 {offsets = [0, 0], sizes = [8, 128], strides = [1, 1]} : vector<8x512xf32> to vector<8x128xf32>
    %252 = arith.negf %251 : vector<8x128xf32>
    %253 = math.exp %252 : vector<8x128xf32>
    %cst_69 = arith.constant 1.000000e+00 : f32
    %254 = vector.broadcast %cst_69 : f32 to vector<8x128xf32>
    %255 = arith.addf %254, %253 : vector<8x128xf32>
    %256 = arith.divf %254, %255 : vector<8x128xf32>
    %257 = vector.extract_strided_slice %250 {offsets = [0, 128], sizes = [8, 128], strides = [1, 1]} : vector<8x512xf32> to vector<8x128xf32>
    %258 = arith.negf %257 : vector<8x128xf32>
    %259 = math.exp %258 : vector<8x128xf32>
    %cst_70 = arith.constant 1.000000e+00 : f32
    %260 = vector.broadcast %cst_70 : f32 to vector<8x128xf32>
    %261 = arith.addf %260, %259 : vector<8x128xf32>
    %262 = arith.divf %260, %261 : vector<8x128xf32>
    %263 = vector.extract_strided_slice %250 {offsets = [0, 256], sizes = [8, 128], strides = [1, 1]} : vector<8x512xf32> to vector<8x128xf32>
    %264 = math.tanh %263 : vector<8x128xf32>
    %265 = vector.extract_strided_slice %250 {offsets = [0, 384], sizes = [8, 128], strides = [1, 1]} : vector<8x512xf32> to vector<8x128xf32>
    %266 = arith.negf %265 : vector<8x128xf32>
    %267 = math.exp %266 : vector<8x128xf32>
    %cst_71 = arith.constant 1.000000e+00 : f32
    %268 = vector.broadcast %cst_71 : f32 to vector<8x128xf32>
    %269 = arith.addf %268, %267 : vector<8x128xf32>
    %270 = arith.divf %268, %269 : vector<8x128xf32>
    %271 = arith.mulf %262, %206 : vector<8x128xf32>
    %272 = arith.mulf %256, %264 : vector<8x128xf32>
    %273 = arith.addf %271, %272 : vector<8x128xf32>
    %274 = math.tanh %273 : vector<8x128xf32>
    %275 = arith.mulf %270, %274 : vector<8x128xf32>
    %276 = vector.shape_cast %245 : vector<8x1xi1> to vector<8x1xi1>
    %277 = vector.broadcast %276 : vector<8x1xi1> to vector<8x128xi1>
    %278 = arith.select %277, %275, %203 : vector<8x128xi1>, vector<8x128xf32>
    %279 = vector.shape_cast %245 : vector<8x1xi1> to vector<8x1xi1>
    %280 = vector.broadcast %279 : vector<8x1xi1> to vector<8x128xi1>
    %281 = arith.select %280, %273, %206 : vector<8x128xi1>, vector<8x128xf32>
    %cst_72 = arith.constant 0.000000e+00 : f32
    %282 = vector.shape_cast %245 : vector<8x1xi1> to vector<8x1xi1>
    %283 = vector.broadcast %282 : vector<8x1xi1> to vector<8x128xi1>
    %284 = vector.broadcast %cst_72 : f32 to vector<8x128xf32>
    %285 = arith.select %283, %275, %284 : vector<8x128xi1>, vector<8x128xf32>
    %cst_73 = arith.constant dense<0.000000e+00> : vector<8x512xf32>
    %286 = tpu.matmul %285, %10, %cst_73 {dimension_numbers = #tpu.dot_dimension_numbers<[1], [0], [0], [1], [0, 0, 1, 1], [], []>} : vector<8x128xf32>, vector<128x512xf32>, vector<8x512xf32> -> vector<8x512xf32>
    %cst_74 = arith.constant dense<0.000000e+00> : vector<8x512xf32>
    %287 = tpu.matmul %239, %11, %cst_74 {dimension_numbers = #tpu.dot_dimension_numbers<[1], [0], [0], [1], [0, 0, 1, 1], [], []>} : vector<8x128xf32>, vector<128x512xf32>, vector<8x512xf32> -> vector<8x512xf32>
    %288 = arith.addf %286, %287 : vector<8x512xf32>
    %289 = arith.addf %288, %14 : vector<8x512xf32>
    %290 = vector.extract_strided_slice %289 {offsets = [0, 0], sizes = [8, 128], strides = [1, 1]} : vector<8x512xf32> to vector<8x128xf32>
    %291 = arith.negf %290 : vector<8x128xf32>
    %292 = math.exp %291 : vector<8x128xf32>
    %cst_75 = arith.constant 1.000000e+00 : f32
    %293 = vector.broadcast %cst_75 : f32 to vector<8x128xf32>
    %294 = arith.addf %293, %292 : vector<8x128xf32>
    %295 = arith.divf %293, %294 : vector<8x128xf32>
    %296 = vector.extract_strided_slice %289 {offsets = [0, 128], sizes = [8, 128], strides = [1, 1]} : vector<8x512xf32> to vector<8x128xf32>
    %297 = arith.negf %296 : vector<8x128xf32>
    %298 = math.exp %297 : vector<8x128xf32>
    %cst_76 = arith.constant 1.000000e+00 : f32
    %299 = vector.broadcast %cst_76 : f32 to vector<8x128xf32>
    %300 = arith.addf %299, %298 : vector<8x128xf32>
    %301 = arith.divf %299, %300 : vector<8x128xf32>
    %302 = vector.extract_strided_slice %289 {offsets = [0, 256], sizes = [8, 128], strides = [1, 1]} : vector<8x512xf32> to vector<8x128xf32>
    %303 = math.tanh %302 : vector<8x128xf32>
    %304 = vector.extract_strided_slice %289 {offsets = [0, 384], sizes = [8, 128], strides = [1, 1]} : vector<8x512xf32> to vector<8x128xf32>
    %305 = arith.negf %304 : vector<8x128xf32>
    %306 = math.exp %305 : vector<8x128xf32>
    %cst_77 = arith.constant 1.000000e+00 : f32
    %307 = vector.broadcast %cst_77 : f32 to vector<8x128xf32>
    %308 = arith.addf %307, %306 : vector<8x128xf32>
    %309 = arith.divf %307, %308 : vector<8x128xf32>
    %310 = arith.mulf %301, %237 : vector<8x128xf32>
    %311 = arith.mulf %295, %303 : vector<8x128xf32>
    %312 = arith.addf %310, %311 : vector<8x128xf32>
    %313 = math.tanh %312 : vector<8x128xf32>
    %314 = arith.mulf %309, %313 : vector<8x128xf32>
    %315 = arith.addf %240, %314 : vector<8x128xf32>
    %c4_i32 = arith.constant 4 : i32
    %316 = arith.index_cast %c4_i32 : i32 to index
    %c0_78 = arith.constant 0 : index
    %c0_79 = arith.constant 0 : index
    %317 = vector.load %arg2[%316, %c0_78, %c0_79] : memref<8x8x1xf32, #tpu.memory_space<vmem>>, vector<1x8x1xf32>
    %318 = vector.shape_cast %317 : vector<1x8x1xf32> to vector<8x1xf32>
    %cst_80 = arith.constant 0.000000e+00 : f32
    %319 = vector.broadcast %cst_80 : f32 to vector<8x1xf32>
    %320 = arith.cmpf one, %318, %319 : vector<8x1xf32>
    %321 = arith.index_cast %c4_i32 : i32 to index
    %c0_81 = arith.constant 0 : index
    %c0_82 = arith.constant 0 : index
    %322 = vector.load %arg10[%321, %c0_81, %c0_82] : memref<8x8x512xf32, #tpu.memory_space<vmem>>, vector<1x8x512xf32>
    %323 = vector.shape_cast %322 : vector<1x8x512xf32> to vector<8x512xf32>
    %cst_83 = arith.constant dense<0.000000e+00> : vector<8x512xf32>
    %324 = tpu.matmul %278, %9, %cst_83 {dimension_numbers = #tpu.dot_dimension_numbers<[1], [0], [0], [1], [0, 0, 1, 1], [], []>} : vector<8x128xf32>, vector<128x512xf32>, vector<8x512xf32> -> vector<8x512xf32>
    %325 = arith.addf %323, %324 : vector<8x512xf32>
    %326 = vector.extract_strided_slice %325 {offsets = [0, 0], sizes = [8, 128], strides = [1, 1]} : vector<8x512xf32> to vector<8x128xf32>
    %327 = arith.negf %326 : vector<8x128xf32>
    %328 = math.exp %327 : vector<8x128xf32>
    %cst_84 = arith.constant 1.000000e+00 : f32
    %329 = vector.broadcast %cst_84 : f32 to vector<8x128xf32>
    %330 = arith.addf %329, %328 : vector<8x128xf32>
    %331 = arith.divf %329, %330 : vector<8x128xf32>
    %332 = vector.extract_strided_slice %325 {offsets = [0, 128], sizes = [8, 128], strides = [1, 1]} : vector<8x512xf32> to vector<8x128xf32>
    %333 = arith.negf %332 : vector<8x128xf32>
    %334 = math.exp %333 : vector<8x128xf32>
    %cst_85 = arith.constant 1.000000e+00 : f32
    %335 = vector.broadcast %cst_85 : f32 to vector<8x128xf32>
    %336 = arith.addf %335, %334 : vector<8x128xf32>
    %337 = arith.divf %335, %336 : vector<8x128xf32>
    %338 = vector.extract_strided_slice %325 {offsets = [0, 256], sizes = [8, 128], strides = [1, 1]} : vector<8x512xf32> to vector<8x128xf32>
    %339 = math.tanh %338 : vector<8x128xf32>
    %340 = vector.extract_strided_slice %325 {offsets = [0, 384], sizes = [8, 128], strides = [1, 1]} : vector<8x512xf32> to vector<8x128xf32>
    %341 = arith.negf %340 : vector<8x128xf32>
    %342 = math.exp %341 : vector<8x128xf32>
    %cst_86 = arith.constant 1.000000e+00 : f32
    %343 = vector.broadcast %cst_86 : f32 to vector<8x128xf32>
    %344 = arith.addf %343, %342 : vector<8x128xf32>
    %345 = arith.divf %343, %344 : vector<8x128xf32>
    %346 = arith.mulf %337, %281 : vector<8x128xf32>
    %347 = arith.mulf %331, %339 : vector<8x128xf32>
    %348 = arith.addf %346, %347 : vector<8x128xf32>
    %349 = math.tanh %348 : vector<8x128xf32>
    %350 = arith.mulf %345, %349 : vector<8x128xf32>
    %351 = vector.shape_cast %320 : vector<8x1xi1> to vector<8x1xi1>
    %352 = vector.broadcast %351 : vector<8x1xi1> to vector<8x128xi1>
    %353 = arith.select %352, %350, %278 : vector<8x128xi1>, vector<8x128xf32>
    %354 = vector.shape_cast %320 : vector<8x1xi1> to vector<8x1xi1>
    %355 = vector.broadcast %354 : vector<8x1xi1> to vector<8x128xi1>
    %356 = arith.select %355, %348, %281 : vector<8x128xi1>, vector<8x128xf32>
    %cst_87 = arith.constant 0.000000e+00 : f32
    %357 = vector.shape_cast %320 : vector<8x1xi1> to vector<8x1xi1>
    %358 = vector.broadcast %357 : vector<8x1xi1> to vector<8x128xi1>
    %359 = vector.broadcast %cst_87 : f32 to vector<8x128xf32>
    %360 = arith.select %358, %350, %359 : vector<8x128xi1>, vector<8x128xf32>
    %cst_88 = arith.constant dense<0.000000e+00> : vector<8x512xf32>
    %361 = tpu.matmul %360, %10, %cst_88 {dimension_numbers = #tpu.dot_dimension_numbers<[1], [0], [0], [1], [0, 0, 1, 1], [], []>} : vector<8x128xf32>, vector<128x512xf32>, vector<8x512xf32> -> vector<8x512xf32>
    %cst_89 = arith.constant dense<0.000000e+00> : vector<8x512xf32>
    %362 = tpu.matmul %314, %11, %cst_89 {dimension_numbers = #tpu.dot_dimension_numbers<[1], [0], [0], [1], [0, 0, 1, 1], [], []>} : vector<8x128xf32>, vector<128x512xf32>, vector<8x512xf32> -> vector<8x512xf32>
    %363 = arith.addf %361, %362 : vector<8x512xf32>
    %364 = arith.addf %363, %14 : vector<8x512xf32>
    %365 = vector.extract_strided_slice %364 {offsets = [0, 0], sizes = [8, 128], strides = [1, 1]} : vector<8x512xf32> to vector<8x128xf32>
    %366 = arith.negf %365 : vector<8x128xf32>
    %367 = math.exp %366 : vector<8x128xf32>
    %cst_90 = arith.constant 1.000000e+00 : f32
    %368 = vector.broadcast %cst_90 : f32 to vector<8x128xf32>
    %369 = arith.addf %368, %367 : vector<8x128xf32>
    %370 = arith.divf %368, %369 : vector<8x128xf32>
    %371 = vector.extract_strided_slice %364 {offsets = [0, 128], sizes = [8, 128], strides = [1, 1]} : vector<8x512xf32> to vector<8x128xf32>
    %372 = arith.negf %371 : vector<8x128xf32>
    %373 = math.exp %372 : vector<8x128xf32>
    %cst_91 = arith.constant 1.000000e+00 : f32
    %374 = vector.broadcast %cst_91 : f32 to vector<8x128xf32>
    %375 = arith.addf %374, %373 : vector<8x128xf32>
    %376 = arith.divf %374, %375 : vector<8x128xf32>
    %377 = vector.extract_strided_slice %364 {offsets = [0, 256], sizes = [8, 128], strides = [1, 1]} : vector<8x512xf32> to vector<8x128xf32>
    %378 = math.tanh %377 : vector<8x128xf32>
    %379 = vector.extract_strided_slice %364 {offsets = [0, 384], sizes = [8, 128], strides = [1, 1]} : vector<8x512xf32> to vector<8x128xf32>
    %380 = arith.negf %379 : vector<8x128xf32>
    %381 = math.exp %380 : vector<8x128xf32>
    %cst_92 = arith.constant 1.000000e+00 : f32
    %382 = vector.broadcast %cst_92 : f32 to vector<8x128xf32>
    %383 = arith.addf %382, %381 : vector<8x128xf32>
    %384 = arith.divf %382, %383 : vector<8x128xf32>
    %385 = arith.mulf %376, %312 : vector<8x128xf32>
    %386 = arith.mulf %370, %378 : vector<8x128xf32>
    %387 = arith.addf %385, %386 : vector<8x128xf32>
    %388 = math.tanh %387 : vector<8x128xf32>
    %389 = arith.mulf %384, %388 : vector<8x128xf32>
    %390 = arith.addf %315, %389 : vector<8x128xf32>
    %c5_i32 = arith.constant 5 : i32
    %391 = arith.index_cast %c5_i32 : i32 to index
    %c0_93 = arith.constant 0 : index
    %c0_94 = arith.constant 0 : index
    %392 = vector.load %arg2[%391, %c0_93, %c0_94] : memref<8x8x1xf32, #tpu.memory_space<vmem>>, vector<1x8x1xf32>
    %393 = vector.shape_cast %392 : vector<1x8x1xf32> to vector<8x1xf32>
    %cst_95 = arith.constant 0.000000e+00 : f32
    %394 = vector.broadcast %cst_95 : f32 to vector<8x1xf32>
    %395 = arith.cmpf one, %393, %394 : vector<8x1xf32>
    %396 = arith.index_cast %c5_i32 : i32 to index
    %c0_96 = arith.constant 0 : index
    %c0_97 = arith.constant 0 : index
    %397 = vector.load %arg10[%396, %c0_96, %c0_97] : memref<8x8x512xf32, #tpu.memory_space<vmem>>, vector<1x8x512xf32>
    %398 = vector.shape_cast %397 : vector<1x8x512xf32> to vector<8x512xf32>
    %cst_98 = arith.constant dense<0.000000e+00> : vector<8x512xf32>
    %399 = tpu.matmul %353, %9, %cst_98 {dimension_numbers = #tpu.dot_dimension_numbers<[1], [0], [0], [1], [0, 0, 1, 1], [], []>} : vector<8x128xf32>, vector<128x512xf32>, vector<8x512xf32> -> vector<8x512xf32>
    %400 = arith.addf %398, %399 : vector<8x512xf32>
    %401 = vector.extract_strided_slice %400 {offsets = [0, 0], sizes = [8, 128], strides = [1, 1]} : vector<8x512xf32> to vector<8x128xf32>
    %402 = arith.negf %401 : vector<8x128xf32>
    %403 = math.exp %402 : vector<8x128xf32>
    %cst_99 = arith.constant 1.000000e+00 : f32
    %404 = vector.broadcast %cst_99 : f32 to vector<8x128xf32>
    %405 = arith.addf %404, %403 : vector<8x128xf32>
    %406 = arith.divf %404, %405 : vector<8x128xf32>
    %407 = vector.extract_strided_slice %400 {offsets = [0, 128], sizes = [8, 128], strides = [1, 1]} : vector<8x512xf32> to vector<8x128xf32>
    %408 = arith.negf %407 : vector<8x128xf32>
    %409 = math.exp %408 : vector<8x128xf32>
    %cst_100 = arith.constant 1.000000e+00 : f32
    %410 = vector.broadcast %cst_100 : f32 to vector<8x128xf32>
    %411 = arith.addf %410, %409 : vector<8x128xf32>
    %412 = arith.divf %410, %411 : vector<8x128xf32>
    %413 = vector.extract_strided_slice %400 {offsets = [0, 256], sizes = [8, 128], strides = [1, 1]} : vector<8x512xf32> to vector<8x128xf32>
    %414 = math.tanh %413 : vector<8x128xf32>
    %415 = vector.extract_strided_slice %400 {offsets = [0, 384], sizes = [8, 128], strides = [1, 1]} : vector<8x512xf32> to vector<8x128xf32>
    %416 = arith.negf %415 : vector<8x128xf32>
    %417 = math.exp %416 : vector<8x128xf32>
    %cst_101 = arith.constant 1.000000e+00 : f32
    %418 = vector.broadcast %cst_101 : f32 to vector<8x128xf32>
    %419 = arith.addf %418, %417 : vector<8x128xf32>
    %420 = arith.divf %418, %419 : vector<8x128xf32>
    %421 = arith.mulf %412, %356 : vector<8x128xf32>
    %422 = arith.mulf %406, %414 : vector<8x128xf32>
    %423 = arith.addf %421, %422 : vector<8x128xf32>
    %424 = math.tanh %423 : vector<8x128xf32>
    %425 = arith.mulf %420, %424 : vector<8x128xf32>
    %426 = vector.shape_cast %395 : vector<8x1xi1> to vector<8x1xi1>
    %427 = vector.broadcast %426 : vector<8x1xi1> to vector<8x128xi1>
    %428 = arith.select %427, %425, %353 : vector<8x128xi1>, vector<8x128xf32>
    %429 = vector.shape_cast %395 : vector<8x1xi1> to vector<8x1xi1>
    %430 = vector.broadcast %429 : vector<8x1xi1> to vector<8x128xi1>
    %431 = arith.select %430, %423, %356 : vector<8x128xi1>, vector<8x128xf32>
    %cst_102 = arith.constant 0.000000e+00 : f32
    %432 = vector.shape_cast %395 : vector<8x1xi1> to vector<8x1xi1>
    %433 = vector.broadcast %432 : vector<8x1xi1> to vector<8x128xi1>
    %434 = vector.broadcast %cst_102 : f32 to vector<8x128xf32>
    %435 = arith.select %433, %425, %434 : vector<8x128xi1>, vector<8x128xf32>
    %cst_103 = arith.constant dense<0.000000e+00> : vector<8x512xf32>
    %436 = tpu.matmul %435, %10, %cst_103 {dimension_numbers = #tpu.dot_dimension_numbers<[1], [0], [0], [1], [0, 0, 1, 1], [], []>} : vector<8x128xf32>, vector<128x512xf32>, vector<8x512xf32> -> vector<8x512xf32>
    %cst_104 = arith.constant dense<0.000000e+00> : vector<8x512xf32>
    %437 = tpu.matmul %389, %11, %cst_104 {dimension_numbers = #tpu.dot_dimension_numbers<[1], [0], [0], [1], [0, 0, 1, 1], [], []>} : vector<8x128xf32>, vector<128x512xf32>, vector<8x512xf32> -> vector<8x512xf32>
    %438 = arith.addf %436, %437 : vector<8x512xf32>
    %439 = arith.addf %438, %14 : vector<8x512xf32>
    %440 = vector.extract_strided_slice %439 {offsets = [0, 0], sizes = [8, 128], strides = [1, 1]} : vector<8x512xf32> to vector<8x128xf32>
    %441 = arith.negf %440 : vector<8x128xf32>
    %442 = math.exp %441 : vector<8x128xf32>
    %cst_105 = arith.constant 1.000000e+00 : f32
    %443 = vector.broadcast %cst_105 : f32 to vector<8x128xf32>
    %444 = arith.addf %443, %442 : vector<8x128xf32>
    %445 = arith.divf %443, %444 : vector<8x128xf32>
    %446 = vector.extract_strided_slice %439 {offsets = [0, 128], sizes = [8, 128], strides = [1, 1]} : vector<8x512xf32> to vector<8x128xf32>
    %447 = arith.negf %446 : vector<8x128xf32>
    %448 = math.exp %447 : vector<8x128xf32>
    %cst_106 = arith.constant 1.000000e+00 : f32
    %449 = vector.broadcast %cst_106 : f32 to vector<8x128xf32>
    %450 = arith.addf %449, %448 : vector<8x128xf32>
    %451 = arith.divf %449, %450 : vector<8x128xf32>
    %452 = vector.extract_strided_slice %439 {offsets = [0, 256], sizes = [8, 128], strides = [1, 1]} : vector<8x512xf32> to vector<8x128xf32>
    %453 = math.tanh %452 : vector<8x128xf32>
    %454 = vector.extract_strided_slice %439 {offsets = [0, 384], sizes = [8, 128], strides = [1, 1]} : vector<8x512xf32> to vector<8x128xf32>
    %455 = arith.negf %454 : vector<8x128xf32>
    %456 = math.exp %455 : vector<8x128xf32>
    %cst_107 = arith.constant 1.000000e+00 : f32
    %457 = vector.broadcast %cst_107 : f32 to vector<8x128xf32>
    %458 = arith.addf %457, %456 : vector<8x128xf32>
    %459 = arith.divf %457, %458 : vector<8x128xf32>
    %460 = arith.mulf %451, %387 : vector<8x128xf32>
    %461 = arith.mulf %445, %453 : vector<8x128xf32>
    %462 = arith.addf %460, %461 : vector<8x128xf32>
    %463 = math.tanh %462 : vector<8x128xf32>
    %464 = arith.mulf %459, %463 : vector<8x128xf32>
    %465 = arith.addf %390, %464 : vector<8x128xf32>
    %c6_i32 = arith.constant 6 : i32
    %466 = arith.index_cast %c6_i32 : i32 to index
    %c0_108 = arith.constant 0 : index
    %c0_109 = arith.constant 0 : index
    %467 = vector.load %arg2[%466, %c0_108, %c0_109] : memref<8x8x1xf32, #tpu.memory_space<vmem>>, vector<1x8x1xf32>
    %468 = vector.shape_cast %467 : vector<1x8x1xf32> to vector<8x1xf32>
    %cst_110 = arith.constant 0.000000e+00 : f32
    %469 = vector.broadcast %cst_110 : f32 to vector<8x1xf32>
    %470 = arith.cmpf one, %468, %469 : vector<8x1xf32>
    %471 = arith.index_cast %c6_i32 : i32 to index
    %c0_111 = arith.constant 0 : index
    %c0_112 = arith.constant 0 : index
    %472 = vector.load %arg10[%471, %c0_111, %c0_112] : memref<8x8x512xf32, #tpu.memory_space<vmem>>, vector<1x8x512xf32>
    %473 = vector.shape_cast %472 : vector<1x8x512xf32> to vector<8x512xf32>
    %cst_113 = arith.constant dense<0.000000e+00> : vector<8x512xf32>
    %474 = tpu.matmul %428, %9, %cst_113 {dimension_numbers = #tpu.dot_dimension_numbers<[1], [0], [0], [1], [0, 0, 1, 1], [], []>} : vector<8x128xf32>, vector<128x512xf32>, vector<8x512xf32> -> vector<8x512xf32>
    %475 = arith.addf %473, %474 : vector<8x512xf32>
    %476 = vector.extract_strided_slice %475 {offsets = [0, 0], sizes = [8, 128], strides = [1, 1]} : vector<8x512xf32> to vector<8x128xf32>
    %477 = arith.negf %476 : vector<8x128xf32>
    %478 = math.exp %477 : vector<8x128xf32>
    %cst_114 = arith.constant 1.000000e+00 : f32
    %479 = vector.broadcast %cst_114 : f32 to vector<8x128xf32>
    %480 = arith.addf %479, %478 : vector<8x128xf32>
    %481 = arith.divf %479, %480 : vector<8x128xf32>
    %482 = vector.extract_strided_slice %475 {offsets = [0, 128], sizes = [8, 128], strides = [1, 1]} : vector<8x512xf32> to vector<8x128xf32>
    %483 = arith.negf %482 : vector<8x128xf32>
    %484 = math.exp %483 : vector<8x128xf32>
    %cst_115 = arith.constant 1.000000e+00 : f32
    %485 = vector.broadcast %cst_115 : f32 to vector<8x128xf32>
    %486 = arith.addf %485, %484 : vector<8x128xf32>
    %487 = arith.divf %485, %486 : vector<8x128xf32>
    %488 = vector.extract_strided_slice %475 {offsets = [0, 256], sizes = [8, 128], strides = [1, 1]} : vector<8x512xf32> to vector<8x128xf32>
    %489 = math.tanh %488 : vector<8x128xf32>
    %490 = vector.extract_strided_slice %475 {offsets = [0, 384], sizes = [8, 128], strides = [1, 1]} : vector<8x512xf32> to vector<8x128xf32>
    %491 = arith.negf %490 : vector<8x128xf32>
    %492 = math.exp %491 : vector<8x128xf32>
    %cst_116 = arith.constant 1.000000e+00 : f32
    %493 = vector.broadcast %cst_116 : f32 to vector<8x128xf32>
    %494 = arith.addf %493, %492 : vector<8x128xf32>
    %495 = arith.divf %493, %494 : vector<8x128xf32>
    %496 = arith.mulf %487, %431 : vector<8x128xf32>
    %497 = arith.mulf %481, %489 : vector<8x128xf32>
    %498 = arith.addf %496, %497 : vector<8x128xf32>
    %499 = math.tanh %498 : vector<8x128xf32>
    %500 = arith.mulf %495, %499 : vector<8x128xf32>
    %501 = vector.shape_cast %470 : vector<8x1xi1> to vector<8x1xi1>
    %502 = vector.broadcast %501 : vector<8x1xi1> to vector<8x128xi1>
    %503 = arith.select %502, %500, %428 : vector<8x128xi1>, vector<8x128xf32>
    %504 = vector.shape_cast %470 : vector<8x1xi1> to vector<8x1xi1>
    %505 = vector.broadcast %504 : vector<8x1xi1> to vector<8x128xi1>
    %506 = arith.select %505, %498, %431 : vector<8x128xi1>, vector<8x128xf32>
    %cst_117 = arith.constant 0.000000e+00 : f32
    %507 = vector.shape_cast %470 : vector<8x1xi1> to vector<8x1xi1>
    %508 = vector.broadcast %507 : vector<8x1xi1> to vector<8x128xi1>
    %509 = vector.broadcast %cst_117 : f32 to vector<8x128xf32>
    %510 = arith.select %508, %500, %509 : vector<8x128xi1>, vector<8x128xf32>
    %cst_118 = arith.constant dense<0.000000e+00> : vector<8x512xf32>
    %511 = tpu.matmul %510, %10, %cst_118 {dimension_numbers = #tpu.dot_dimension_numbers<[1], [0], [0], [1], [0, 0, 1, 1], [], []>} : vector<8x128xf32>, vector<128x512xf32>, vector<8x512xf32> -> vector<8x512xf32>
    %cst_119 = arith.constant dense<0.000000e+00> : vector<8x512xf32>
    %512 = tpu.matmul %464, %11, %cst_119 {dimension_numbers = #tpu.dot_dimension_numbers<[1], [0], [0], [1], [0, 0, 1, 1], [], []>} : vector<8x128xf32>, vector<128x512xf32>, vector<8x512xf32> -> vector<8x512xf32>
    %513 = arith.addf %511, %512 : vector<8x512xf32>
    %514 = arith.addf %513, %14 : vector<8x512xf32>
    %515 = vector.extract_strided_slice %514 {offsets = [0, 0], sizes = [8, 128], strides = [1, 1]} : vector<8x512xf32> to vector<8x128xf32>
    %516 = arith.negf %515 : vector<8x128xf32>
    %517 = math.exp %516 : vector<8x128xf32>
    %cst_120 = arith.constant 1.000000e+00 : f32
    %518 = vector.broadcast %cst_120 : f32 to vector<8x128xf32>
    %519 = arith.addf %518, %517 : vector<8x128xf32>
    %520 = arith.divf %518, %519 : vector<8x128xf32>
    %521 = vector.extract_strided_slice %514 {offsets = [0, 128], sizes = [8, 128], strides = [1, 1]} : vector<8x512xf32> to vector<8x128xf32>
    %522 = arith.negf %521 : vector<8x128xf32>
    %523 = math.exp %522 : vector<8x128xf32>
    %cst_121 = arith.constant 1.000000e+00 : f32
    %524 = vector.broadcast %cst_121 : f32 to vector<8x128xf32>
    %525 = arith.addf %524, %523 : vector<8x128xf32>
    %526 = arith.divf %524, %525 : vector<8x128xf32>
    %527 = vector.extract_strided_slice %514 {offsets = [0, 256], sizes = [8, 128], strides = [1, 1]} : vector<8x512xf32> to vector<8x128xf32>
    %528 = math.tanh %527 : vector<8x128xf32>
    %529 = vector.extract_strided_slice %514 {offsets = [0, 384], sizes = [8, 128], strides = [1, 1]} : vector<8x512xf32> to vector<8x128xf32>
    %530 = arith.negf %529 : vector<8x128xf32>
    %531 = math.exp %530 : vector<8x128xf32>
    %cst_122 = arith.constant 1.000000e+00 : f32
    %532 = vector.broadcast %cst_122 : f32 to vector<8x128xf32>
    %533 = arith.addf %532, %531 : vector<8x128xf32>
    %534 = arith.divf %532, %533 : vector<8x128xf32>
    %535 = arith.mulf %526, %462 : vector<8x128xf32>
    %536 = arith.mulf %520, %528 : vector<8x128xf32>
    %537 = arith.addf %535, %536 : vector<8x128xf32>
    %538 = math.tanh %537 : vector<8x128xf32>
    %539 = arith.mulf %534, %538 : vector<8x128xf32>
    %540 = arith.addf %465, %539 : vector<8x128xf32>
    %c7_i32 = arith.constant 7 : i32
    %541 = arith.index_cast %c7_i32 : i32 to index
    %c0_123 = arith.constant 0 : index
    %c0_124 = arith.constant 0 : index
    %542 = vector.load %arg2[%541, %c0_123, %c0_124] : memref<8x8x1xf32, #tpu.memory_space<vmem>>, vector<1x8x1xf32>
    %543 = vector.shape_cast %542 : vector<1x8x1xf32> to vector<8x1xf32>
    %cst_125 = arith.constant 0.000000e+00 : f32
    %544 = vector.broadcast %cst_125 : f32 to vector<8x1xf32>
    %545 = arith.cmpf one, %543, %544 : vector<8x1xf32>
    %546 = arith.index_cast %c7_i32 : i32 to index
    %c0_126 = arith.constant 0 : index
    %c0_127 = arith.constant 0 : index
    %547 = vector.load %arg10[%546, %c0_126, %c0_127] : memref<8x8x512xf32, #tpu.memory_space<vmem>>, vector<1x8x512xf32>
    %548 = vector.shape_cast %547 : vector<1x8x512xf32> to vector<8x512xf32>
    %cst_128 = arith.constant dense<0.000000e+00> : vector<8x512xf32>
    %549 = tpu.matmul %503, %9, %cst_128 {dimension_numbers = #tpu.dot_dimension_numbers<[1], [0], [0], [1], [0, 0, 1, 1], [], []>} : vector<8x128xf32>, vector<128x512xf32>, vector<8x512xf32> -> vector<8x512xf32>
    %550 = arith.addf %548, %549 : vector<8x512xf32>
    %551 = vector.extract_strided_slice %550 {offsets = [0, 0], sizes = [8, 128], strides = [1, 1]} : vector<8x512xf32> to vector<8x128xf32>
    %552 = arith.negf %551 : vector<8x128xf32>
    %553 = math.exp %552 : vector<8x128xf32>
    %cst_129 = arith.constant 1.000000e+00 : f32
    %554 = vector.broadcast %cst_129 : f32 to vector<8x128xf32>
    %555 = arith.addf %554, %553 : vector<8x128xf32>
    %556 = arith.divf %554, %555 : vector<8x128xf32>
    %557 = vector.extract_strided_slice %550 {offsets = [0, 128], sizes = [8, 128], strides = [1, 1]} : vector<8x512xf32> to vector<8x128xf32>
    %558 = arith.negf %557 : vector<8x128xf32>
    %559 = math.exp %558 : vector<8x128xf32>
    %cst_130 = arith.constant 1.000000e+00 : f32
    %560 = vector.broadcast %cst_130 : f32 to vector<8x128xf32>
    %561 = arith.addf %560, %559 : vector<8x128xf32>
    %562 = arith.divf %560, %561 : vector<8x128xf32>
    %563 = vector.extract_strided_slice %550 {offsets = [0, 256], sizes = [8, 128], strides = [1, 1]} : vector<8x512xf32> to vector<8x128xf32>
    %564 = math.tanh %563 : vector<8x128xf32>
    %565 = vector.extract_strided_slice %550 {offsets = [0, 384], sizes = [8, 128], strides = [1, 1]} : vector<8x512xf32> to vector<8x128xf32>
    %566 = arith.negf %565 : vector<8x128xf32>
    %567 = math.exp %566 : vector<8x128xf32>
    %cst_131 = arith.constant 1.000000e+00 : f32
    %568 = vector.broadcast %cst_131 : f32 to vector<8x128xf32>
    %569 = arith.addf %568, %567 : vector<8x128xf32>
    %570 = arith.divf %568, %569 : vector<8x128xf32>
    %571 = arith.mulf %562, %506 : vector<8x128xf32>
    %572 = arith.mulf %556, %564 : vector<8x128xf32>
    %573 = arith.addf %571, %572 : vector<8x128xf32>
    %574 = math.tanh %573 : vector<8x128xf32>
    %575 = arith.mulf %570, %574 : vector<8x128xf32>
    %576 = vector.shape_cast %545 : vector<8x1xi1> to vector<8x1xi1>
    %577 = vector.broadcast %576 : vector<8x1xi1> to vector<8x128xi1>
    %578 = arith.select %577, %575, %503 : vector<8x128xi1>, vector<8x128xf32>
    %579 = vector.shape_cast %545 : vector<8x1xi1> to vector<8x1xi1>
    %580 = vector.broadcast %579 : vector<8x1xi1> to vector<8x128xi1>
    %581 = arith.select %580, %573, %506 : vector<8x128xi1>, vector<8x128xf32>
    %cst_132 = arith.constant 0.000000e+00 : f32
    %582 = vector.shape_cast %545 : vector<8x1xi1> to vector<8x1xi1>
    %583 = vector.broadcast %582 : vector<8x1xi1> to vector<8x128xi1>
    %584 = vector.broadcast %cst_132 : f32 to vector<8x128xf32>
    %585 = arith.select %583, %575, %584 : vector<8x128xi1>, vector<8x128xf32>
    %cst_133 = arith.constant dense<0.000000e+00> : vector<8x512xf32>
    %586 = tpu.matmul %585, %10, %cst_133 {dimension_numbers = #tpu.dot_dimension_numbers<[1], [0], [0], [1], [0, 0, 1, 1], [], []>} : vector<8x128xf32>, vector<128x512xf32>, vector<8x512xf32> -> vector<8x512xf32>
    %cst_134 = arith.constant dense<0.000000e+00> : vector<8x512xf32>
    %587 = tpu.matmul %539, %11, %cst_134 {dimension_numbers = #tpu.dot_dimension_numbers<[1], [0], [0], [1], [0, 0, 1, 1], [], []>} : vector<8x128xf32>, vector<128x512xf32>, vector<8x512xf32> -> vector<8x512xf32>
    %588 = arith.addf %586, %587 : vector<8x512xf32>
    %589 = arith.addf %588, %14 : vector<8x512xf32>
    %590 = vector.extract_strided_slice %589 {offsets = [0, 0], sizes = [8, 128], strides = [1, 1]} : vector<8x512xf32> to vector<8x128xf32>
    %591 = arith.negf %590 : vector<8x128xf32>
    %592 = math.exp %591 : vector<8x128xf32>
    %cst_135 = arith.constant 1.000000e+00 : f32
    %593 = vector.broadcast %cst_135 : f32 to vector<8x128xf32>
    %594 = arith.addf %593, %592 : vector<8x128xf32>
    %595 = arith.divf %593, %594 : vector<8x128xf32>
    %596 = vector.extract_strided_slice %589 {offsets = [0, 128], sizes = [8, 128], strides = [1, 1]} : vector<8x512xf32> to vector<8x128xf32>
    %597 = arith.negf %596 : vector<8x128xf32>
    %598 = math.exp %597 : vector<8x128xf32>
    %cst_136 = arith.constant 1.000000e+00 : f32
    %599 = vector.broadcast %cst_136 : f32 to vector<8x128xf32>
    %600 = arith.addf %599, %598 : vector<8x128xf32>
    %601 = arith.divf %599, %600 : vector<8x128xf32>
    %602 = vector.extract_strided_slice %589 {offsets = [0, 256], sizes = [8, 128], strides = [1, 1]} : vector<8x512xf32> to vector<8x128xf32>
    %603 = math.tanh %602 : vector<8x128xf32>
    %604 = vector.extract_strided_slice %589 {offsets = [0, 384], sizes = [8, 128], strides = [1, 1]} : vector<8x512xf32> to vector<8x128xf32>
    %605 = arith.negf %604 : vector<8x128xf32>
    %606 = math.exp %605 : vector<8x128xf32>
    %cst_137 = arith.constant 1.000000e+00 : f32
    %607 = vector.broadcast %cst_137 : f32 to vector<8x128xf32>
    %608 = arith.addf %607, %606 : vector<8x128xf32>
    %609 = arith.divf %607, %608 : vector<8x128xf32>
    %610 = arith.mulf %601, %537 : vector<8x128xf32>
    %611 = arith.mulf %595, %603 : vector<8x128xf32>
    %612 = arith.addf %610, %611 : vector<8x128xf32>
    %613 = math.tanh %612 : vector<8x128xf32>
    %614 = arith.mulf %609, %613 : vector<8x128xf32>
    %615 = arith.addf %540, %614 : vector<8x128xf32>
    %c8_i32 = arith.constant 8 : i32
    %c0_138 = arith.constant 0 : index
    %c0_139 = arith.constant 0 : index
    %616 = vector.load %arg9[%c0_138, %c0_139] : memref<8x128xf32, #tpu.memory_space<vmem>>, vector<8x128xf32>
    tpu.vector_store %arg9[%c0_138, %c0_139], %615 {strides = array<i32>} : memref<8x128xf32, #tpu.memory_space<vmem>>, vector<8x128xf32>,
    return
  }
  func.func @transform_0(%arg0: i32) -> (i32, i32, i32) {
    %c0_i32 = arith.constant 0 : i32
    %c0_i32_0 = arith.constant 0 : i32
    %c0_i32_1 = arith.constant 0 : i32
    %c0_i32_2 = arith.constant 0 : i32
    return %c0_i32, %c0_i32_0, %c0_i32_1 : i32, i32, i32
  }
  func.func @transform_1(%arg0: i32) -> (i32, i32, i32) {
    %c0_i32 = arith.constant 0 : i32
    %c0_i32_0 = arith.constant 0 : i32
    %c0_i32_1 = arith.constant 0 : i32
    %c0_i32_2 = arith.constant 0 : i32
    return %c0_i32, %c0_i32_0, %c0_i32_1 : i32, i32, i32
  }
  func.func @transform_2(%arg0: i32) -> (i32, i32) {
    %c0_i32 = arith.constant 0 : i32
    %c0_i32_0 = arith.constant 0 : i32
    %c0_i32_1 = arith.constant 0 : i32
    return %c0_i32, %c0_i32_0 : i32, i32
  }
  func.func @transform_3(%arg0: i32) -> (i32, i32) {
    %c0_i32 = arith.constant 0 : i32
    %c0_i32_0 = arith.constant 0 : i32
    %c0_i32_1 = arith.constant 0 : i32
    return %c0_i32, %c0_i32_0 : i32, i32
  }
  func.func @transform_4(%arg0: i32) -> (i32, i32) {
    %c0_i32 = arith.constant 0 : i32
    %c0_i32_0 = arith.constant 0 : i32
    %c0_i32_1 = arith.constant 0 : i32
    return %c0_i32, %c0_i32_0 : i32, i32
  }
  func.func @transform_5(%arg0: i32) -> (i32, i32) {
    %c0_i32 = arith.constant 0 : i32
    %c0_i32_0 = arith.constant 0 : i32
    %c0_i32_1 = arith.constant 0 : i32
    return %c0_i32, %c0_i32_0 : i32, i32
  }
  func.func @transform_6(%arg0: i32) -> (i32, i32) {
    %c0_i32 = arith.constant 0 : i32
    %c0_i32_0 = arith.constant 0 : i32
    %c0_i32_1 = arith.constant 0 : i32
    return %c0_i32, %c0_i32_0 : i32, i32
  }
  func.func @transform_7(%arg0: i32) -> (i32, i32) {
    %c0_i32 = arith.constant 0 : i32
    %c0_i32_0 = arith.constant 0 : i32
    %c0_i32_1 = arith.constant 0 : i32
    return %c0_i32, %c0_i32_0 : i32, i32
  }
  func.func @transform_8(%arg0: i32) -> (i32, i32) {
    %c0_i32 = arith.constant 0 : i32
    %c0_i32_0 = arith.constant 0 : i32
    %c0_i32_1 = arith.constant 0 : i32
    return %c0_i32, %c0_i32_0 : i32, i32
  }
}

</mosaic_0001>

<bundles_post_ra>
// kernel: tpu_custom_call.1
= control target key start
LH: loop header
LB: loop body
LE: loop exit
PB: predicated region body
PF: predicated region fallthrough
CT: control target
= control target key end

     0   :  { %13 = vsyncpa [#allocation4], 0  ;;  %s8282_s0 = inlined_call_operand.vmem [shape: f32[8,8,32], index: 0, kind: input, shape index: {}]   ;;  %s8283_s1 = inlined_call_operand.vmem [shape: f32[8,8,1], index: 1, kind: input, shape index: {}]   ;;  %s8284_s2 = inlined_call_operand.hbm [shape: f32[32,512], index: 2, kind: input, shape index: {}]   ;;  %s8285_s3 = inlined_call_operand.vmem [shape: f32[1,512], index: 3, kind: input, shape index: {}]   ;;  %s8286_s4 = inlined_call_operand.hbm [shape: f32[128,512], index: 4, kind: input, shape index: {}]   ;;  %s8287_s5 = inlined_call_operand.hbm [shape: f32[128,512], index: 5, kind: input, shape index: {}]   ;;  %s8288_s6 = inlined_call_operand.hbm [shape: f32[128,512], index: 6, kind: input, shape index: {}]   ;;  %s8289_s7 = inlined_call_operand.vmem [shape: f32[1,512], index: 7, kind: input, shape index: {}]   ;;  %s8290_s8 = inlined_call_operand.hbm [shape: f32[8,128], index: 8, kind: output, shape index: {}]  }
   0x1   :  { %14 = vsyncpa [#allocation7], 0 }
   0x2   :  { %15 = vsyncpa [#allocation10], 0 }
   0x3   :  { %16 = vsyncpa [#allocation5], 0  ;;  %s6755_s27 = smov [#allocation6]   ;;  %s6756_s29 = smov [#allocation3]  }
   0x4   :  { %s40_s28 = sshll.u32 %s6755_s27, 4  ;;  %s26_s30 = sshll.u32 %s6756_s29, 4  ;;  %s41_s28 = int_to_ptr.vmem [resolvable:$true] %s40_s28  ;;  %s6809_s30 = int_to_ptr.vmem [resolvable:$true] %s26_s30 }
   0x5   :  { %s6637_s11 = scalar_lea.hbm %s8286_s4, 8192 }
   0x6   :  { %p6638_p0 = scmp.ne.s32.totalorder %s8286_s4, %s6637_s11  ;;  %p6641_p1 = scmp.lt.u32.totalorder %s6637_s11, %s8286_s4 }
   0x8   :  { %p6643_p2 = pnand %p6641_p1, %p6638_p0 }
   0xa   :  { %6646 = shalt.err (!%p6643_p2)
}
   0xb   :  { %s6647_s16 = scalar_lea.vmem %s41_s28, 8192  ;;  %p6652_p4 = scmp.lt.s32.totalorder %s41_s28, %s41_s28 }
   0xc   :  { %p6648_p3 = scmp.ne.s32.totalorder %s41_s28, %s6647_s16  ;;  %p6653_p5 = scmp.lt.s32.totalorder %s6647_s16, %s6647_s16 }
   0xe   :  { %p6654_p6 = por %p6653_p5, %p6652_p4 }
  0x10   :  { %p6655_p7 = pnand %p6654_p6, %p6648_p3 }
  0x12   :  { %6658 = shalt.err (!%p6655_p7)
}
  0x13   :  { %s6757_s17 = smov 512   ;;  %s6758_s18 = smov 32  }
  0x14   :  { %46 = dma.hbm_to_vmem [thread:$0]  %s8286_s4, 8192, %s41_s28, [#allocation7], %s6757_s17, %s6757_s17, %s6758_s18  }
  0x15   :  { %s6659_s23 = scalar_lea.hbm %s8284_s2, 2048 }
  0x16   :  { %p6660_p8 = scmp.ne.s32.totalorder %s8284_s2, %s6659_s23  ;;  %p6663_p9 = scmp.lt.u32.totalorder %s6659_s23, %s8284_s2 }
  0x18   :  { %p6665_p10 = pnand %p6663_p9, %p6660_p8 }
  0x1a   :  { %6668 = shalt.err (!%p6665_p10)
}
  0x1b   :  { %s6669_s29 = scalar_lea.vmem %s6809_s30, 2048  ;;  %p6674_p12 = scmp.lt.s32.totalorder %s6809_s30, %s6809_s30 }
  0x1c   :  { %p6670_p11 = scmp.ne.s32.totalorder %s6809_s30, %s6669_s29  ;;  %p6675_p13 = scmp.lt.s32.totalorder %s6669_s29, %s6669_s29 }
  0x1e   :  { %p6676_p0 = por %p6675_p13, %p6674_p12 }
  0x20   :  { %p6677_p1 = pnand %p6676_p0, %p6670_p11 }
  0x22   :  { %6680 = shalt.err (!%p6677_p1)
}
  0x23   :  { %32 = dma.hbm_to_vmem [thread:$0]  %s8284_s2, 2048, %s6809_s30, [#allocation4], %s6757_s17, %s6757_s17, %s6758_s18  }
  0x24   :  { %s6759_s9 = smov [#allocation8]   ;;  %s6760_s11 = smov [#allocation9]  }
  0x25   :  { %s52_s10 = sshll.u32 %s6759_s9, 4  ;;  %s64_s12 = sshll.u32 %s6760_s11, 4  ;;  %s53_s10 = int_to_ptr.vmem [resolvable:$true] %s52_s10  ;;  %s6846_s12 = int_to_ptr.vmem [resolvable:$true] %s64_s12 }
  0x26   :  { %s6681_s15 = scalar_lea.hbm %s8287_s5, 8192 }
  0x27   :  { %p6682_p2 = scmp.ne.s32.totalorder %s8287_s5, %s6681_s15  ;;  %p6685_p3 = scmp.lt.u32.totalorder %s6681_s15, %s8287_s5 }
  0x29   :  { %p6687_p4 = pnand %p6685_p3, %p6682_p2 }
  0x2b   :  { %6690 = shalt.err (!%p6687_p4)
}
  0x2c   :  { %s6691_s2 = scalar_lea.vmem %s53_s10, 8192  ;;  %p6696_p6 = scmp.lt.s32.totalorder %s53_s10, %s53_s10 }
  0x2d   :  { %p6692_p5 = scmp.ne.s32.totalorder %s53_s10, %s6691_s2  ;;  %p6697_p7 = scmp.lt.s32.totalorder %s6691_s2, %s6691_s2 }
  0x2f   :  { %p6698_p8 = por %p6697_p7, %p6696_p6 }
  0x31   :  { %p6699_p9 = pnand %p6698_p8, %p6692_p5 }
  0x33   :  { %6702 = shalt.err (!%p6699_p9)
}
  0x34   :  { %58 = dma.hbm_to_vmem [thread:$0]  %s8287_s5, 8192, %s53_s10, [#allocation7], %s6757_s17, %s6757_s17, %s6758_s18  }
  0x35   :  { %s6703_s25 = scalar_lea.hbm %s8288_s6, 8192 }
  0x36   :  { %p6704_p10 = scmp.ne.s32.totalorder %s8288_s6, %s6703_s25  ;;  %p6707_p11 = scmp.lt.u32.totalorder %s6703_s25, %s8288_s6 }
  0x38   :  { %p6709_p12 = pnand %p6707_p11, %p6704_p10 }
  0x3a   :  { %6712 = shalt.err (!%p6709_p12)
}
  0x3b   :  { %s6713_s28 = scalar_lea.vmem %s6846_s12, 8192  ;;  %p6718_p0 = scmp.lt.s32.totalorder %s6846_s12, %s6846_s12 }
  0x3c   :  { %p6714_p13 = scmp.ne.s32.totalorder %s6846_s12, %s6713_s28  ;;  %p6719_p1 = scmp.lt.s32.totalorder %s6713_s28, %s6713_s28 }
  0x3e   :  { %p6720_p2 = por %p6719_p1, %p6718_p0 }
  0x40   :  { %p6721_p3 = pnand %p6720_p2, %p6714_p13 }
  0x42   :  { %6724 = shalt.err (!%p6721_p3)
}
  0x43   :  { %70 = dma.hbm_to_vmem [thread:$0]  %s8288_s6, 8192, %s6846_s12, [#allocation10], %s6757_s17, %s6757_s17, %s6758_s18  }
  0x44   :  { %6747 = dma.done.wait [#allocation4], 2048  }
  0x45   :  { %6748 = vsyncadd [#allocation4], 4294965248 }
  0x46   :  { %6749 = dma.done.wait [#allocation7], 16384  }
  0x47   :  { %6750 = vsyncadd [#allocation7], 4294950912 }
  0x48   :  { %6751 = dma.done.wait [#allocation10], 8192  }
  0x49   :  { %6752 = vsyncadd [#allocation10], 4294959104  ;;  %v8293_v0 = vmov 0.0   ;;  %v8291_v1 = vmov 0   ;;  %v94_v2 = vld [vmem:[#allocation3 + $0x8] sm:$0xff]  ;;  %v96_v4 = vld [vmem:[#allocation3 + $0x18] sm:$0xff] }
  0x4a   :  { %220 = vmatprep.mubr.f32.mxu0 %v8293_v0  ;;  %333 = vmatprep.mubr.f32.mxu1 %v8293_v0  ;;  %v98_v3 = vld [vmem:[#allocation3 + $0x28] sm:$0xff]  ;;  %v100_v6 = vld [vmem:[#allocation3 + $0x38] sm:$0xff]  ;;  %v93_v7 = vld [vmem:[#allocation3] sm:$0xff]  ;;  %vm131_vm0 = vcmask 261120  }
  0x4b   :  { %6379 = vset.pattern.permute.xlu0 %v8291_v1  ;;  %6380 = vset.pattern.permute.xlu1 %v8291_v1  ;;  %v4722_v5 = vpack.c.bf16 %v98_v3, %v94_v2  ;;  %v97_v8 = vld [vmem:[#allocation3 + $0x20] sm:$0xff]  ;;  %v4730_v9 = vpack.c.bf16 %v100_v6, %v96_v4  ;;  %v95_v11 = vld [vmem:[#allocation3 + $0x10] sm:$0xff]  ;;  %v102_v13 = vld [vmem:[#allocation3 + $0x48] sm:$0xff] }
  0x4c   :  { %v4724_v10 = vpack.c.bf16 %v97_v8, %v93_v7  ;;  %v99_v12 = vld [vmem:[#allocation3 + $0x30] sm:$0xff]  ;;  %v106_v15 = vld [vmem:[#allocation3 + $0x68] sm:$0xff]  ;;  %v104_v16 = vld [vmem:[#allocation3 + $0x58] sm:$0xff] }
  0x4d   :  { %4723 = vmatprep.subr.bf16.mxu0 %v4722_v5  ;;  %v4732_v14 = vpack.c.bf16 %v99_v12, %v95_v11  ;;  %v108_v17 = vld [vmem:[#allocation3 + $0x78] sm:$0xff]  ;;  %4731 = vmatprep.subr.bf16.mxu1 %v4730_v9  ;;  %v4726_v18 = vpack.c.bf16 %v106_v15, %v102_v13  ;;  %v101_v20 = vld [vmem:[#allocation3 + $0x40] sm:$0xff]  ;;  %v103_v22 = vld [vmem:[#allocation3 + $0x50] sm:$0xff] }
  0x4e   :  { %4725 = vmatpush1.bf16.msra.mxu0 %v4724_v10  ;;  %v4734_v19 = vpack.c.bf16 %v108_v17, %v104_v16  ;;  %v105_v21 = vld [vmem:[#allocation3 + $0x60] sm:$0xff]  ;;  %v107_v24 = vld [vmem:[#allocation3 + $0x70] sm:$0xff]  ;;  %v415_v25 = vld [vmem:[#allocation6 + $0x8] sm:$0xff] }
  0x4f   :  { %4733 = vmatpush1.bf16.msra.mxu1 %v4732_v14  ;;  %v4728_v23 = vpack.c.bf16 %v105_v21, %v101_v20  ;;  %4727 = vmatprep.subr.bf16.mxu0 %v4726_v18  ;;  %v4736_v26 = vpack.c.bf16 %v107_v24, %v103_v22  ;;  %v419_v27 = vld [vmem:[#allocation6 + $0x28] sm:$0xff]  ;;  %v417_v28 = vld [vmem:[#allocation6 + $0x18] sm:$0xff]  ;;  %v414_v32 = vld [vmem:[#allocation6] sm:$0xff] }
  0x50   :  { %4735 = vmatprep.subr.bf16.mxu1 %v4734_v19  ;;  %v421_v29 = vld [vmem:[#allocation6 + $0x38] sm:$0xff]  ;;  %v6887_v30 = vpack.c.bf16 %v419_v27, %v415_v25  ;;  %v418_v33 = vld [vmem:[#allocation6 + $0x20] sm:$0xff]  ;;  %v416_v34 = vld [vmem:[#allocation6 + $0x10] sm:$0xff] }
  0x51   :  { %v6889_v31 = vpack.c.bf16 %v421_v29, %v417_v28  ;;  %v85_v35 = vld [vmem:[%s8282_s0] sm:$0xff]  ;;  %v6894_v36 = vpack.c.bf16 %v418_v33, %v414_v32  ;;  %v420_v37 = vld [vmem:[#allocation6 + $0x30] sm:$0xff]  ;;  %v423_v38 = vld [vmem:[#allocation6 + $0x48] sm:$0xff] }
  0x52   :  { %8501 = vst [vmem:[#allocation16_spill] sm:$0xff] %v6887_v30  ;;  %4729 = vmatpush1.bf16.msra.mxu0 %v4728_v23  ;;  %v6897_v39 = vpack.c.bf16 %v420_v37, %v416_v34  ;;  %v427_v40 = vld [vmem:[#allocation6 + $0x68] sm:$0xff]  ;;  %v425_v41 = vld [vmem:[#allocation6 + $0x58] sm:$0xff]  ;;  %v422_v44 = vld [vmem:[#allocation6 + $0x40] sm:$0xff] }
  0x53   :  { %8502 = vst [vmem:[#allocation17_spill] sm:$0xff] %v6889_v31  ;;  %4737 = vmatpush1.bf16.msra.mxu1 %v4736_v26  ;;  %4739 = vmatprep.subr.bf16.mxu0 %v6887_v30  ;;  %v429_v42 = vld [vmem:[#allocation6 + $0x78] sm:$0xff]  ;;  %v6900_v43 = vpack.c.bf16 %v427_v40, %v423_v38  ;;  %v426_v45 = vld [vmem:[#allocation6 + $0x60] sm:$0xff]  ;;  %v424_v46 = vld [vmem:[#allocation6 + $0x50] sm:$0xff] }
  0x54   :  { %4771 = vmatprep.subr.bf16.mxu1 %v6889_v31  ;;  %v86_v47 = vld [vmem:[%s8282_s0 + $0x8] sm:$0xff]  ;;  %v6906_v48 = vpack.c.bf16 %v429_v42, %v425_v41  ;;  %v428_v49 = vld [vmem:[#allocation6 + $0x70] sm:$0xff]  ;;  %v6910_v51 = vpack.c.bf16 %v426_v45, %v422_v44  ;;  %v433_v53 = vld [vmem:[#allocation6 + $0x98] sm:$0xff] }
  0x55   :  { %4633 = vmatmul.mubr.msk.f32.vlgmr.msra.gmra.mrb[0].mxu0 %vm131_vm0, %v85_v35  ;;  %v431_v50 = vld [vmem:[#allocation6 + $0x88] sm:$0xff]  ;;  %v437_v54 = vld [vmem:[#allocation6 + $0xb8] sm:$0xff]  ;;  %v6914_v55 = vpack.c.bf16 %v428_v49, %v424_v46  ;;  %v430_v56 = vld [vmem:[#allocation6 + $0x80] sm:$0xff] }
  0x56   :  { %4641 = vmatmul.mubr.msk.f32.vlgmr.msra.gmra.mrb[0].mxu1 %vm131_vm0, %v85_v35  ;;  %4741 = vmatpush1.bf16.msra.mxu0 %v6894_v36  ;;  %v435_v52 = vld [vmem:[#allocation6 + $0xa8] sm:$0xff]  ;;  %v434_v57 = vld [vmem:[#allocation6 + $0xa0] sm:$0xff]  ;;  %v432_v59 = vld [vmem:[#allocation6 + $0x90] sm:$0xff]  ;;  %v6922_v61 = vpack.c.bf16 %v437_v54, %v433_v53 }
  0x57   :  { %4773 = vmatpush1.bf16.msra.mxu1 %v6897_v39  ;;  %226 = vmatprep.mubr.f32.mxu0 %v8293_v0  ;;  %8503 = vst [vmem:[#allocation18_spill] sm:$0xff] %v6914_v55  ;;  %v6918_v58 = vpack.c.bf16 %v435_v52, %v431_v50  ;;  %v436_v60 = vld [vmem:[#allocation6 + $0xb0] sm:$0xff]  ;;  %v439_v62 = vld [vmem:[#allocation6 + $0xc8] sm:$0xff]  ;;  %v6929_v3 = vpack.c.bf16 %v434_v57, %v430_v56  ;;  %v441_v4 = vld [vmem:[#allocation6 + $0xd8] sm:$0xff] }
  0x58   :  { %339 = vmatprep.mubr.f32.mxu1 %v8293_v0  ;;  %4743 = vmatprep.subr.bf16.mxu0 %v6900_v43  ;;  %8505 = vst [vmem:[#allocation20_spill] sm:$0xff] %v6922_v61  ;;  %v443_v63 = vld [vmem:[#allocation6 + $0xe8] sm:$0xff]  ;;  %v87_v2 = vld [vmem:[%s8282_s0 + $0x10] sm:$0xff]  ;;  %v445_v5 = vld [vmem:[#allocation6 + $0xf8] sm:$0xff]  ;;  %v6933_v6 = vpack.c.bf16 %v436_v60, %v432_v59 }
  0x59   :  { %8504 = vst [vmem:[#allocation19_spill] sm:$0xff] %v6918_v58  ;;  %4634 = vmatmul.mubr.msk.f32.gmra.mrb[2].mxu0 %vm131_vm0, %v86_v47  ;;  %4775 = vmatprep.subr.bf16.mxu1 %v6906_v48  ;;  %8506 = vst [vmem:[#allocation21_spill] sm:$0xff] %v6929_v3  ;;  %v438_v7 = vld [vmem:[#allocation6 + $0xc0] sm:$0xff]  ;;  %v6937_v9 = vpack.c.bf16 %v443_v63, %v439_v62  ;;  %v440_v10 = vld [vmem:[#allocation6 + $0xd0] sm:$0xff]  ;;  %v6941_v12 = vpack.c.bf16 %v445_v5, %v441_v4 }
  0x5a   :  { %4642 = vmatmul.mubr.msk.f32.gmra.mrb[2].mxu1 %vm131_vm0, %v86_v47  ;;  %4745 = vmatpush1.bf16.msra.mxu0 %v6910_v51  ;;  %8507 = vst [vmem:[#allocation22_spill] sm:$0xff] %v6933_v6  ;;  %v442_v8 = vld [vmem:[#allocation6 + $0xe0] sm:$0xff]  ;;  %v444_v11 = vld [vmem:[#allocation6 + $0xf0] sm:$0xff]  ;;  %v447_v13 = vld [vmem:[#allocation6 + $0x108] sm:$0xff] }
  0x5b   :  { %4777 = vmatpush1.bf16.msra.mxu1 %v6914_v55  ;;  %232 = vmatprep.mubr.f32.mxu0 %v8293_v0  ;;  %8508 = vst [vmem:[#allocation23_spill] sm:$0xff] %v6937_v9  ;;  %8509 = vst [vmem:[#allocation24_spill] sm:$0xff] %v6941_v12  ;;  %v451_v14 = vld [vmem:[#allocation6 + $0x128] sm:$0xff]  ;;  %v88_v15 = vld [vmem:[%s8282_s0 + $0x18] sm:$0xff]  ;;  %v6948_v16 = vpack.c.bf16 %v442_v8, %v438_v7  ;;  %v6952_v19 = vpack.c.bf16 %v444_v11, %v440_v10 }
  0x5c   :  { %345 = vmatprep.mubr.f32.mxu1 %v8293_v0  ;;  %4747 = vmatprep.subr.bf16.mxu0 %v6918_v58  ;;  %v449_v17 = vld [vmem:[#allocation6 + $0x118] sm:$0xff]  ;;  %v446_v20 = vld [vmem:[#allocation6 + $0x100] sm:$0xff]  ;;  %v6956_v22 = vpack.c.bf16 %v451_v14, %v447_v13  ;;  %v448_v23 = vld [vmem:[#allocation6 + $0x110] sm:$0xff] }
  0x5d   :  { %4635 = vmatmul.mubr.msk.f32.gmra.mrb[4].mxu0 %vm131_vm0, %v87_v2  ;;  %4779 = vmatprep.subr.bf16.mxu1 %v6922_v61  ;;  %8510 = vst [vmem:[#allocation25_spill] sm:$0xff] %v6948_v16  ;;  %v453_v18 = vld [vmem:[#allocation6 + $0x138] sm:$0xff]  ;;  %8511 = vst [vmem:[#allocation26_spill] sm:$0xff] %v6952_v19  ;;  %v450_v21 = vld [vmem:[#allocation6 + $0x120] sm:$0xff] }
  0x5e   :  { %4643 = vmatmul.mubr.msk.f32.gmra.mrb[4].mxu1 %vm131_vm0, %v87_v2  ;;  %4749 = vmatpush1.bf16.msra.mxu0 %v6929_v3  ;;  %8512 = vst [vmem:[#allocation27_spill] sm:$0xff] %v6956_v22  ;;  %v452_v24 = vld [vmem:[#allocation6 + $0x130] sm:$0xff]  ;;  %v6960_v25 = vpack.c.bf16 %v453_v18, %v449_v17  ;;  %v455_v26 = vld [vmem:[#allocation6 + $0x148] sm:$0xff]  ;;  %v89_v28 = vld [vmem:[%s8282_s0 + $0x20] sm:$0xff]  ;;  %v6967_v29 = vpack.c.bf16 %v450_v21, %v446_v20 }
  0x5f   :  { %4781 = vmatpush1.bf16.msra.mxu1 %v6933_v6  ;;  %238 = vmatprep.mubr.f32.mxu0 %v8293_v0  ;;  %v459_v27 = vld [vmem:[#allocation6 + $0x168] sm:$0xff]  ;;  %v457_v32 = vld [vmem:[#allocation6 + $0x158] sm:$0xff]  ;;  %v6971_v34 = vpack.c.bf16 %v452_v24, %v448_v23  ;;  %v454_v35 = vld [vmem:[#allocation6 + $0x140] sm:$0xff] }
  0x60   :  { %351 = vmatprep.mubr.f32.mxu1 %v8293_v0  ;;  %4751 = vmatprep.subr.bf16.mxu0 %v6937_v9  ;;  %8513 = vst [vmem:[#allocation28_spill] sm:$0xff] %v6960_v25  ;;  %8514 = vst [vmem:[#allocation29_spill] sm:$0xff] %v6967_v29  ;;  %v461_v33 = vld [vmem:[#allocation6 + $0x178] sm:$0xff]  ;;  %v458_v37 = vld [vmem:[#allocation6 + $0x160] sm:$0xff]  ;;  %v6975_v38 = vpack.c.bf16 %v459_v27, %v455_v26 }
  0x61   :  { %4636 = vmatmul.mubr.msk.f32.gmra.mrb[6].mxu0 %vm131_vm0, %v88_v15  ;;  %4783 = vmatprep.subr.bf16.mxu1 %v6941_v12  ;;  %8515 = vst [vmem:[#allocation30_spill] sm:$0xff] %v6971_v34  ;;  %v456_v40 = vld [vmem:[#allocation6 + $0x150] sm:$0xff]  ;;  %v6979_v42 = vpack.c.bf16 %v461_v33, %v457_v32  ;;  %v463_v44 = vld [vmem:[#allocation6 + $0x188] sm:$0xff]  ;;  %v6986_v47 = vpack.c.bf16 %v458_v37, %v454_v35  ;;  %v465_v49 = vld [vmem:[#allocation6 + $0x198] sm:$0xff] }
  0x62   :  { %4644 = vmatmul.mubr.msk.f32.gmra.mrb[6].mxu1 %vm131_vm0, %v88_v15  ;;  %4753 = vmatpush1.bf16.msra.mxu0 %v6948_v16  ;;  %8516 = vst [vmem:[#allocation31_spill] sm:$0xff] %v6975_v38  ;;  %v460_v41 = vld [vmem:[#allocation6 + $0x170] sm:$0xff]  ;;  %v467_v45 = vld [vmem:[#allocation6 + $0x1a8] sm:$0xff]  ;;  %v469_v50 = vld [vmem:[#allocation6 + $0x1b8] sm:$0xff] }
  0x63   :  { %4785 = vmatpush1.bf16.msra.mxu1 %v6952_v19  ;;  %244 = vmatprep.mubr.f32.mxu0 %v8293_v0  ;;  %8517 = vst [vmem:[#allocation32_spill] sm:$0xff] %v6979_v42  ;;  %v90_v46 = vld [vmem:[%s8282_s0 + $0x28] sm:$0xff]  ;;  %8518 = vst [vmem:[#allocation33_spill] sm:$0xff] %v6986_v47  ;;  %v6990_v52 = vpack.c.bf16 %v460_v41, %v456_v40  ;;  %v462_v53 = vld [vmem:[#allocation6 + $0x180] sm:$0xff]  ;;  %v6994_v56 = vpack.c.bf16 %v467_v45, %v463_v44 }
  0x64   :  { %357 = vmatprep.mubr.f32.mxu1 %v8293_v0  ;;  %4755 = vmatprep.subr.bf16.mxu0 %v6956_v22  ;;  %v466_v54 = vld [vmem:[#allocation6 + $0x1a0] sm:$0xff]  ;;  %v464_v57 = vld [vmem:[#allocation6 + $0x190] sm:$0xff]  ;;  %v6998_v60 = vpack.c.bf16 %v469_v50, %v465_v49  ;;  %v471_v62 = vld [vmem:[#allocation6 + $0x1c8] sm:$0xff] }
  0x65   :  { %4637 = vmatmul.mubr.msk.f32.gmra.mrb[8].mxu0 %vm131_vm0, %v89_v28  ;;  %4787 = vmatprep.subr.bf16.mxu1 %v6960_v25  ;;  %8519 = vst [vmem:[#allocation34_spill] sm:$0xff] %v6990_v52  ;;  %8520 = vst [vmem:[#allocation35_spill] sm:$0xff] %v6994_v56  ;;  %v468_v59 = vld [vmem:[#allocation6 + $0x1b0] sm:$0xff]  ;;  %v475_v63 = vld [vmem:[#allocation6 + $0x1e8] sm:$0xff]  ;;  %v7005_v4 = vpack.c.bf16 %v466_v54, %v462_v53 }
  0x66   :  { %4645 = vmatmul.mubr.msk.f32.gmra.mrb[8].mxu1 %vm131_vm0, %v89_v28  ;;  %4757 = vmatpush1.bf16.msra.mxu0 %v6967_v29  ;;  %8521 = vst [vmem:[#allocation36_spill] sm:$0xff] %v6998_v60  ;;  %v91_v2 = vld [vmem:[%s8282_s0 + $0x30] sm:$0xff]  ;;  %v473_v5 = vld [vmem:[#allocation6 + $0x1d8] sm:$0xff]  ;;  %v7009_v8 = vpack.c.bf16 %v468_v59, %v464_v57  ;;  %v470_v10 = vld [vmem:[#allocation6 + $0x1c0] sm:$0xff]  ;;  %v7016_v14 = vpack.c.bf16 %v475_v63, %v471_v62 }
  0x67   :  { %4789 = vmatpush1.bf16.msra.mxu1 %v6971_v34  ;;  %250 = vmatprep.mubr.f32.mxu0 %v8293_v0  ;;  %8522 = vst [vmem:[#allocation37_spill] sm:$0xff] %v7005_v4  ;;  %v477_v7 = vld [vmem:[#allocation6 + $0x1f8] sm:$0xff]  ;;  %v474_v11 = vld [vmem:[#allocation6 + $0x1e0] sm:$0xff]  ;;  %v472_v15 = vld [vmem:[#allocation6 + $0x1d0] sm:$0xff] }
  0x68   :  { %363 = vmatprep.mubr.f32.mxu1 %v8293_v0  ;;  %4759 = vmatprep.subr.bf16.mxu0 %v6975_v38  ;;  %8523 = vst [vmem:[#allocation38_spill] sm:$0xff] %v7009_v8  ;;  %v628_v13 = vld [vmem:[%s8283_s1] sm:$0xff]  ;;  %8524 = vst [vmem:[#allocation39_spill] sm:$0xff] %v7016_v14  ;;  %v476_v17 = vld [vmem:[#allocation6 + $0x1f0] sm:$0xff]  ;;  %v7023_v20 = vpack.c.bf16 %v477_v7, %v473_v5  ;;  %v7027_v21 = vpack.c.bf16 %v474_v11, %v470_v10 }
  0x69   :  { %4638 = vmatmul.mubr.msk.f32.gmra.mrb[10].mxu0 %vm131_vm0, %v90_v46  ;;  %4791 = vmatprep.subr.bf16.mxu1 %v6979_v42  ;;  %v92_v18 = vld [vmem:[%s8282_s0 + $0x38] sm:$0xff]  ;;  %vm629_vm1 = vcmp.ne.f32.partialorder %v628_v13, 0.0  ;;  %v4657_v23 = vld [vmem:[%s8283_s1 + $0x8] sm:$0xff]  ;;  %v7034_v27 = vpack.c.bf16 %v476_v17, %v472_v15  ;;  %v542_v33 = vld [vmem:[#allocation9] sm:$0xff] }
  0x6a   :  { %4646 = vmatmul.mubr.msk.f32.gmra.mrb[10].mxu1 %vm131_vm0, %v90_v46  ;;  %4761 = vmatpush1.bf16.msra.mxu0 %v6986_v47  ;;  %8525 = vst [vmem:[#allocation40_spill] sm:$0xff] %v7023_v20  ;;  %8526 = vst [vmem:[#allocation41_spill] sm:$0xff] %v7027_v21  ;;  %v543_v24 = vld [vmem:[#allocation9 + $0x8] sm:$0xff]  ;;  %v545_v28 = vld [vmem:[#allocation9 + $0x18] sm:$0xff]  ;;  %v804_v41 = vsel %vm629_vm1, 1, %v8291_v1  ;;  %vm1126_vm2 = vcmp.ne.f32.partialorder %v4657_v23, 0.0 }
  0x6b   :  { %4793 = vmatpush1.bf16.msra.mxu1 %v6990_v52  ;;  %256 = vmatprep.mubr.f32.mxu0 %v8293_v0  ;;  %v547_v26 = vld [vmem:[#allocation9 + $0x28] sm:$0xff]  ;;  %8527 = vst [vmem:[#allocation42_spill] sm:$0xff] %v7034_v27  ;;  %v549_v32 = vld [vmem:[#allocation9 + $0x38] sm:$0xff]  ;;  %v546_v35 = vld [vmem:[#allocation9 + $0x20] sm:$0xff]  ;;  %v1302_v10 = vsel %vm1126_vm2, 1, %v8291_v1 }
  0x6c   :  { %369 = vmatprep.mubr.f32.mxu1 %v8293_v0  ;;  %4763 = vmatprep.subr.bf16.mxu0 %v6994_v56  ;;  %v544_v37 = vld [vmem:[#allocation9 + $0x10] sm:$0xff]  ;;  %v7042_v44 = vpack.c.bf16 %v547_v26, %v543_v24  ;;  %v551_v45 = vld [vmem:[#allocation9 + $0x48] sm:$0xff]  ;;  %v7046_v49 = vpack.c.bf16 %v549_v32, %v545_v28  ;;  %v553_v50 = vld [vmem:[#allocation9 + $0x58] sm:$0xff]  ;;  %v7053_v57 = vpack.c.bf16 %v546_v35, %v542_v33 }
  0x6d   :  { %4639 = vmatmul.mubr.msk.f32.gmra.mrb[12].mxu0 %vm131_vm0, %v91_v2  ;;  %4795 = vmatprep.subr.bf16.mxu1 %v6998_v60  ;;  %v548_v40 = vld [vmem:[#allocation9 + $0x30] sm:$0xff]  ;;  %v555_v46 = vld [vmem:[#allocation9 + $0x68] sm:$0xff]  ;;  %v557_v53 = vld [vmem:[#allocation9 + $0x78] sm:$0xff] }
  0x6e   :  { %4647 = vmatmul.mubr.msk.f32.gmra.mrb[12].mxu1 %vm131_vm0, %v91_v2  ;;  %4765 = vmatpush1.bf16.msra.mxu0 %v7005_v4  ;;  %8528 = vst [vmem:[#allocation43_spill] sm:$0xff] %v7042_v44  ;;  %8529 = vst [vmem:[#allocation44_spill] sm:$0xff] %v7046_v49  ;;  %v4686_v54 = vld [vmem:[%s8283_s1 + $0x20] sm:$0xff]  ;;  %v7055_v59 = vpack.c.bf16 %v548_v40, %v544_v37  ;;  %v7058_v63 = vpack.c.bf16 %v555_v46, %v551_v45  ;;  %v552_v5 = vld [vmem:[#allocation9 + $0x50] sm:$0xff] }
  0x6f   :  { %4797 = vmatpush1.bf16.msra.mxu1 %v7009_v8  ;;  %262 = vmatprep.mubr.f32.mxu0 %v8293_v0  ;;  %8530 = vst [vmem:[#allocation45_spill] sm:$0xff] %v7053_v57  ;;  %v550_v62 = vld [vmem:[#allocation9 + $0x40] sm:$0xff]  ;;  %v556_v7 = vld [vmem:[#allocation9 + $0x70] sm:$0xff]  ;;  %v7064_v11 = vpack.c.bf16 %v557_v53, %v553_v50  ;;  %v559_v13 = vld [vmem:[#allocation9 + $0x88] sm:$0xff]  ;;  %vm2623_vm3 = vcmp.ne.f32.partialorder %v4686_v54, 0.0 }
  0x70   :  { %375 = vmatprep.mubr.f32.mxu1 %v8293_v0  ;;  %4767 = vmatprep.subr.bf16.mxu0 %v7016_v14  ;;  %8531 = vst [vmem:[#allocation46_spill] sm:$0xff] %v7055_v59  ;;  %8532 = vst [vmem:[#allocation47_spill] sm:$0xff] %v7058_v63  ;;  %v554_v2 = vld [vmem:[#allocation9 + $0x60] sm:$0xff]  ;;  %v563_v15 = vld [vmem:[#allocation9 + $0xa8] sm:$0xff]  ;;  %v7075_v26 = vpack.c.bf16 %v556_v7, %v552_v5  ;;  %v2799_v40 = vsel %vm2623_vm3, 1, %v8291_v1 }
  0x71   :  { %4640 = vmatmul.mubr.msk.f32.gmra.mrb[14].mxu0 %vm131_vm0, %v92_v18  ;;  %4799 = vmatprep.subr.bf16.mxu1 %v7023_v20  ;;  %8533 = vst [vmem:[#allocation48_spill] sm:$0xff] %v7064_v11  ;;  %v561_v17 = vld [vmem:[#allocation9 + $0x98] sm:$0xff]  ;;  %v4704_v24 = vld [vmem:[%s8283_s1 + $0x30] sm:$0xff]  ;;  %v7073_v23 = vpack.c.bf16 %v554_v2, %v550_v62  ;;  %v558_v28 = vld [vmem:[#allocation9 + $0x80] sm:$0xff]  ;;  %v7078_v32 = vpack.c.bf16 %v563_v15, %v559_v13 }
  0x72   :  { %4648 = vmatmul.mubr.msk.f32.gmra.mrb[14].mxu1 %vm131_vm0, %v92_v18  ;;  %4769 = vmatpush1.bf16.msra.mxu0 %v7027_v21  ;;  %v565_v18 = vld [vmem:[#allocation9 + $0xb8] sm:$0xff]  ;;  %8535 = vst [vmem:[#allocation50_spill] sm:$0xff] %v7075_v26  ;;  %v562_v33 = vld [vmem:[#allocation9 + $0xa0] sm:$0xff]  ;;  %v560_v35 = vld [vmem:[#allocation9 + $0x90] sm:$0xff]  ;;  %vm3621_vm4 = vcmp.ne.f32.partialorder %v4704_v24, 0.0 }
  0x73   :  { %4801 = vmatpush1.bf16.msra.mxu1 %v7034_v27  ;;  %698 = vmatprep.mubr.f32.mxu0 %v8293_v0  ;;  %8534 = vst [vmem:[#allocation49_spill] sm:$0xff] %v7073_v23  ;;  %8536 = vst [vmem:[#allocation51_spill] sm:$0xff] %v7078_v32  ;;  %v564_v37 = vld [vmem:[#allocation9 + $0xb0] sm:$0xff]  ;;  %v567_v45 = vld [vmem:[#allocation9 + $0xc8] sm:$0xff]  ;;  %v7089_v62 = vpack.c.bf16 %v562_v33, %v558_v28 }
  0x74   :  { %769 = vmatprep.mubr.f32.mxu1 %v8293_v0  ;;  %806 = vperm.xlu0 %6379, %v804_v41   ;;  %v7083_v41 = vpack.c.bf16 %v565_v18, %v561_v17  ;;  %v571_v46 = vld [vmem:[#allocation9 + $0xe8] sm:$0xff]  ;;  %v569_v50 = vld [vmem:[#allocation9 + $0xd8] sm:$0xff]  ;;  %v7091_v54 = vpack.c.bf16 %v564_v37, %v560_v35  ;;  %v566_v2 = vld [vmem:[#allocation9 + $0xc0] sm:$0xff]  ;;  %v3797_v17 = vsel %vm3621_vm4, 1, %v8291_v1 }
  0x75   :  { %699 = vmatmul.mubr.f32.vlgmr.msra.gmra.mrb[0].mxu0 %v8293_v0  ;;  %4803 = vmatprep.subr.bf16.mxu0 %v7042_v44  ;;  %v573_v53 = vld [vmem:[#allocation9 + $0xf8] sm:$0xff]  ;;  %8538 = vst [vmem:[#allocation53_spill] sm:$0xff] %v7089_v62  ;;  %v570_v5 = vld [vmem:[#allocation9 + $0xe0] sm:$0xff]  ;;  %v7094_v7 = vpack.c.bf16 %v571_v46, %v567_v45  ;;  %v572_v13 = vld [vmem:[#allocation9 + $0xf0] sm:$0xff] }
  0x76   :  { %770 = vmatmul.mubr.f32.vlgmr.msra.gmra.mrb[0].mxu1 %v8293_v0  ;;  %4835 = vmatprep.subr.bf16.mxu1 %v7046_v49  ;;  %8537 = vst [vmem:[#allocation52_spill] sm:$0xff] %v7083_v41  ;;  %8539 = vst [vmem:[#allocation54_spill] sm:$0xff] %v7091_v54  ;;  %v575_v15 = vld [vmem:[#allocation9 + $0x108] sm:$0xff]  ;;  %v7099_v18 = vpack.c.bf16 %v573_v53, %v569_v50  ;;  %v577_v33 = vld [vmem:[#allocation9 + $0x118] sm:$0xff]  ;;  %v7103_v37 = vpack.c.bf16 %v570_v5, %v566_v2 }
  0x77   :  { %4805 = vmatpush1.bf16.msra.mxu0 %v7053_v57  ;;  %4837 = vmatpush1.bf16.msra.mxu1 %v7055_v59  ;;  %8540 = vst [vmem:[#allocation55_spill] sm:$0xff] %v7094_v7  ;;  %v579_v28 = vld [vmem:[#allocation9 + $0x128] sm:$0xff]  ;;  %v581_v35 = vld [vmem:[#allocation9 + $0x138] sm:$0xff]  ;;  %v574_v45 = vld [vmem:[#allocation9 + $0x100] sm:$0xff] }
  0x78   :  { %1304 = vperm.xlu0 %6379, %v1302_v10   ;;  %4807 = vmatprep.subr.bf16.mxu0 %v7058_v63  ;;  %v568_v10 = vld [vmem:[#allocation9 + $0xd0] sm:$0xff]  ;;  %8541 = vst [vmem:[#allocation56_spill] sm:$0xff] %v7099_v18  ;;  %8542 = vst [vmem:[#allocation57_spill] sm:$0xff] %v7103_v37  ;;  %v7108_v24 = vpack.c.bf16 %v579_v28, %v575_v15  ;;  %v7110_v46 = vpack.c.bf16 %v581_v35, %v577_v33  ;;  %v578_v50 = vld [vmem:[#allocation9 + $0x120] sm:$0xff] }
  0x79   :  { %4839 = vmatprep.subr.bf16.mxu1 %v7064_v11  ;;  %875 = vmatprep.mubr.f32.mxu0 %v8293_v0  ;;  %v576_v53 = vld [vmem:[#allocation9 + $0x110] sm:$0xff]  ;;  %v7115_v2 = vpack.c.bf16 %v578_v50, %v574_v45  ;;  %v585_v15 = vld [vmem:[#allocation9 + $0x158] sm:$0xff]  ;;  %v582_v33 = vld [vmem:[#allocation9 + $0x140] sm:$0xff] }
  0x7a   :  { %946 = vmatprep.mubr.f32.mxu1 %v8293_v0  ;;  %8544 = vst [vmem:[#allocation59_spill] sm:$0xff] %v7108_v24  ;;  %8545 = vst [vmem:[#allocation60_spill] sm:$0xff] %v7110_v46  ;;  %v580_v1 = vld [vmem:[#allocation9 + $0x130] sm:$0xff]  ;;  %v589_v28 = vld [vmem:[#allocation9 + $0x178] sm:$0xff] }
  0x7b   :  { %4809 = vmatpush1.bf16.msra.mxu0 %v7073_v23  ;;  %4841 = vmatpush1.bf16.msra.mxu1 %v7075_v26  ;;  %8546 = vst [vmem:[#allocation61_spill] sm:$0xff] %v7115_v2  ;;  %v7117_v5 = vpack.c.bf16 %v580_v1, %v576_v53  ;;  %v586_v35 = vld [vmem:[#allocation9 + $0x160] sm:$0xff]  ;;  %v7125_v45 = vpack.c.bf16 %v589_v28, %v585_v15  ;;  %v584_v50 = vld [vmem:[#allocation9 + $0x150] sm:$0xff]  ;;  %v597_v15 = vld [vmem:[#allocation9 + $0x1b8] sm:$0xff] }
  0x7c   :  { %2801 = vperm.xlu0 %6379, %v2799_v40   ;;  %4811 = vmatprep.subr.bf16.mxu0 %v7078_v32  ;;  %v7105_v40 = vpack.c.bf16 %v572_v13, %v568_v10  ;;  %v583_v10 = vld [vmem:[#allocation9 + $0x148] sm:$0xff]  ;;  %v7127_v1 = vpack.c.bf16 %v586_v35, %v582_v33  ;;  %v588_v53 = vld [vmem:[#allocation9 + $0x170] sm:$0xff]  ;;  %v590_v28 = vld [vmem:[#allocation9 + $0x180] sm:$0xff] }
  0x7d   :  { %4843 = vmatprep.subr.bf16.mxu1 %v7083_v41  ;;  %8547 = vst [vmem:[#allocation62_spill] sm:$0xff] %v7117_v5  ;;  %v587_v13 = vld [vmem:[#allocation9 + $0x168] sm:$0xff]  ;;  %8549 = vst [vmem:[#allocation64_spill] sm:$0xff] %v7125_v45  ;;  %v7130_v0 = vpack.c.bf16 %v588_v53, %v584_v50  ;;  %v594_v33 = vld [vmem:[#allocation9 + $0x1a0] sm:$0xff] }
  0x7e   :  { %8543 = vst [vmem:[#allocation58_spill] sm:$0xff] %v7105_v40  ;;  %8550 = vst [vmem:[#allocation65_spill] sm:$0xff] %v7127_v1  ;;  %v592_v50 = vld [vmem:[#allocation9 + $0x190] sm:$0xff] }
  0x7f   :  { %4813 = vmatpush1.bf16.msra.mxu0 %v7089_v62  ;;  %4845 = vmatpush1.bf16.msra.mxu1 %v7091_v54  ;;  %8551 = vst [vmem:[#allocation66_spill] sm:$0xff] %v7130_v0  ;;  %v596_v53 = vld [vmem:[#allocation9 + $0x1b0] sm:$0xff] }
  0x80   :  { %3799 = vperm.xlu0 %6379, %v3797_v17   ;;  %4815 = vmatprep.subr.bf16.mxu0 %v7094_v7  ;;  %v7123_v17 = vpack.c.bf16 %v587_v13, %v583_v10  ;;  %v595_v10 = vld [vmem:[#allocation9 + $0x1a8] sm:$0xff]  ;;  %v593_v13 = vld [vmem:[#allocation9 + $0x198] sm:$0xff] }
  0x81   :  { %4847 = vmatprep.subr.bf16.mxu1 %v7099_v18  ;;  %v7137_v35 = vpack.c.bf16 %v597_v15, %v593_v13  ;;  %v605_v13 = vld [vmem:[#allocation9 + $0x1f8] sm:$0xff]  ;;  %v598_v15 = vld [vmem:[#allocation9 + $0x1c0] sm:$0xff] }
  0x82   :  { %8548 = vst [vmem:[#allocation63_spill] sm:$0xff] %v7123_v17 }
  0x83   :  { %4817 = vmatpush1.bf16.msra.mxu0 %v7103_v37  ;;  %4849 = vmatpush1.bf16.msra.mxu1 %v7105_v40  ;;  %8553 = vst [vmem:[#allocation68_spill] sm:$0xff] %v7137_v35  ;;  %v531_v40 = vld [vmem:[#allocation8 + $0x1a8] sm:$0xff]  ;;  %v533_v37 = vld [vmem:[#allocation8 + $0x1b8] sm:$0xff] }
  0x84   :  { %4819 = vmatprep.subr.bf16.mxu0 %v7108_v24  ;;  %4851 = vmatprep.subr.bf16.mxu1 %v7110_v46  ;;  %v7139_v46 = vpack.c.bf16 %v594_v33, %v590_v28  ;;  %v602_v28 = vld [vmem:[#allocation9 + $0x1e0] sm:$0xff] }
  0x86   :  { %8554 = vst [vmem:[#allocation69_spill] sm:$0xff] %v7139_v46 }
  0x87   :  { %4821 = vmatpush1.bf16.msra.mxu0 %v7115_v2  ;;  %4853 = vmatpush1.bf16.msra.mxu1 %v7117_v5  ;;  %v591_v5 = vld [vmem:[#allocation9 + $0x188] sm:$0xff] }
  0x88   :  { %4823 = vmatprep.subr.bf16.mxu0 %v7123_v17  ;;  %4855 = vmatprep.subr.bf16.mxu1 %v7125_v45  ;;  %v7135_v2 = vpack.c.bf16 %v595_v10, %v591_v5  ;;  %v7142_v45 = vpack.c.bf16 %v596_v53, %v592_v50  ;;  %v603_v5 = vld [vmem:[#allocation9 + $0x1e8] sm:$0xff]  ;;  %v601_v10 = vld [vmem:[#allocation9 + $0x1d8] sm:$0xff]  ;;  %v7151_v17 = vpack.c.bf16 %v602_v28, %v598_v15  ;;  %v600_v50 = vld [vmem:[#allocation9 + $0x1d0] sm:$0xff] }
  0x89   :  { %v7149_v33 = vpack.c.bf16 %v605_v13, %v601_v10  ;;  %v604_v53 = vld [vmem:[#allocation9 + $0x1f0] sm:$0xff]  ;;  %v485_v10 = vld [vmem:[#allocation8 + $0x38] sm:$0xff]  ;;  %v478_v13 = vld [vmem:[#allocation8] sm:$0xff] }
  0x8a   :  { %8552 = vst [vmem:[#allocation67_spill] sm:$0xff] %v7135_v2  ;;  %8555 = vst [vmem:[#allocation70_spill] sm:$0xff] %v7142_v45  ;;  %v482_v15 = vld [vmem:[#allocation8 + $0x20] sm:$0xff] }
  0x8b   :  { %4825 = vmatpush1.bf16.msra.mxu0 %v7127_v1  ;;  %4857 = vmatpush1.bf16.msra.mxu1 %v7130_v0  ;;  %v599_v0 = vld [vmem:[#allocation9 + $0x1c8] sm:$0xff]  ;;  %8557 = vst [vmem:[#allocation72_spill] sm:$0xff] %v7149_v33  ;;  %8558 = vst [vmem:[#allocation73_spill] sm:$0xff] %v7151_v17 }
  0x8c   :  { %4827 = vmatprep.subr.bf16.mxu0 %v7135_v2  ;;  %4859 = vmatprep.subr.bf16.mxu1 %v7137_v35  ;;  %v7147_v1 = vpack.c.bf16 %v603_v5, %v599_v0  ;;  %v7154_v35 = vpack.c.bf16 %v604_v53, %v600_v50  ;;  %v483_v0 = vld [vmem:[#allocation8 + $0x28] sm:$0xff]  ;;  %v481_v5 = vld [vmem:[#allocation8 + $0x18] sm:$0xff]  ;;  %v7163_v2 = vpack.c.bf16 %v482_v15, %v478_v13  ;;  %v480_v50 = vld [vmem:[#allocation8 + $0x10] sm:$0xff] }
  0x8d   :  { %v7161_v28 = vpack.c.bf16 %v485_v10, %v481_v5  ;;  %v484_v53 = vld [vmem:[#allocation8 + $0x30] sm:$0xff]  ;;  %v493_v10 = vld [vmem:[#allocation8 + $0x78] sm:$0xff]  ;;  %v486_v13 = vld [vmem:[#allocation8 + $0x40] sm:$0xff] }
  0x8e   :  { %8556 = vst [vmem:[#allocation71_spill] sm:$0xff] %v7147_v1  ;;  %8559 = vst [vmem:[#allocation74_spill] sm:$0xff] %v7154_v35  ;;  %v490_v15 = vld [vmem:[#allocation8 + $0x60] sm:$0xff] }
  0x8f   :  { %4829 = vmatpush1.bf16.msra.mxu0 %v7139_v46  ;;  %4861 = vmatpush1.bf16.msra.mxu1 %v7142_v45  ;;  %v479_v45 = vld [vmem:[#allocation8 + $0x8] sm:$0xff]  ;;  %8561 = vst [vmem:[#allocation76_spill] sm:$0xff] %v7161_v28  ;;  %8562 = vst [vmem:[#allocation77_spill] sm:$0xff] %v7163_v2 }
  0x90   :  { %4831 = vmatprep.subr.bf16.mxu0 %v7147_v1  ;;  %4863 = vmatprep.subr.bf16.mxu1 %v7149_v33  ;;  %v7159_v46 = vpack.c.bf16 %v483_v0, %v479_v45  ;;  %v8563_v33 = vmov 0.0   ;;  %v487_v45 = vld [vmem:[#allocation8 + $0x48] sm:$0xff] }
  0x91   :  { %v491_v0 = vld [vmem:[#allocation8 + $0x68] sm:$0xff] }
  0x92   :  { %8560 = vst [vmem:[#allocation75_spill] sm:$0xff] %v7159_v46  ;;  %v7173_v5 = vpack.c.bf16 %v491_v0, %v487_v45  ;;  %v495_v45 = vld [vmem:[#allocation8 + $0x88] sm:$0xff] }
  0x93   :  { %4833 = vmatpush1.bf16.msra.mxu0 %v7151_v17  ;;  %4865 = vmatpush1.bf16.msra.mxu1 %v7154_v35  ;;  %v7167_v17 = vpack.c.bf16 %v484_v53, %v480_v50  ;;  %v489_v35 = vld [vmem:[#allocation8 + $0x58] sm:$0xff]  ;;  %v7177_v50 = vpack.c.bf16 %v490_v15, %v486_v13  ;;  %v488_v53 = vld [vmem:[#allocation8 + $0x50] sm:$0xff]  ;;  %v499_v0 = vld [vmem:[#allocation8 + $0xa8] sm:$0xff] }
  0x94   :  { %4867 = vmatprep.subr.bf16.mxu0 %v7159_v46  ;;  %4899 = vmatprep.subr.bf16.mxu1 %v7161_v28  ;;  %8565 = vst [vmem:[#allocation79_spill] sm:$0xff] %v7173_v5  ;;  %v7175_v46 = vpack.c.bf16 %v493_v10, %v489_v35  ;;  %v492_v28 = vld [vmem:[#allocation8 + $0x70] sm:$0xff]  ;;  %v7187_v35 = vpack.c.bf16 %v499_v0, %v495_v45  ;;  %v501_v10 = vld [vmem:[#allocation8 + $0xb8] sm:$0xff]  ;;  %v494_v13 = vld [vmem:[#allocation8 + $0x80] sm:$0xff] }
  0x95   :  { %8564 = vst [vmem:[#allocation78_spill] sm:$0xff] %v7167_v17  ;;  %8567 = vst [vmem:[#allocation81_spill] sm:$0xff] %v7177_v50  ;;  %v498_v15 = vld [vmem:[#allocation8 + $0xa0] sm:$0xff] }
  0x96   :  { %876 = vmatmul.mubr.f32.vlgmr.msra.gmra.mrb[16].mxu0 %v8563_v33  ;;  %947 = vmatmul.mubr.f32.vlgmr.msra.gmra.mrb[16].mxu1 %v8563_v33  ;;  %8566 = vst [vmem:[#allocation80_spill] sm:$0xff] %v7175_v46  ;;  %8569 = vst [vmem:[#allocation83_spill] sm:$0xff] %v7187_v35  ;;  %v7191_v24 = vpack.c.bf16 %v498_v15, %v494_v13  ;;  %v502_v0 = vld [vmem:[#allocation8 + $0xc0] sm:$0xff] }
  0x97   :  { %4869 = vmatpush1.bf16.msra.mxu0 %v7163_v2  ;;  %4901 = vmatpush1.bf16.msra.mxu1 %v7167_v17  ;;  %v7182_v2 = vpack.c.bf16 %v492_v28, %v488_v53  ;;  %v497_v17 = vld [vmem:[#allocation8 + $0x98] sm:$0xff]  ;;  %v496_v28 = vld [vmem:[#allocation8 + $0x90] sm:$0xff] }
  0x98   :  { %1017 = vmatprep.mubr.f32.mxu0 %v8563_v33  ;;  %1088 = vmatprep.mubr.f32.mxu1 %v8563_v33  ;;  %v7189_v1 = vpack.c.bf16 %v501_v10, %v497_v17  ;;  %8571 = vst [vmem:[#allocation85_spill] sm:$0xff] %v7191_v24  ;;  %v500_v53 = vld [vmem:[#allocation8 + $0xb0] sm:$0xff]  ;;  %v509_v17 = vld [vmem:[#allocation8 + $0xf8] sm:$0xff]  ;;  %v506_v10 = vld [vmem:[#allocation8 + $0xe0] sm:$0xff] }
  0x99   :  { %4871 = vmatprep.subr.bf16.mxu0 %v7173_v5  ;;  %8568 = vst [vmem:[#allocation82_spill] sm:$0xff] %v7182_v2  ;;  %4903 = vmatprep.subr.bf16.mxu1 %v7175_v46  ;;  %v7194_v46 = vpack.c.bf16 %v500_v53, %v496_v28  ;;  %v507_v5 = vld [vmem:[#allocation8 + $0xe8] sm:$0xff]  ;;  %v7203_v15 = vpack.c.bf16 %v506_v10, %v502_v0  ;;  %v504_v28 = vld [vmem:[#allocation8 + $0xd0] sm:$0xff] }
  0x9a   :  { %8570 = vst [vmem:[#allocation84_spill] sm:$0xff] %v7189_v1  ;;  %v508_v53 = vld [vmem:[#allocation8 + $0xf0] sm:$0xff] }
  0x9b   :  { %4873 = vmatpush1.bf16.msra.mxu0 %v7177_v50  ;;  %4905 = vmatpush1.bf16.msra.mxu1 %v7182_v2  ;;  %8572 = vst [vmem:[#allocation86_spill] sm:$0xff] %v7194_v46  ;;  %v503_v50 = vld [vmem:[#allocation8 + $0xc8] sm:$0xff]  ;;  %v505_v2 = vld [vmem:[#allocation8 + $0xd8] sm:$0xff]  ;;  %8575 = vst [vmem:[#allocation89_spill] sm:$0xff] %v7203_v15 }
  0x9c   :  { %4875 = vmatprep.subr.bf16.mxu0 %v7187_v35  ;;  %4907 = vmatprep.subr.bf16.mxu1 %v7189_v1  ;;  %v7199_v45 = vpack.c.bf16 %v507_v5, %v503_v50  ;;  %v7201_v13 = vpack.c.bf16 %v509_v17, %v505_v2  ;;  %v7206_v1 = vpack.c.bf16 %v508_v53, %v504_v28  ;;  %v515_v35 = vld [vmem:[#allocation8 + $0x128] sm:$0xff]  ;;  %v517_v2 = vld [vmem:[#allocation8 + $0x138] sm:$0xff]  ;;  %v510_v50 = vld [vmem:[#allocation8 + $0x100] sm:$0xff] }
  0x9d   :  { %v514_v17 = vld [vmem:[#allocation8 + $0x120] sm:$0xff]  ;;  %v512_v28 = vld [vmem:[#allocation8 + $0x110] sm:$0xff] }
  0x9e   :  { %8573 = vst [vmem:[#allocation87_spill] sm:$0xff] %v7199_v45  ;;  %8574 = vst [vmem:[#allocation88_spill] sm:$0xff] %v7201_v13  ;;  %v7215_v10 = vpack.c.bf16 %v514_v17, %v510_v50  ;;  %v516_v53 = vld [vmem:[#allocation8 + $0x130] sm:$0xff] }
  0x9f   :  { %4877 = vmatpush1.bf16.msra.mxu0 %v7191_v24  ;;  %4909 = vmatpush1.bf16.msra.mxu1 %v7194_v46  ;;  %8576 = vst [vmem:[#allocation90_spill] sm:$0xff] %v7206_v1  ;;  %v511_v24 = vld [vmem:[#allocation8 + $0x108] sm:$0xff]  ;;  %v513_v46 = vld [vmem:[#allocation8 + $0x118] sm:$0xff] }
  0xa0   :  { %4879 = vmatprep.subr.bf16.mxu0 %v7199_v45  ;;  %4911 = vmatprep.subr.bf16.mxu1 %v7201_v13  ;;  %v7211_v5 = vpack.c.bf16 %v515_v35, %v511_v24  ;;  %v7213_v0 = vpack.c.bf16 %v517_v2, %v513_v46  ;;  %8579 = vst [vmem:[#allocation93_spill] sm:$0xff] %v7215_v10  ;;  %v523_v45 = vld [vmem:[#allocation8 + $0x168] sm:$0xff]  ;;  %v525_v46 = vld [vmem:[#allocation8 + $0x178] sm:$0xff]  ;;  %v518_v35 = vld [vmem:[#allocation8 + $0x140] sm:$0xff] }
  0xa1   :  { %v7218_v13 = vpack.c.bf16 %v516_v53, %v512_v28  ;;  %v522_v2 = vld [vmem:[#allocation8 + $0x160] sm:$0xff]  ;;  %v520_v28 = vld [vmem:[#allocation8 + $0x150] sm:$0xff] }
  0xa2   :  { %8577 = vst [vmem:[#allocation91_spill] sm:$0xff] %v7211_v5  ;;  %8578 = vst [vmem:[#allocation92_spill] sm:$0xff] %v7213_v0  ;;  %v7227_v17 = vpack.c.bf16 %v522_v2, %v518_v35  ;;  %v524_v53 = vld [vmem:[#allocation8 + $0x170] sm:$0xff] }
  0xa3   :  { %4881 = vmatpush1.bf16.msra.mxu0 %v7203_v15  ;;  %4913 = vmatpush1.bf16.msra.mxu1 %v7206_v1  ;;  %8580 = vst [vmem:[#allocation94_spill] sm:$0xff] %v7218_v13  ;;  %v519_v15 = vld [vmem:[#allocation8 + $0x148] sm:$0xff]  ;;  %v521_v1 = vld [vmem:[#allocation8 + $0x158] sm:$0xff]  ;;  %v528_v35 = vld [vmem:[#allocation8 + $0x190] sm:$0xff] }
  0xa4   :  { %4883 = vmatprep.subr.bf16.mxu0 %v7211_v5  ;;  %4915 = vmatprep.subr.bf16.mxu1 %v7213_v0  ;;  %v7223_v24 = vpack.c.bf16 %v523_v45, %v519_v15  ;;  %v7225_v50 = vpack.c.bf16 %v525_v46, %v521_v1  ;;  %8583 = vst [vmem:[#allocation97_spill] sm:$0xff] %v7227_v17  ;;  %v527_v5 = vld [vmem:[#allocation8 + $0x188] sm:$0xff]  ;;  %v526_v1 = vld [vmem:[#allocation8 + $0x180] sm:$0xff] }
  0xa5   :  { %v7230_v0 = vpack.c.bf16 %v524_v53, %v520_v28  ;;  %v7233_v45 = vpack.c.bf16 %v531_v40, %v527_v5  ;;  %v530_v46 = vld [vmem:[#allocation8 + $0x1a0] sm:$0xff]  ;;  %v532_v28 = vld [vmem:[#allocation8 + $0x1b0] sm:$0xff]  ;;  %v535_v53 = vld [vmem:[#allocation8 + $0x1c8] sm:$0xff] }
  0xa6   :  { %8581 = vst [vmem:[#allocation95_spill] sm:$0xff] %v7223_v24  ;;  %8582 = vst [vmem:[#allocation96_spill] sm:$0xff] %v7225_v50  ;;  %v7239_v2 = vpack.c.bf16 %v530_v46, %v526_v1  ;;  %v7243_v40 = vpack.c.bf16 %v532_v28, %v528_v35  ;;  %v537_v5 = vld [vmem:[#allocation8 + $0x1d8] sm:$0xff]  ;;  %v540_v1 = vld [vmem:[#allocation8 + $0x1f0] sm:$0xff] }
  0xa7   :  { %4885 = vmatpush1.bf16.msra.mxu0 %v7215_v10  ;;  %4917 = vmatpush1.bf16.msra.mxu1 %v7218_v13  ;;  %8584 = vst [vmem:[#allocation98_spill] sm:$0xff] %v7230_v0  ;;  %v529_v10 = vld [vmem:[#allocation8 + $0x198] sm:$0xff]  ;;  %8585 = vst [vmem:[#allocation99_spill] sm:$0xff] %v7233_v45 }
  0xa8   :  { %4887 = vmatprep.subr.bf16.mxu0 %v7223_v24  ;;  %4919 = vmatprep.subr.bf16.mxu1 %v7225_v50  ;;  %v7235_v15 = vpack.c.bf16 %v533_v37, %v529_v10  ;;  %8587 = vst [vmem:[#allocation101_spill] sm:$0xff] %v7239_v2  ;;  %v539_v24 = vld [vmem:[#allocation8 + $0x1e8] sm:$0xff]  ;;  %8588 = vst [vmem:[#allocation102_spill] sm:$0xff] %v7243_v40  ;;  %v541_v10 = vld [vmem:[#allocation8 + $0x1f8] sm:$0xff] }
  0xa9   :  { %v7245_v37 = vpack.c.bf16 %v539_v24, %v535_v53  ;;  %v534_v50 = vld [vmem:[#allocation8 + $0x1c0] sm:$0xff]  ;;  %v7247_v13 = vpack.c.bf16 %v541_v10, %v537_v5  ;;  %v111_v24 = vlaneseq }
  0xaa   :  { %8586 = vst [vmem:[#allocation100_spill] sm:$0xff] %v7235_v15 }
  0xab   :  { %4889 = vmatpush1.bf16.msra.mxu0 %v7227_v17  ;;  %4921 = vmatpush1.bf16.msra.mxu1 %v7230_v0  ;;  %8589 = vst [vmem:[#allocation103_spill] sm:$0xff] %v7245_v37  ;;  %8590 = vst [vmem:[#allocation104_spill] sm:$0xff] %v7247_v13  ;;  %v538_v17 = vld [vmem:[#allocation8 + $0x1e0] sm:$0xff]  ;;  %v536_v0 = vld [vmem:[#allocation8 + $0x1d0] sm:$0xff]  ;;  %v7261_v35 = vshrl.u32 %v111_v24, 7 }
  0xac   :  { %4891 = vmatprep.subr.bf16.mxu0 %v7233_v45  ;;  %4923 = vmatprep.subr.bf16.mxu1 %v7235_v15  ;;  %v7251_v46 = vpack.c.bf16 %v538_v17, %v534_v50  ;;  %v7253_v45 = vpack.c.bf16 %v540_v1, %v536_v0  ;;  %v109_v0 = vld [vmem:[%s8285_s3] sm:$0xf] }
  0xad   :  { %v8391_v50 = vsub.s32 0, %v7261_v35  ;;  %v8392_v17 = vsub.s32 1, %v7261_v35  ;;  %v8399_v10 = vsub.s32 3, %v7261_v35 }
  0xae   :  { %8591 = vst [vmem:[#allocation105_spill] sm:$0xff] %v7251_v46  ;;  %8592 = vst [vmem:[#allocation106_spill] sm:$0xff] %v7253_v45 }
  0xaf   :  { %4893 = vmatpush1.bf16.msra.mxu0 %v7239_v2  ;;  %4925 = vmatpush1.bf16.msra.mxu1 %v7243_v40  ;;  %v7270_v28 = vrot.slane %v109_v0, %v8391_v50  ;;  %v7274_v53 = vrot.slane %v109_v0, %v8392_v17  ;;  %v7281_v50 = vrot.slane %v109_v0, %v8399_v10  ;;  %v8408_v17 = vsub.s32 2, %v7261_v35 }
  0xb0   :  { %4895 = vmatprep.subr.bf16.mxu0 %v7245_v37  ;;  %4927 = vmatprep.subr.bf16.mxu1 %v7247_v13 }
  0xb1   :  { %8593 = vst [vmem:[#allocation107_spill] sm:$0xff] %v7270_v28  ;;  %8594 = vst [vmem:[#allocation108_spill] sm:$0xff] %v7274_v53 }
  0xb2   :  { %8595 = vst [vmem:[#allocation109_spill] sm:$0xff] %v7281_v50 }
  0xb3   :  { %4897 = vmatpush1.bf16.msra.mxu0 %v7251_v46  ;;  %4929 = vmatpush1.bf16.msra.mxu1 %v7253_v45 }
  0xb4   :  { %4931 = vmatprep.subr.bf16.mxu0 %v6887_v30  ;;  %4963 = vmatprep.subr.bf16.mxu1 %v6889_v31 }
 0x148   :  { %v700_v5 = vpop.f32.mrb[0].mxu0 }
 0x149   :  { %v6274_v1 = vadd.f32 %v700_v5, %v7270_v28  ;;  %v771_v24 = vpop.f32.mrb[0].mxu1  ;;  %v702_v31 = vpop.f32.mrb[1].mxu0  ;;  %v7287_v5 = vrot.slane %v109_v0, %v8408_v17  ;;  %v8610_v17 = vld [vmem:[#allocation71_spill] sm:$0xff] }
 0x14a   :  { %v6275_v30 = vadd.f32 %v702_v31, %v7274_v53  ;;  %v773_v45 = vpop.f32.mrb[1].mxu1  ;;  %v807_v53 = vpop.permute.xlu0 %806 }
 0x14b   :  { %v4649_v46 = vmul.f32 -1.442695, %v6274_v1  ;;  %v6291_v37 = vadd.f32 %v773_v45, %v7281_v50  ;;  %v6290_v31 = vadd.f32 %v771_v24, %v7287_v5  ;;  %vm808_vm5 = vcmp.eq.s32.totalorder %v807_v53, 1  ;;  %v8599_v53 = vld [vmem:[#allocation60_spill] sm:$0xff] }
 0x14c   :  { %v4650_v13 = vmul.f32 -1.442695, %v6275_v30 }
 0x14d   :  { %6381 = vpow2.f32 %v4649_v46  ;;  %v4651_v40 = vmul.f32 -1.442695, %v6291_v37 }
 0x14e   :  { %6383 = vpow2.f32 %v4650_v13 }
 0x14f   :  { %6385 = vpow2.f32 %v4651_v40 }
 0x150   :  { %6387 = vtanh.f32 %v6290_v31 }
 0x157   :  { %v6382_v2 = vpop.eup %6381 }
 0x158   :  { %v6384_v1 = vpop.eup %6383  ;;  %v783_v30 = vadd.f32 1.0, %v6382_v2 }
 0x159   :  { %v789_v10 = vadd.f32 1.0, %v6384_v1  ;;  %v6386_v46 = vpop.eup %6385  ;;  %v8600_v1 = vld [vmem:[#allocation61_spill] sm:$0xff] }
 0x15a   :  { %6389 = vrcp.f32 %v783_v30  ;;  %v6388_v15 = vpop.eup %6387  ;;  %v796_v28 = vadd.f32 1.0, %v6386_v46  ;;  %v8601_v30 = vld [vmem:[#allocation62_spill] sm:$0xff]  ;;  %v8602_v46 = vld [vmem:[#allocation63_spill] sm:$0xff] }
 0x15b   :  { %6391 = vrcp.f32 %v789_v10 }
 0x15c   :  { %6393 = vrcp.f32 %v796_v28  ;;  %v8598_v28 = vld [vmem:[#allocation59_spill] sm:$0xff] }
 0x164   :  { %v6390_v13 = vpop.eup %6389 }
 0x165   :  { %v6392_v45 = vpop.eup %6391  ;;  %v800_v50 = vmul.f32 %v6390_v13, %v6388_v15  ;;  %v8596_v15 = vld [vmem:[#allocation57_spill] sm:$0xff]  ;;  %v8603_v13 = vld [vmem:[#allocation64_spill] sm:$0xff] }
 0x166   :  { %v799_v0 = vmul.f32 0.0, %v6392_v45  ;;  %v6394_v2 = vpop.eup %6393  ;;  %v8604_v45 = vld [vmem:[#allocation65_spill] sm:$0xff] }
 0x168   :  { %v801_v37 = vadd.f32 %v800_v50, %v799_v0  ;;  %v8597_v50 = vld [vmem:[#allocation58_spill] sm:$0xff] }
 0x169   :  { %v8605_v0 = vld [vmem:[#allocation66_spill] sm:$0xff] }
 0x16a   :  { %6395 = vtanh.f32 %v801_v37  ;;  %v7291_v24 = vsel %vm808_vm5, %v801_v37, 0.0  ;;  %v8606_v37 = vld [vmem:[#allocation67_spill] sm:$0xff] }
 0x174   :  { %v6396_v40 = vpop.eup %6395 }
 0x175   :  { %v803_v31 = vmul.f32 %v6396_v40, %v6394_v2  ;;  %v8607_v2 = vld [vmem:[#allocation68_spill] sm:$0xff]  ;;  %v8608_v40 = vld [vmem:[#allocation69_spill] sm:$0xff] }
 0x177   :  { %4652 = vmatmul.mubr.msk.f32.vlgmr.msra.gmra.mrb[16].mxu0 %vm808_vm5, %v803_v31  ;;  %4653 = vmatmul.mubr.msk.f32.vlgmr.msra.gmra.mrb[16].mxu1 %vm808_vm5, %v803_v31  ;;  %v7296_v10 = vsel %vm808_vm5, %v803_v31, 0.0 }
 0x178   :  { %4933 = vmatpush1.bf16.msra.mxu0 %v6894_v36  ;;  %4965 = vmatpush1.bf16.msra.mxu1 %v6897_v39 }
 0x179   :  { %4935 = vmatprep.subr.bf16.mxu0 %v6900_v43  ;;  %4967 = vmatprep.subr.bf16.mxu1 %v6906_v48 }
 0x17a   :  { %1196 = vmatprep.mubr.f32.mxu0 %v8563_v33  ;;  %1267 = vmatprep.mubr.f32.mxu1 %v8563_v33 }
 0x17c   :  { %4937 = vmatpush1.bf16.msra.mxu0 %v6910_v51  ;;  %4969 = vmatpush1.bf16.msra.mxu1 %v6914_v55 }
 0x17d   :  { %4939 = vmatprep.subr.bf16.mxu0 %v6918_v58  ;;  %4971 = vmatprep.subr.bf16.mxu1 %v6922_v61 }
 0x180   :  { %4941 = vmatpush1.bf16.msra.mxu0 %v6929_v3  ;;  %4973 = vmatpush1.bf16.msra.mxu1 %v6933_v6 }
 0x181   :  { %4943 = vmatprep.subr.bf16.mxu0 %v6937_v9  ;;  %4975 = vmatprep.subr.bf16.mxu1 %v6941_v12 }
 0x184   :  { %4945 = vmatpush1.bf16.msra.mxu0 %v6948_v16  ;;  %4977 = vmatpush1.bf16.msra.mxu1 %v6952_v19 }
 0x185   :  { %4947 = vmatprep.subr.bf16.mxu0 %v6956_v22  ;;  %4979 = vmatprep.subr.bf16.mxu1 %v6960_v25 }
 0x188   :  { %4949 = vmatpush1.bf16.msra.mxu0 %v6967_v29  ;;  %4981 = vmatpush1.bf16.msra.mxu1 %v6971_v34 }
 0x189   :  { %4951 = vmatprep.subr.bf16.mxu0 %v6975_v38  ;;  %4983 = vmatprep.subr.bf16.mxu1 %v6979_v42 }
 0x18c   :  { %4953 = vmatpush1.bf16.msra.mxu0 %v6986_v47  ;;  %4985 = vmatpush1.bf16.msra.mxu1 %v6990_v52 }
 0x18d   :  { %4955 = vmatprep.subr.bf16.mxu0 %v6994_v56  ;;  %4987 = vmatprep.subr.bf16.mxu1 %v6998_v60 }
 0x190   :  { %4957 = vmatpush1.bf16.msra.mxu0 %v7005_v4  ;;  %4989 = vmatpush1.bf16.msra.mxu1 %v7009_v8 }
 0x191   :  { %4959 = vmatprep.subr.bf16.mxu0 %v7016_v14  ;;  %4991 = vmatprep.subr.bf16.mxu1 %v7023_v20 }
 0x194   :  { %4961 = vmatpush1.bf16.msra.mxu0 %v7027_v21  ;;  %4993 = vmatpush1.bf16.msra.mxu1 %v7034_v27 }
 0x195   :  { %4995 = vmatprep.subr.bf16.mxu0 %v7042_v44  ;;  %5027 = vmatprep.subr.bf16.mxu1 %v7046_v49 }
 0x197   :  { %4658 = vmatmul.mubr.msk.f32.vlgmr.msra.gmra.mrb[2].mxu0 %vm808_vm5, %v803_v31  ;;  %4659 = vmatmul.mubr.msk.f32.vlgmr.msra.gmra.mrb[2].mxu1 %vm808_vm5, %v803_v31  ;;  %v8609_v31 = vld [vmem:[#allocation70_spill] sm:$0xff] }
 0x198   :  { %4997 = vmatpush1.bf16.msra.mxu0 %v7053_v57  ;;  %5029 = vmatpush1.bf16.msra.mxu1 %v7055_v59 }
 0x199   :  { %4999 = vmatprep.subr.bf16.mxu0 %v7058_v63  ;;  %5031 = vmatprep.subr.bf16.mxu1 %v7064_v11 }
 0x19a   :  { %1374 = vmatprep.mubr.f32.mxu0 %v8563_v33  ;;  %1445 = vmatprep.mubr.f32.mxu1 %v8563_v33 }
 0x19c   :  { %5001 = vmatpush1.bf16.msra.mxu0 %v7073_v23  ;;  %5033 = vmatpush1.bf16.msra.mxu1 %v7075_v26 }
 0x19d   :  { %5003 = vmatprep.subr.bf16.mxu0 %v7078_v32  ;;  %5035 = vmatprep.subr.bf16.mxu1 %v7083_v41 }
 0x1a0   :  { %5005 = vmatpush1.bf16.msra.mxu0 %v7089_v62  ;;  %5037 = vmatpush1.bf16.msra.mxu1 %v7091_v54 }
 0x1a1   :  { %5007 = vmatprep.subr.bf16.mxu0 %v7094_v7  ;;  %5039 = vmatprep.subr.bf16.mxu1 %v7099_v18 }
 0x1a4   :  { %5009 = vmatpush1.bf16.msra.mxu0 %v8596_v15  ;;  %5041 = vmatpush1.bf16.msra.mxu1 %v8597_v50 }
 0x1a5   :  { %5011 = vmatprep.subr.bf16.mxu0 %v8598_v28  ;;  %5043 = vmatprep.subr.bf16.mxu1 %v8599_v53 }
 0x1a8   :  { %5013 = vmatpush1.bf16.msra.mxu0 %v8600_v1  ;;  %5045 = vmatpush1.bf16.msra.mxu1 %v8601_v30  ;;  %v8611_v1 = vld [vmem:[#allocation72_spill] sm:$0xff]  ;;  %v8612_v30 = vld [vmem:[#allocation73_spill] sm:$0xff] }
 0x1a9   :  { %5015 = vmatprep.subr.bf16.mxu0 %v8602_v46  ;;  %5047 = vmatprep.subr.bf16.mxu1 %v8603_v13  ;;  %v8613_v46 = vld [vmem:[#allocation74_spill] sm:$0xff]  ;;  %v8614_v13 = vld [vmem:[#allocation75_spill] sm:$0xff] }
 0x1ac   :  { %5017 = vmatpush1.bf16.msra.mxu0 %v8604_v45  ;;  %5049 = vmatpush1.bf16.msra.mxu1 %v8605_v0  ;;  %v8615_v45 = vld [vmem:[#allocation76_spill] sm:$0xff] }
 0x1ad   :  { %5019 = vmatprep.subr.bf16.mxu0 %v8606_v37  ;;  %5051 = vmatprep.subr.bf16.mxu1 %v8607_v2  ;;  %v4668_v2 = vld [vmem:[%s8283_s1 + $0x10] sm:$0xff] }
 0x1ae   :  { %vm1625_vm6 = vcmp.ne.f32.partialorder %v4668_v2, 0.0  ;;  %v606_v2 = vld [vmem:[%s8289_s7] sm:$0xf] }
 0x1b0   :  { %5021 = vmatpush1.bf16.msra.mxu0 %v8608_v40  ;;  %5053 = vmatpush1.bf16.msra.mxu1 %v8609_v31  ;;  %v4677_v31 = vld [vmem:[%s8283_s1 + $0x18] sm:$0xff] }
 0x1b1   :  { %5023 = vmatprep.subr.bf16.mxu0 %v8610_v17  ;;  %5055 = vmatprep.subr.bf16.mxu1 %v8611_v1  ;;  %vm2124_vm7 = vcmp.ne.f32.partialorder %v4677_v31, 0.0  ;;  %v8616_v17 = vmov 0  }
 0x1b2   :  { %v1801_v1 = vsel %vm1625_vm6, 1, %v8616_v17 }
 0x1b3   :  { %1803 = vperm.xlu1 %6380, %v1801_v1   ;;  %v8617_v1 = vsub.s32 0, %v7261_v35 }
 0x1b4   :  { %5025 = vmatpush1.bf16.msra.mxu0 %v8612_v30  ;;  %5057 = vmatpush1.bf16.msra.mxu1 %v8613_v46  ;;  %v4695_v46 = vld [vmem:[%s8283_s1 + $0x28] sm:$0xff] }
 0x1b5   :  { %5059 = vmatprep.subr.bf16.mxu0 %v8614_v13  ;;  %5091 = vmatprep.subr.bf16.mxu1 %v8615_v45  ;;  %v2300_v13 = vsel %vm2124_vm7, 1, %v8616_v17  ;;  %vm3122_vm8 = vcmp.ne.f32.partialorder %v4695_v46, 0.0  ;;  %v4713_v45 = vld [vmem:[%s8283_s1 + $0x38] sm:$0xff]  ;;  %v7389_v40 = vrot.slane %v606_v2, %v8617_v1  ;;  %v8619_v46 = vsub.s32 1, %v7261_v35  ;;  %s6763_s1 = smov [#allocation11]  }
 0x1b6   :  { %v3298_v30 = vsel %vm3122_vm8, 1, %v8616_v17  ;;  %vm4120_vm9 = vcmp.ne.f32.partialorder %v4713_v45, 0.0  ;;  %s4622_s7 = sshll.u32 %s6763_s1, 4  ;;  %s4623_s7 = int_to_ptr.vmem [resolvable:$true] %s4622_s7 }
 0x1b7   :  { %2302 = vperm.xlu1 %6380, %v2300_v13   ;;  %v4296_v31 = vsel %vm4120_vm9, 1, %v8616_v17  ;;  %8618 = vst [vmem:[#allocation110_spill] sm:$0xff] %v7389_v40  ;;  %v7393_v37 = vrot.slane %v606_v2, %v8619_v46  ;;  %v8620_v17 = vsub.s32 3, %v7261_v35  ;;  %s6725_s15 = scalar_lea.vmem %s4623_s7, 128  ;;  %p6730_p5 = scmp.lt.s32.totalorder %s4623_s7, %s4623_s7 }
 0x1b8   :  { %p6726_p4 = scmp.ne.s32.totalorder %s4623_s7, %s6725_s15  ;;  %p6731_p6 = scmp.lt.s32.totalorder %s6725_s15, %s6725_s15 }
 0x1b9   :  { %v7399_v18 = vrot.slane %v606_v2, %v8620_v17 }
 0x1ba   :  { %p6732_p7 = por %p6731_p6, %p6730_p5 }
 0x1bb   :  { %3300 = vperm.xlu1 %6380, %v3298_v30   ;;  %8621 = vst [vmem:[#allocation111_spill] sm:$0xff] %v7399_v18 }
 0x1bc   :  { %p6733_p8 = pnand %p6732_p7, %p6726_p4 }
 0x1bf   :  { %4298 = vperm.xlu1 %6380, %v4296_v31   ;;  %v8622_v31 = vsub.s32 2, %v7261_v35 }
 0x1c1   :  { %v7404_v46 = vrot.slane %v606_v2, %v8622_v31 }
 0x1c3   :  { %8623 = vst [vmem:[#allocation112_spill] sm:$0xff] %v7404_v46 }
 0x24a   :  { %v1019_v13 = vpop.f32.mrb[16].mxu0  ;;  %v1090_v0 = vpop.f32.mrb[16].mxu1 }
 0x24b   :  { %v1095_v45 = vadd.f32 %v1019_v13, %v7389_v40  ;;  %v1021_v53 = vpop.f32.mrb[17].mxu0  ;;  %v1092_v28 = vpop.f32.mrb[17].mxu1  ;;  %v1097_v13 = vadd.f32 %v1090_v0, %v7404_v46  ;;  %v8624_v0 = vld [vmem:[#allocation107_spill] sm:$0xff] }
 0x24c   :  { %v1096_v50 = vadd.f32 %v1021_v53, %v7393_v37  ;;  %v1098_v1 = vadd.f32 %v1092_v28, %v7399_v18 }
 0x24d   :  { %v4654_v30 = vmul.f32 -1.442695, %v1095_v45 }
 0x24e   :  { %v4655_v15 = vmul.f32 -1.442695, %v1096_v50  ;;  %v4656_v7 = vmul.f32 -1.442695, %v1098_v1 }
 0x24f   :  { %6397 = vpow2.f32 %v4654_v30 }
 0x250   :  { %6399 = vpow2.f32 %v4655_v15 }
 0x251   :  { %6401 = vpow2.f32 %v4656_v7 }
 0x252   :  { %6403 = vtanh.f32 %v1097_v13 }
 0x259   :  { %v6398_v40 = vpop.eup %6397 }
 0x25a   :  { %v6400_v54 = vpop.eup %6399  ;;  %v1102_v53 = vadd.f32 1.0, %v6398_v40 }
 0x25b   :  { %v1108_v50 = vadd.f32 1.0, %v6400_v54  ;;  %v6402_v45 = vpop.eup %6401  ;;  %v8625_v54 = vld [vmem:[#allocation108_spill] sm:$0xff] }
 0x25c   :  { %6405 = vrcp.f32 %v1102_v53  ;;  %v6404_v30 = vpop.eup %6403  ;;  %v1115_v18 = vadd.f32 1.0, %v6402_v45 }
 0x25d   :  { %6407 = vrcp.f32 %v1108_v50 }
 0x25e   :  { %6409 = vrcp.f32 %v1115_v18 }
 0x266   :  { %v6406_v15 = vpop.eup %6405 }
 0x267   :  { %v6408_v17 = vpop.eup %6407  ;;  %v1119_v28 = vmul.f32 %v6406_v15, %v6404_v30  ;;  %v8626_v30 = vld [vmem:[#allocation109_spill] sm:$0xff] }
 0x268   :  { %v1118_v35 = vmul.f32 0.0, %v6408_v17  ;;  %v6410_v15 = vpop.eup %6409 }
 0x26a   :  { %v7407_v2 = vadd.f32 %v1119_v28, %v1118_v35  ;;  %v1198_v1 = vpop.f32.mrb[2].mxu0  ;;  %v1269_v31 = vpop.f32.mrb[2].mxu1 }
 0x26b   :  { %v6276_v46 = vadd.f32 %v1198_v1, %v8624_v0  ;;  %v1200_v40 = vpop.f32.mrb[3].mxu0  ;;  %v1271_v7 = vpop.f32.mrb[3].mxu1  ;;  %v6292_v35 = vadd.f32 %v1269_v31, %v7287_v5  ;;  %v8632_v31 = vld [vmem:[#allocation81_spill] sm:$0xff] }
 0x26c   :  { %6411 = vtanh.f32 %v7407_v2  ;;  %v6277_v13 = vadd.f32 %v1200_v40, %v8625_v54  ;;  %v6293_v45 = vadd.f32 %v1271_v7, %v8626_v30 }
 0x26d   :  { %v4660_v53 = vmul.f32 -1.442695, %v6276_v46  ;;  %v8628_v46 = vld [vmem:[#allocation77_spill] sm:$0xff] }
 0x26e   :  { %v4661_v50 = vmul.f32 -1.442695, %v6277_v13  ;;  %v4662_v28 = vmul.f32 -1.442695, %v6293_v45  ;;  %v8629_v13 = vld [vmem:[#allocation78_spill] sm:$0xff] }
 0x26f   :  { %6413 = vpow2.f32 %v4660_v53  ;;  %v8630_v53 = vld [vmem:[#allocation79_spill] sm:$0xff]  ;;  %v8633_v45 = vld [vmem:[#allocation82_spill] sm:$0xff] }
 0x270   :  { %6415 = vpow2.f32 %v4661_v50  ;;  %v8631_v50 = vld [vmem:[#allocation80_spill] sm:$0xff] }
 0x271   :  { %6417 = vpow2.f32 %v4662_v28  ;;  %v8636_v28 = vld [vmem:[#allocation85_spill] sm:$0xff] }
 0x272   :  { %6419 = vtanh.f32 %v6292_v35  ;;  %v8638_v35 = vld [vmem:[#allocation87_spill] sm:$0xff] }
 0x276   :  { %v6412_v17 = vpop.eup %6411 }
 0x277   :  { %v7414_v18 = vmul.f32 %v6412_v17, %v6410_v15  ;;  %v8634_v15 = vld [vmem:[#allocation83_spill] sm:$0xff]  ;;  %v8635_v17 = vld [vmem:[#allocation84_spill] sm:$0xff] }
 0x279   :  { %8627 = vst [vmem:[#allocation108_spill] sm:$0xff] %v7414_v18  ;;  %v6414_v1 = vpop.eup %6413  ;;  %1375 = vmatmul.mubr.f32.vlgmr.msra.gmra.mrb[18].mxu0 %v7414_v18  ;;  %1446 = vmatmul.mubr.f32.vlgmr.msra.gmra.mrb[18].mxu1 %v7414_v18 }
 0x27a   :  { %v6416_v0 = vpop.eup %6415  ;;  %v1281_v40 = vadd.f32 1.0, %v6414_v1  ;;  %5061 = vmatpush1.bf16.msra.mxu0 %v8628_v46  ;;  %5093 = vmatpush1.bf16.msra.mxu1 %v8629_v13  ;;  %v8639_v1 = vld [vmem:[#allocation88_spill] sm:$0xff]  ;;  %v8642_v13 = vld [vmem:[#allocation91_spill] sm:$0xff]  ;;  %v8644_v46 = vld [vmem:[#allocation93_spill] sm:$0xff] }
 0x27b   :  { %v1287_v7 = vadd.f32 1.0, %v6416_v0  ;;  %5063 = vmatprep.subr.bf16.mxu0 %v8630_v53  ;;  %5095 = vmatprep.subr.bf16.mxu1 %v8631_v50  ;;  %v8637_v0 = vld [vmem:[#allocation86_spill] sm:$0xff] }
 0x27c   :  { %6421 = vrcp.f32 %v1281_v40  ;;  %1516 = vmatprep.mubr.f32.mxu0 %v8563_v33  ;;  %1587 = vmatprep.mubr.f32.mxu1 %v8563_v33  ;;  %v6418_v40 = vpop.eup %6417 }
 0x27d   :  { %6423 = vrcp.f32 %v1287_v7  ;;  %v6420_v18 = vpop.eup %6419  ;;  %v8640_v7 = vld [vmem:[#allocation89_spill] sm:$0xff] }
 0x27e   :  { %5065 = vmatpush1.bf16.msra.mxu0 %v8632_v31  ;;  %5097 = vmatpush1.bf16.msra.mxu1 %v8633_v45  ;;  %v8641_v31 = vld [vmem:[#allocation90_spill] sm:$0xff] }
 0x27f   :  { %5067 = vmatprep.subr.bf16.mxu0 %v8634_v15  ;;  %5099 = vmatprep.subr.bf16.mxu1 %v8635_v17  ;;  %v1294_v15 = vadd.f32 1.0, %v6418_v40  ;;  %v8643_v17 = vld [vmem:[#allocation92_spill] sm:$0xff]  ;;  %v8652_v40 = vld [vmem:[#allocation101_spill] sm:$0xff] }
 0x281   :  { %6425 = vrcp.f32 %v1294_v15  ;;  %v8653_v15 = vld [vmem:[#allocation102_spill] sm:$0xff] }
 0x282   :  { %5069 = vmatpush1.bf16.msra.mxu0 %v8636_v28  ;;  %5101 = vmatpush1.bf16.msra.mxu1 %v8637_v0  ;;  %v1305_v28 = vpop.permute.xlu0 %1304 }
 0x283   :  { %5071 = vmatprep.subr.bf16.mxu0 %v8638_v35  ;;  %5103 = vmatprep.subr.bf16.mxu1 %v8639_v1  ;;  %v8645_v1 = vld [vmem:[#allocation94_spill] sm:$0xff]  ;;  %vm1306_vm10 = vcmp.eq.s32.totalorder %v1305_v28, 1  ;;  %v8663_v28 = vld [vmem:[#allocation56_spill] sm:$0xff] }
 0x286   :  { %v6422_v50 = vpop.eup %6421  ;;  %5073 = vmatpush1.bf16.msra.mxu0 %v8640_v7  ;;  %5105 = vmatpush1.bf16.msra.mxu1 %v8641_v31  ;;  %v8646_v7 = vld [vmem:[#allocation95_spill] sm:$0xff]  ;;  %v8647_v31 = vld [vmem:[#allocation96_spill] sm:$0xff] }
 0x287   :  { %v6424_v45 = vpop.eup %6423  ;;  %v1298_v53 = vmul.f32 %v6422_v50, %v6420_v18  ;;  %5075 = vmatprep.subr.bf16.mxu0 %v8642_v13  ;;  %5107 = vmatprep.subr.bf16.mxu1 %v8643_v17  ;;  %v8648_v50 = vld [vmem:[#allocation97_spill] sm:$0xff] }
 0x288   :  { %v1297_v0 = vmul.f32 %v6424_v45, %v7291_v24  ;;  %v8649_v45 = vld [vmem:[#allocation98_spill] sm:$0xff] }
 0x28a   :  { %v1299_v35 = vadd.f32 %v1298_v53, %v1297_v0  ;;  %5077 = vmatpush1.bf16.msra.mxu0 %v8644_v46  ;;  %5109 = vmatpush1.bf16.msra.mxu1 %v8645_v1  ;;  %v8650_v53 = vld [vmem:[#allocation99_spill] sm:$0xff]  ;;  %v8651_v0 = vld [vmem:[#allocation100_spill] sm:$0xff] }
 0x28b   :  { %5079 = vmatprep.subr.bf16.mxu0 %v8646_v7  ;;  %5111 = vmatprep.subr.bf16.mxu1 %v8647_v31  ;;  %v8654_v7 = vld [vmem:[#allocation103_spill] sm:$0xff]  ;;  %v8655_v31 = vld [vmem:[#allocation104_spill] sm:$0xff]  ;;  %v6426_v1 = vpop.eup %6425 }
 0x28c   :  { %6427 = vtanh.f32 %v1299_v35  ;;  %v7443_v18 = vsel %vm1306_vm10, %v1299_v35, %v7291_v24  ;;  %v8656_v24 = vld [vmem:[#allocation105_spill] sm:$0xff]  ;;  %v8657_v35 = vld [vmem:[#allocation106_spill] sm:$0xff] }
 0x28e   :  { %5081 = vmatpush1.bf16.msra.mxu0 %v8648_v50  ;;  %5113 = vmatpush1.bf16.msra.mxu1 %v8649_v45  ;;  %v8658_v45 = vld [vmem:[#allocation16_spill] sm:$0xff] }
 0x28f   :  { %5083 = vmatprep.subr.bf16.mxu0 %v8650_v53  ;;  %5115 = vmatprep.subr.bf16.mxu1 %v8651_v0  ;;  %v8659_v53 = vld [vmem:[#allocation17_spill] sm:$0xff] }
 0x292   :  { %5085 = vmatpush1.bf16.msra.mxu0 %v8652_v40  ;;  %5117 = vmatpush1.bf16.msra.mxu1 %v8653_v15 }
 0x293   :  { %5087 = vmatprep.subr.bf16.mxu0 %v8654_v7  ;;  %5119 = vmatprep.subr.bf16.mxu1 %v8655_v31 }
 0x296   :  { %v6428_v46 = vpop.eup %6427  ;;  %5089 = vmatpush1.bf16.msra.mxu0 %v8656_v24  ;;  %5121 = vmatpush1.bf16.msra.mxu1 %v8657_v35 }
 0x297   :  { %v1301_v50 = vmul.f32 %v6428_v46, %v6426_v1  ;;  %5123 = vmatprep.subr.bf16.mxu0 %v8658_v45  ;;  %5155 = vmatprep.subr.bf16.mxu1 %v8659_v53  ;;  %v8662_v46 = vld [vmem:[#allocation55_spill] sm:$0xff]  ;;  %v8664_v1 = vld [vmem:[#allocation57_spill] sm:$0xff] }
 0x299   :  { %4663 = vmatmul.mubr.msk.f32.vlgmr.msra.gmra.mrb[18].mxu0 %vm1306_vm10, %v1301_v50  ;;  %4664 = vmatmul.mubr.msk.f32.vlgmr.msra.gmra.mrb[18].mxu1 %vm1306_vm10, %v1301_v50  ;;  %v7461_v7 = vsel %vm1306_vm10, %v1301_v50, %v7296_v10  ;;  %v8661_v10 = vld [vmem:[#allocation54_spill] sm:$0xff] }
 0x29a   :  { %8660 = vst [vmem:[#allocation109_spill] sm:$0xff] %v7461_v7  ;;  %5125 = vmatpush1.bf16.msra.mxu0 %v6894_v36  ;;  %5157 = vmatpush1.bf16.msra.mxu1 %v6897_v39  ;;  %v8665_v50 = vld [vmem:[#allocation58_spill] sm:$0xff] }
 0x29b   :  { %5127 = vmatprep.subr.bf16.mxu0 %v6900_v43  ;;  %5159 = vmatprep.subr.bf16.mxu1 %v6906_v48 }
 0x29c   :  { %1695 = vmatprep.mubr.f32.mxu0 %v8563_v33  ;;  %1766 = vmatprep.mubr.f32.mxu1 %v8563_v33 }
 0x29e   :  { %5129 = vmatpush1.bf16.msra.mxu0 %v6910_v51  ;;  %5161 = vmatpush1.bf16.msra.mxu1 %v6914_v55 }
 0x29f   :  { %5131 = vmatprep.subr.bf16.mxu0 %v6918_v58  ;;  %5163 = vmatprep.subr.bf16.mxu1 %v6922_v61 }
 0x2a2   :  { %5133 = vmatpush1.bf16.msra.mxu0 %v6929_v3  ;;  %5165 = vmatpush1.bf16.msra.mxu1 %v6933_v6 }
 0x2a3   :  { %5135 = vmatprep.subr.bf16.mxu0 %v6937_v9  ;;  %5167 = vmatprep.subr.bf16.mxu1 %v6941_v12 }
 0x2a6   :  { %5137 = vmatpush1.bf16.msra.mxu0 %v6948_v16  ;;  %5169 = vmatpush1.bf16.msra.mxu1 %v6952_v19 }
 0x2a7   :  { %5139 = vmatprep.subr.bf16.mxu0 %v6956_v22  ;;  %5171 = vmatprep.subr.bf16.mxu1 %v6960_v25 }
 0x2aa   :  { %5141 = vmatpush1.bf16.msra.mxu0 %v6967_v29  ;;  %5173 = vmatpush1.bf16.msra.mxu1 %v6971_v34 }
 0x2ab   :  { %5143 = vmatprep.subr.bf16.mxu0 %v6975_v38  ;;  %5175 = vmatprep.subr.bf16.mxu1 %v6979_v42 }
 0x2ae   :  { %5145 = vmatpush1.bf16.msra.mxu0 %v6986_v47  ;;  %5177 = vmatpush1.bf16.msra.mxu1 %v6990_v52 }
 0x2af   :  { %5147 = vmatprep.subr.bf16.mxu0 %v6994_v56  ;;  %5179 = vmatprep.subr.bf16.mxu1 %v6998_v60 }
 0x2b2   :  { %5149 = vmatpush1.bf16.msra.mxu0 %v7005_v4  ;;  %5181 = vmatpush1.bf16.msra.mxu1 %v7009_v8 }
 0x2b3   :  { %5151 = vmatprep.subr.bf16.mxu0 %v7016_v14  ;;  %5183 = vmatprep.subr.bf16.mxu1 %v7023_v20 }
 0x2b6   :  { %5153 = vmatpush1.bf16.msra.mxu0 %v7027_v21  ;;  %5185 = vmatpush1.bf16.msra.mxu1 %v7034_v27 }
 0x2b7   :  { %5187 = vmatprep.subr.bf16.mxu0 %v7042_v44  ;;  %5219 = vmatprep.subr.bf16.mxu1 %v7046_v49 }
 0x2b9   :  { %1696 = vmatmul.mubr.f32.vlgmr.msra.gmra.mrb[4].mxu0 %v7461_v7  ;;  %1767 = vmatmul.mubr.f32.vlgmr.msra.gmra.mrb[4].mxu1 %v7461_v7 }
 0x2ba   :  { %5189 = vmatpush1.bf16.msra.mxu0 %v7053_v57  ;;  %5221 = vmatpush1.bf16.msra.mxu1 %v7055_v59 }
 0x2bb   :  { %5191 = vmatprep.subr.bf16.mxu0 %v7058_v63  ;;  %5223 = vmatprep.subr.bf16.mxu1 %v7064_v11  ;;  %v8666_v11 = vld [vmem:[#allocation59_spill] sm:$0xff]  ;;  %v8684_v63 = vld [vmem:[#allocation110_spill] sm:$0xff] }
 0x2bc   :  { %1873 = vmatprep.mubr.f32.mxu0 %v8563_v33  ;;  %1944 = vmatprep.mubr.f32.mxu1 %v8563_v33 }
 0x2be   :  { %5193 = vmatpush1.bf16.msra.mxu0 %v7073_v23  ;;  %5225 = vmatpush1.bf16.msra.mxu1 %v7075_v26  ;;  %v8667_v23 = vld [vmem:[#allocation60_spill] sm:$0xff]  ;;  %v8668_v26 = vld [vmem:[#allocation61_spill] sm:$0xff] }
 0x2bf   :  { %5195 = vmatprep.subr.bf16.mxu0 %v7078_v32  ;;  %5227 = vmatprep.subr.bf16.mxu1 %v7083_v41  ;;  %v8669_v32 = vld [vmem:[#allocation62_spill] sm:$0xff]  ;;  %v8670_v41 = vld [vmem:[#allocation63_spill] sm:$0xff] }
 0x2c2   :  { %5197 = vmatpush1.bf16.msra.mxu0 %v7089_v62  ;;  %5229 = vmatpush1.bf16.msra.mxu1 %v8661_v10  ;;  %v8671_v62 = vld [vmem:[#allocation64_spill] sm:$0xff]  ;;  %v8672_v10 = vld [vmem:[#allocation65_spill] sm:$0xff] }
 0x2c3   :  { %5199 = vmatprep.subr.bf16.mxu0 %v8662_v46  ;;  %5231 = vmatprep.subr.bf16.mxu1 %v8663_v28  ;;  %v8673_v46 = vld [vmem:[#allocation66_spill] sm:$0xff]  ;;  %v8674_v28 = vld [vmem:[#allocation67_spill] sm:$0xff] }
 0x2c6   :  { %5201 = vmatpush1.bf16.msra.mxu0 %v8664_v1  ;;  %5233 = vmatpush1.bf16.msra.mxu1 %v8665_v50  ;;  %v8675_v1 = vld [vmem:[#allocation68_spill] sm:$0xff]  ;;  %v8676_v50 = vld [vmem:[#allocation69_spill] sm:$0xff] }
 0x2c7   :  { %5203 = vmatprep.subr.bf16.mxu0 %v8666_v11  ;;  %5235 = vmatprep.subr.bf16.mxu1 %v8667_v23  ;;  %v8677_v11 = vld [vmem:[#allocation70_spill] sm:$0xff]  ;;  %v8678_v23 = vld [vmem:[#allocation71_spill] sm:$0xff] }
 0x2ca   :  { %5205 = vmatpush1.bf16.msra.mxu0 %v8668_v26  ;;  %5237 = vmatpush1.bf16.msra.mxu1 %v8669_v32  ;;  %v8679_v26 = vld [vmem:[#allocation72_spill] sm:$0xff]  ;;  %v8680_v32 = vld [vmem:[#allocation73_spill] sm:$0xff] }
 0x2cb   :  { %5207 = vmatprep.subr.bf16.mxu0 %v8670_v41  ;;  %5239 = vmatprep.subr.bf16.mxu1 %v8671_v62  ;;  %v8681_v41 = vld [vmem:[#allocation74_spill] sm:$0xff]  ;;  %v8682_v62 = vld [vmem:[#allocation75_spill] sm:$0xff] }
 0x2ce   :  { %5209 = vmatpush1.bf16.msra.mxu0 %v8672_v10  ;;  %5241 = vmatpush1.bf16.msra.mxu1 %v8673_v46  ;;  %v8683_v10 = vld [vmem:[#allocation76_spill] sm:$0xff] }
 0x2cf   :  { %5211 = vmatprep.subr.bf16.mxu0 %v8674_v28  ;;  %5243 = vmatprep.subr.bf16.mxu1 %v8675_v1 }
 0x2d2   :  { %5213 = vmatpush1.bf16.msra.mxu0 %v8676_v50  ;;  %5245 = vmatpush1.bf16.msra.mxu1 %v8677_v11 }
 0x2d3   :  { %5215 = vmatprep.subr.bf16.mxu0 %v8678_v23  ;;  %5247 = vmatprep.subr.bf16.mxu1 %v8679_v26  ;;  %v8685_v26 = vld [vmem:[#allocation111_spill] sm:$0xff] }
 0x2d6   :  { %5217 = vmatpush1.bf16.msra.mxu0 %v8680_v32  ;;  %5249 = vmatpush1.bf16.msra.mxu1 %v8681_v41  ;;  %v8686_v41 = vld [vmem:[#allocation112_spill] sm:$0xff] }
 0x2d7   :  { %5251 = vmatprep.subr.bf16.mxu0 %v8682_v62  ;;  %5283 = vmatprep.subr.bf16.mxu1 %v8683_v10 }
 0x36c   :  { %v1518_v46 = vpop.f32.mrb[18].mxu0  ;;  %v1589_v28 = vpop.f32.mrb[18].mxu1 }
 0x36d   :  { %v1594_v1 = vadd.f32 %v1518_v46, %v8684_v63  ;;  %v1520_v59 = vpop.f32.mrb[19].mxu0  ;;  %v1591_v50 = vpop.f32.mrb[19].mxu1  ;;  %v1596_v49 = vadd.f32 %v1589_v28, %v8686_v41  ;;  %v8687_v41 = vld [vmem:[#allocation107_spill] sm:$0xff] }
 0x36e   :  { %v1595_v11 = vadd.f32 %v1520_v59, %v7393_v37  ;;  %v1597_v32 = vadd.f32 %v1591_v50, %v8685_v26 }
 0x36f   :  { %v4665_v57 = vmul.f32 -1.442695, %v1594_v1 }
 0x370   :  { %v4666_v23 = vmul.f32 -1.442695, %v1595_v11  ;;  %v4667_v7 = vmul.f32 -1.442695, %v1597_v32 }
 0x371   :  { %6429 = vpow2.f32 %v4665_v57 }
 0x372   :  { %6431 = vpow2.f32 %v4666_v23 }
 0x373   :  { %6433 = vpow2.f32 %v4667_v7 }
 0x374   :  { %6435 = vtanh.f32 %v1596_v49 }
 0x37b   :  { %v6430_v62 = vpop.eup %6429 }
 0x37c   :  { %v6432_v44 = vpop.eup %6431  ;;  %v1601_v10 = vadd.f32 1.0, %v6430_v62 }
 0x37d   :  { %v1607_v27 = vadd.f32 1.0, %v6432_v44  ;;  %v6434_v46 = vpop.eup %6433 }
 0x37e   :  { %6437 = vrcp.f32 %v1601_v10  ;;  %v6436_v63 = vpop.eup %6435  ;;  %v1614_v57 = vadd.f32 1.0, %v6434_v46 }
 0x37f   :  { %6439 = vrcp.f32 %v1607_v27 }
 0x380   :  { %6441 = vrcp.f32 %v1614_v57 }
 0x388   :  { %v6438_v59 = vpop.eup %6437 }
 0x389   :  { %v6440_v1 = vpop.eup %6439  ;;  %v1618_v11 = vmul.f32 %v6438_v59, %v6436_v63 }
 0x38a   :  { %v1617_v23 = vmul.f32 %v6440_v1, %v7407_v2  ;;  %v6442_v2 = vpop.eup %6441 }
 0x38c   :  { %v7538_v50 = vadd.f32 %v1618_v11, %v1617_v23  ;;  %v1697_v32 = vpop.f32.mrb[4].mxu0  ;;  %v1768_v28 = vpop.f32.mrb[4].mxu1 }
 0x38d   :  { %v6278_v62 = vadd.f32 %v1697_v32, %v8687_v41  ;;  %v1699_v7 = vpop.f32.mrb[5].mxu0  ;;  %v1770_v49 = vpop.f32.mrb[5].mxu1  ;;  %v6294_v1 = vadd.f32 %v1768_v28, %v7287_v5  ;;  %v8692_v28 = vld [vmem:[#allocation81_spill] sm:$0xff] }
 0x38e   :  { %v6279_v44 = vadd.f32 %v1699_v7, %v8625_v54  ;;  %6443 = vtanh.f32 %v7538_v50  ;;  %v6295_v63 = vadd.f32 %v1770_v49, %v8626_v30  ;;  %v8689_v7 = vld [vmem:[#allocation78_spill] sm:$0xff] }
 0x38f   :  { %v4669_v27 = vmul.f32 -1.442695, %v6278_v62  ;;  %v8688_v62 = vld [vmem:[#allocation77_spill] sm:$0xff] }
 0x390   :  { %v4670_v10 = vmul.f32 -1.442695, %v6279_v44  ;;  %v4671_v59 = vmul.f32 -1.442695, %v6295_v63  ;;  %v8690_v44 = vld [vmem:[#allocation79_spill] sm:$0xff] }
 0x391   :  { %6445 = vpow2.f32 %v4669_v27  ;;  %v8691_v27 = vld [vmem:[#allocation80_spill] sm:$0xff]  ;;  %v8694_v63 = vld [vmem:[#allocation83_spill] sm:$0xff] }
 0x392   :  { %6447 = vpow2.f32 %v4670_v10  ;;  %v8693_v10 = vld [vmem:[#allocation82_spill] sm:$0xff] }
 0x393   :  { %6449 = vpow2.f32 %v4671_v59  ;;  %v8697_v59 = vld [vmem:[#allocation86_spill] sm:$0xff] }
 0x394   :  { %6451 = vtanh.f32 %v6294_v1  ;;  %v8698_v1 = vld [vmem:[#allocation87_spill] sm:$0xff] }
 0x398   :  { %v6444_v46 = vpop.eup %6443 }
 0x399   :  { %v7545_v11 = vmul.f32 %v6444_v46, %v6442_v2  ;;  %v8695_v2 = vld [vmem:[#allocation84_spill] sm:$0xff]  ;;  %v8696_v46 = vld [vmem:[#allocation85_spill] sm:$0xff] }
 0x39b   :  { %v6446_v57 = vpop.eup %6445  ;;  %1874 = vmatmul.mubr.f32.vlgmr.msra.gmra.mrb[20].mxu0 %v7545_v11  ;;  %1945 = vmatmul.mubr.f32.vlgmr.msra.gmra.mrb[20].mxu1 %v7545_v11 }
 0x39c   :  { %v6448_v23 = vpop.eup %6447  ;;  %v1780_v32 = vadd.f32 1.0, %v6446_v57  ;;  %5253 = vmatpush1.bf16.msra.mxu0 %v8688_v62  ;;  %5285 = vmatpush1.bf16.msra.mxu1 %v8689_v7  ;;  %v8699_v57 = vld [vmem:[#allocation88_spill] sm:$0xff] }
 0x39d   :  { %v1786_v49 = vadd.f32 1.0, %v6448_v23  ;;  %5255 = vmatprep.subr.bf16.mxu0 %v8690_v44  ;;  %5287 = vmatprep.subr.bf16.mxu1 %v8691_v27  ;;  %v6450_v23 = vpop.eup %6449 }
 0x39e   :  { %6453 = vrcp.f32 %v1780_v32  ;;  %2015 = vmatprep.mubr.f32.mxu0 %v8563_v33  ;;  %2086 = vmatprep.mubr.f32.mxu1 %v8563_v33  ;;  %v6452_v32 = vpop.eup %6451  ;;  %v1793_v44 = vadd.f32 1.0, %v6450_v23 }
 0x39f   :  { %6455 = vrcp.f32 %v1786_v49  ;;  %v8700_v49 = vld [vmem:[#allocation89_spill] sm:$0xff] }
 0x3a0   :  { %5257 = vmatpush1.bf16.msra.mxu0 %v8692_v28  ;;  %5289 = vmatpush1.bf16.msra.mxu1 %v8693_v10  ;;  %v8701_v28 = vld [vmem:[#allocation90_spill] sm:$0xff]  ;;  %v7565_v10 = vpop.permute.xlu1 %1803  ;;  %6457 = vrcp.f32 %v1793_v44  ;;  %v8709_v44 = vld [vmem:[#allocation103_spill] sm:$0xff] }
 0x3a1   :  { %5259 = vmatprep.subr.bf16.mxu0 %v8694_v63  ;;  %5291 = vmatprep.subr.bf16.mxu1 %v8695_v2  ;;  %vm1805_vm11 = vcmp.eq.s32.totalorder %v7565_v10, 1  ;;  %v8705_v2 = vld [vmem:[#allocation96_spill] sm:$0xff]  ;;  %v8721_v10 = vld [vmem:[#allocation51_spill] sm:$0xff] }
 0x3a4   :  { %5261 = vmatpush1.bf16.msra.mxu0 %v8696_v46  ;;  %5293 = vmatpush1.bf16.msra.mxu1 %v8697_v59  ;;  %v8703_v46 = vld [vmem:[#allocation94_spill] sm:$0xff] }
 0x3a5   :  { %5263 = vmatprep.subr.bf16.mxu0 %v8698_v1  ;;  %5295 = vmatprep.subr.bf16.mxu1 %v8699_v57  ;;  %v8702_v57 = vld [vmem:[#allocation93_spill] sm:$0xff] }
 0x3a8   :  { %v6454_v27 = vpop.eup %6453  ;;  %5265 = vmatpush1.bf16.msra.mxu0 %v8700_v49  ;;  %5297 = vmatpush1.bf16.msra.mxu1 %v8701_v28  ;;  %v8704_v28 = vld [vmem:[#allocation95_spill] sm:$0xff] }
 0x3a9   :  { %v6456_v63 = vpop.eup %6455  ;;  %5267 = vmatprep.subr.bf16.mxu0 %v8642_v13  ;;  %5299 = vmatprep.subr.bf16.mxu1 %v8643_v17  ;;  %v1797_v59 = vmul.f32 %v6454_v27, %v6452_v32  ;;  %v8706_v27 = vld [vmem:[#allocation97_spill] sm:$0xff]  ;;  %v8708_v32 = vld [vmem:[#allocation99_spill] sm:$0xff] }
 0x3aa   :  { %v1796_v1 = vmul.f32 %v6456_v63, %v7443_v18  ;;  %v8707_v63 = vld [vmem:[#allocation98_spill] sm:$0xff] }
 0x3ac   :  { %5269 = vmatpush1.bf16.msra.mxu0 %v8702_v57  ;;  %5301 = vmatpush1.bf16.msra.mxu1 %v8703_v46  ;;  %v1798_v49 = vadd.f32 %v1797_v59, %v1796_v1  ;;  %v6458_v59 = vpop.eup %6457 }
 0x3ad   :  { %5271 = vmatprep.subr.bf16.mxu0 %v8704_v28  ;;  %5303 = vmatprep.subr.bf16.mxu1 %v8705_v2 }
 0x3ae   :  { %6459 = vtanh.f32 %v1798_v49  ;;  %v7578_v23 = vsel %vm1805_vm11, %v1798_v49, %v7443_v18  ;;  %v8710_v49 = vld [vmem:[#allocation42_spill] sm:$0xff] }
 0x3b0   :  { %5273 = vmatpush1.bf16.msra.mxu0 %v8706_v27  ;;  %5305 = vmatpush1.bf16.msra.mxu1 %v8707_v63 }
 0x3b1   :  { %5275 = vmatprep.subr.bf16.mxu0 %v8708_v32  ;;  %5307 = vmatprep.subr.bf16.mxu1 %v8651_v0 }
 0x3b4   :  { %5277 = vmatpush1.bf16.msra.mxu0 %v8652_v40  ;;  %5309 = vmatpush1.bf16.msra.mxu1 %v8653_v15 }
 0x3b5   :  { %5279 = vmatprep.subr.bf16.mxu0 %v8709_v44  ;;  %5311 = vmatprep.subr.bf16.mxu1 %v8655_v31 }
 0x3b8   :  { %v6460_v1 = vpop.eup %6459  ;;  %5281 = vmatpush1.bf16.msra.mxu0 %v8656_v24  ;;  %5313 = vmatpush1.bf16.msra.mxu1 %v8657_v35 }
 0x3b9   :  { %5315 = vmatprep.subr.bf16.mxu0 %v8658_v45  ;;  %5347 = vmatprep.subr.bf16.mxu1 %v8659_v53  ;;  %v1800_v18 = vmul.f32 %v6460_v1, %v6458_v59  ;;  %v8711_v59 = vld [vmem:[#allocation43_spill] sm:$0xff]  ;;  %v8712_v1 = vld [vmem:[#allocation44_spill] sm:$0xff] }
 0x3bb   :  { %4672 = vmatmul.mubr.msk.f32.vlgmr.msra.gmra.mrb[20].mxu0 %vm1805_vm11, %v1800_v18  ;;  %4673 = vmatmul.mubr.msk.f32.vlgmr.msra.gmra.mrb[20].mxu1 %vm1805_vm11, %v1800_v18 }
 0x3bc   :  { %5317 = vmatpush1.bf16.msra.mxu0 %v6894_v36  ;;  %5349 = vmatpush1.bf16.msra.mxu1 %v6897_v39 }
 0x3bd   :  { %5319 = vmatprep.subr.bf16.mxu0 %v6900_v43  ;;  %5351 = vmatprep.subr.bf16.mxu1 %v6906_v48 }
 0x3be   :  { %2194 = vmatprep.mubr.f32.mxu0 %v8563_v33  ;;  %2265 = vmatprep.mubr.f32.mxu1 %v8563_v33 }
 0x3c0   :  { %5321 = vmatpush1.bf16.msra.mxu0 %v6910_v51  ;;  %5353 = vmatpush1.bf16.msra.mxu1 %v6914_v55 }
 0x3c1   :  { %5323 = vmatprep.subr.bf16.mxu0 %v6918_v58  ;;  %5355 = vmatprep.subr.bf16.mxu1 %v6922_v61 }
 0x3c4   :  { %5325 = vmatpush1.bf16.msra.mxu0 %v6929_v3  ;;  %5357 = vmatpush1.bf16.msra.mxu1 %v6933_v6 }
 0x3c5   :  { %5327 = vmatprep.subr.bf16.mxu0 %v6937_v9  ;;  %5359 = vmatprep.subr.bf16.mxu1 %v6941_v12 }
 0x3c8   :  { %5329 = vmatpush1.bf16.msra.mxu0 %v6948_v16  ;;  %5361 = vmatpush1.bf16.msra.mxu1 %v6952_v19 }
 0x3c9   :  { %5331 = vmatprep.subr.bf16.mxu0 %v6956_v22  ;;  %5363 = vmatprep.subr.bf16.mxu1 %v6960_v25 }
 0x3cc   :  { %5333 = vmatpush1.bf16.msra.mxu0 %v6967_v29  ;;  %5365 = vmatpush1.bf16.msra.mxu1 %v6971_v34 }
 0x3cd   :  { %5335 = vmatprep.subr.bf16.mxu0 %v6975_v38  ;;  %5367 = vmatprep.subr.bf16.mxu1 %v6979_v42 }
 0x3d0   :  { %5337 = vmatpush1.bf16.msra.mxu0 %v6986_v47  ;;  %5369 = vmatpush1.bf16.msra.mxu1 %v6990_v52  ;;  %v8713_v52 = vld [vmem:[#allocation109_spill] sm:$0xff] }
 0x3d1   :  { %5339 = vmatprep.subr.bf16.mxu0 %v6994_v56  ;;  %5371 = vmatprep.subr.bf16.mxu1 %v6998_v60  ;;  %v7633_v60 = vsel %vm1805_vm11, %v1800_v18, %v8713_v52  ;;  %v8720_v52 = vld [vmem:[#allocation50_spill] sm:$0xff]  ;;  %v8722_v18 = vld [vmem:[#allocation52_spill] sm:$0xff] }
 0x3d2   :  { %8714 = vst [vmem:[#allocation91_spill] sm:$0xff] %v7633_v60 }
 0x3d4   :  { %5341 = vmatpush1.bf16.msra.mxu0 %v7005_v4  ;;  %5373 = vmatpush1.bf16.msra.mxu1 %v7009_v8  ;;  %v8729_v8 = vld [vmem:[#allocation59_spill] sm:$0xff]  ;;  %v8747_v4 = vld [vmem:[#allocation110_spill] sm:$0xff] }
 0x3d5   :  { %5343 = vmatprep.subr.bf16.mxu0 %v7016_v14  ;;  %5375 = vmatprep.subr.bf16.mxu1 %v7023_v20  ;;  %v8715_v14 = vld [vmem:[#allocation45_spill] sm:$0xff]  ;;  %v8716_v20 = vld [vmem:[#allocation46_spill] sm:$0xff] }
 0x3d8   :  { %5345 = vmatpush1.bf16.msra.mxu0 %v7027_v21  ;;  %5377 = vmatpush1.bf16.msra.mxu1 %v8710_v49  ;;  %v8717_v21 = vld [vmem:[#allocation47_spill] sm:$0xff]  ;;  %v8718_v49 = vld [vmem:[#allocation48_spill] sm:$0xff] }
 0x3d9   :  { %5379 = vmatprep.subr.bf16.mxu0 %v8711_v59  ;;  %5411 = vmatprep.subr.bf16.mxu1 %v8712_v1  ;;  %v8719_v1 = vld [vmem:[#allocation49_spill] sm:$0xff]  ;;  %v8728_v59 = vld [vmem:[#allocation58_spill] sm:$0xff] }
 0x3db   :  { %2195 = vmatmul.mubr.f32.vlgmr.msra.gmra.mrb[6].mxu0 %v7633_v60  ;;  %2266 = vmatmul.mubr.f32.vlgmr.msra.gmra.mrb[6].mxu1 %v7633_v60  ;;  %v8723_v60 = vld [vmem:[#allocation53_spill] sm:$0xff] }
 0x3dc   :  { %5381 = vmatpush1.bf16.msra.mxu0 %v8715_v14  ;;  %5413 = vmatpush1.bf16.msra.mxu1 %v8716_v20  ;;  %v8724_v14 = vld [vmem:[#allocation54_spill] sm:$0xff]  ;;  %v8725_v20 = vld [vmem:[#allocation55_spill] sm:$0xff] }
 0x3dd   :  { %5383 = vmatprep.subr.bf16.mxu0 %v8717_v21  ;;  %5415 = vmatprep.subr.bf16.mxu1 %v8718_v49  ;;  %v8726_v21 = vld [vmem:[#allocation56_spill] sm:$0xff]  ;;  %v8727_v49 = vld [vmem:[#allocation57_spill] sm:$0xff] }
 0x3de   :  { %2372 = vmatprep.mubr.f32.mxu0 %v8563_v33  ;;  %2443 = vmatprep.mubr.f32.mxu1 %v8563_v33 }
 0x3e0   :  { %5385 = vmatpush1.bf16.msra.mxu0 %v8719_v1  ;;  %5417 = vmatpush1.bf16.msra.mxu1 %v8720_v52  ;;  %v8730_v1 = vld [vmem:[#allocation60_spill] sm:$0xff]  ;;  %v8731_v52 = vld [vmem:[#allocation61_spill] sm:$0xff] }
 0x3e1   :  { %5387 = vmatprep.subr.bf16.mxu0 %v8721_v10  ;;  %5419 = vmatprep.subr.bf16.mxu1 %v8722_v18  ;;  %v8732_v10 = vld [vmem:[#allocation62_spill] sm:$0xff]  ;;  %v8733_v18 = vld [vmem:[#allocation63_spill] sm:$0xff] }
 0x3e4   :  { %5389 = vmatpush1.bf16.msra.mxu0 %v8723_v60  ;;  %5421 = vmatpush1.bf16.msra.mxu1 %v8724_v14  ;;  %v8734_v60 = vld [vmem:[#allocation64_spill] sm:$0xff]  ;;  %v8735_v14 = vld [vmem:[#allocation65_spill] sm:$0xff] }
 0x3e5   :  { %5391 = vmatprep.subr.bf16.mxu0 %v8725_v20  ;;  %5423 = vmatprep.subr.bf16.mxu1 %v8726_v21  ;;  %v8736_v20 = vld [vmem:[#allocation66_spill] sm:$0xff]  ;;  %v8737_v21 = vld [vmem:[#allocation67_spill] sm:$0xff] }
 0x3e8   :  { %5393 = vmatpush1.bf16.msra.mxu0 %v8727_v49  ;;  %5425 = vmatpush1.bf16.msra.mxu1 %v8728_v59  ;;  %v8738_v49 = vld [vmem:[#allocation68_spill] sm:$0xff]  ;;  %v8739_v59 = vld [vmem:[#allocation69_spill] sm:$0xff] }
 0x3e9   :  { %5395 = vmatprep.subr.bf16.mxu0 %v8729_v8  ;;  %5427 = vmatprep.subr.bf16.mxu1 %v8730_v1  ;;  %v8740_v8 = vld [vmem:[#allocation70_spill] sm:$0xff]  ;;  %v8741_v1 = vld [vmem:[#allocation71_spill] sm:$0xff] }
 0x3ec   :  { %5397 = vmatpush1.bf16.msra.mxu0 %v8731_v52  ;;  %5429 = vmatpush1.bf16.msra.mxu1 %v8732_v10  ;;  %v8742_v52 = vld [vmem:[#allocation72_spill] sm:$0xff]  ;;  %v8743_v10 = vld [vmem:[#allocation73_spill] sm:$0xff] }
 0x3ed   :  { %5399 = vmatprep.subr.bf16.mxu0 %v8733_v18  ;;  %5431 = vmatprep.subr.bf16.mxu1 %v8734_v60  ;;  %v8744_v18 = vld [vmem:[#allocation74_spill] sm:$0xff]  ;;  %v8745_v60 = vld [vmem:[#allocation75_spill] sm:$0xff] }
 0x3f0   :  { %5401 = vmatpush1.bf16.msra.mxu0 %v8735_v14  ;;  %5433 = vmatpush1.bf16.msra.mxu1 %v8736_v20  ;;  %v8746_v14 = vld [vmem:[#allocation76_spill] sm:$0xff] }
 0x3f1   :  { %5403 = vmatprep.subr.bf16.mxu0 %v8737_v21  ;;  %5435 = vmatprep.subr.bf16.mxu1 %v8738_v49 }
 0x3f4   :  { %5405 = vmatpush1.bf16.msra.mxu0 %v8739_v59  ;;  %5437 = vmatpush1.bf16.msra.mxu1 %v8740_v8 }
 0x3f5   :  { %5407 = vmatprep.subr.bf16.mxu0 %v8741_v1  ;;  %5439 = vmatprep.subr.bf16.mxu1 %v8742_v52 }
 0x3f8   :  { %5409 = vmatpush1.bf16.msra.mxu0 %v8743_v10  ;;  %5441 = vmatpush1.bf16.msra.mxu1 %v8744_v18  ;;  %v8748_v18 = vld [vmem:[#allocation112_spill] sm:$0xff] }
 0x3f9   :  { %5443 = vmatprep.subr.bf16.mxu0 %v8745_v60  ;;  %5475 = vmatprep.subr.bf16.mxu1 %v8746_v14 }
 0x48e   :  { %v2017_v20 = vpop.f32.mrb[20].mxu0  ;;  %v2088_v21 = vpop.f32.mrb[20].mxu1 }
 0x48f   :  { %v2093_v49 = vadd.f32 %v2017_v20, %v8747_v4  ;;  %v2019_v56 = vpop.f32.mrb[21].mxu0  ;;  %v2090_v59 = vpop.f32.mrb[21].mxu1  ;;  %v2095_v42 = vadd.f32 %v2088_v21, %v8748_v18 }
 0x490   :  { %v2094_v8 = vadd.f32 %v2019_v56, %v7393_v37  ;;  %v2096_v10 = vadd.f32 %v2090_v59, %v8685_v26 }
 0x491   :  { %v4674_v47 = vmul.f32 -1.442695, %v2093_v49 }
 0x492   :  { %v4675_v1 = vmul.f32 -1.442695, %v2094_v8  ;;  %v4676_v52 = vmul.f32 -1.442695, %v2096_v10 }
 0x493   :  { %6461 = vpow2.f32 %v4674_v47 }
 0x494   :  { %6463 = vpow2.f32 %v4675_v1 }
 0x495   :  { %6465 = vpow2.f32 %v4676_v52 }
 0x496   :  { %6467 = vtanh.f32 %v2095_v42 }
 0x49d   :  { %v6462_v60 = vpop.eup %6461 }
 0x49e   :  { %v6464_v38 = vpop.eup %6463  ;;  %v2100_v14 = vadd.f32 1.0, %v6462_v60 }
 0x49f   :  { %v2106_v34 = vadd.f32 1.0, %v6464_v38  ;;  %v6466_v20 = vpop.eup %6465 }
 0x4a0   :  { %6469 = vrcp.f32 %v2100_v14  ;;  %v6468_v4 = vpop.eup %6467  ;;  %v2113_v47 = vadd.f32 1.0, %v6466_v20 }
 0x4a1   :  { %6471 = vrcp.f32 %v2106_v34 }
 0x4a2   :  { %6473 = vrcp.f32 %v2113_v47 }
 0x4aa   :  { %v6470_v56 = vpop.eup %6469 }
 0x4ab   :  { %v6472_v49 = vpop.eup %6471  ;;  %v2117_v8 = vmul.f32 %v6470_v56, %v6468_v4 }
 0x4ac   :  { %v2116_v1 = vmul.f32 %v6472_v49, %v7538_v50  ;;  %v6474_v50 = vpop.eup %6473  ;;  %v8749_v49 = vld [vmem:[#allocation108_spill] sm:$0xff] }
 0x4ae   :  { %v7676_v59 = vadd.f32 %v2117_v8, %v2116_v1  ;;  %v2196_v10 = vpop.f32.mrb[6].mxu0  ;;  %v2267_v21 = vpop.f32.mrb[6].mxu1  ;;  %v1622_v8 = vadd.f32 %v7545_v11, %v8749_v49  ;;  %v8751_v11 = vld [vmem:[#allocation80_spill] sm:$0xff] }
 0x4af   :  { %v6280_v60 = vadd.f32 %v2196_v10, %v8687_v41  ;;  %v2198_v52 = vpop.f32.mrb[7].mxu0  ;;  %v2269_v42 = vpop.f32.mrb[7].mxu1  ;;  %v6296_v47 = vadd.f32 %v2267_v21, %v7287_v5  ;;  %v8752_v21 = vld [vmem:[#allocation81_spill] sm:$0xff]  ;;  %v8759_v49 = vld [vmem:[#allocation88_spill] sm:$0xff] }
 0x4b0   :  { %v6281_v38 = vadd.f32 %v2198_v52, %v8625_v54  ;;  %6475 = vtanh.f32 %v7676_v59  ;;  %v6297_v4 = vadd.f32 %v2269_v42, %v8626_v30 }
 0x4b1   :  { %v4678_v34 = vmul.f32 -1.442695, %v6280_v60 }
 0x4b2   :  { %v4679_v14 = vmul.f32 -1.442695, %v6281_v38  ;;  %v4680_v56 = vmul.f32 -1.442695, %v6297_v4  ;;  %v8750_v38 = vld [vmem:[#allocation79_spill] sm:$0xff]  ;;  %v8755_v4 = vld [vmem:[#allocation84_spill] sm:$0xff] }
 0x4b3   :  { %6477 = vpow2.f32 %v4678_v34  ;;  %v8753_v34 = vld [vmem:[#allocation82_spill] sm:$0xff] }
 0x4b4   :  { %6479 = vpow2.f32 %v4679_v14  ;;  %v8754_v14 = vld [vmem:[#allocation83_spill] sm:$0xff] }
 0x4b5   :  { %6481 = vpow2.f32 %v4680_v56  ;;  %v8758_v56 = vld [vmem:[#allocation87_spill] sm:$0xff] }
 0x4b6   :  { %6483 = vtanh.f32 %v6296_v47 }
 0x4ba   :  { %v6476_v20 = vpop.eup %6475 }
 0x4bb   :  { %v2120_v1 = vmul.f32 %v6476_v20, %v6474_v50  ;;  %v8756_v50 = vld [vmem:[#allocation85_spill] sm:$0xff]  ;;  %v8757_v20 = vld [vmem:[#allocation86_spill] sm:$0xff] }
 0x4bd   :  { %v6478_v10 = vpop.eup %6477  ;;  %v7685_v41 = vadd.f32 %v2120_v1, %v1622_v8  ;;  %2373 = vmatmul.mubr.f32.vlgmr.msra.gmra.mrb[22].mxu0 %v2120_v1  ;;  %2444 = vmatmul.mubr.f32.vlgmr.msra.gmra.mrb[22].mxu1 %v2120_v1 }
 0x4be   :  { %v6480_v60 = vpop.eup %6479  ;;  %v2279_v52 = vadd.f32 1.0, %v6478_v10  ;;  %5445 = vmatpush1.bf16.msra.mxu0 %v8688_v62  ;;  %5477 = vmatpush1.bf16.msra.mxu1 %v8689_v7  ;;  %v8760_v10 = vld [vmem:[#allocation89_spill] sm:$0xff] }
 0x4bf   :  { %v2285_v42 = vadd.f32 1.0, %v6480_v60  ;;  %5447 = vmatprep.subr.bf16.mxu0 %v8750_v38  ;;  %5479 = vmatprep.subr.bf16.mxu1 %v8751_v11  ;;  %v6482_v8 = vpop.eup %6481  ;;  %v8761_v60 = vld [vmem:[#allocation90_spill] sm:$0xff] }
 0x4c0   :  { %6485 = vrcp.f32 %v2279_v52  ;;  %2514 = vmatprep.mubr.f32.mxu0 %v8563_v33  ;;  %2585 = vmatprep.mubr.f32.mxu1 %v8563_v33  ;;  %v6484_v47 = vpop.eup %6483 }
 0x4c1   :  { %6487 = vrcp.f32 %v2285_v42 }
 0x4c2   :  { %5449 = vmatpush1.bf16.msra.mxu0 %v8752_v21  ;;  %5481 = vmatpush1.bf16.msra.mxu1 %v8753_v34 }
 0x4c3   :  { %5451 = vmatprep.subr.bf16.mxu0 %v8754_v14  ;;  %5483 = vmatprep.subr.bf16.mxu1 %v8755_v4  ;;  %v2292_v14 = vadd.f32 1.0, %v6482_v8 }
 0x4c5   :  { %6489 = vrcp.f32 %v2292_v14 }
 0x4c6   :  { %5453 = vmatpush1.bf16.msra.mxu0 %v8756_v50  ;;  %5485 = vmatpush1.bf16.msra.mxu1 %v8757_v20  ;;  %v7706_v50 = vpop.permute.xlu1 %2302 }
 0x4c7   :  { %5455 = vmatprep.subr.bf16.mxu0 %v8758_v56  ;;  %5487 = vmatprep.subr.bf16.mxu1 %v8759_v49  ;;  %vm2304_vm12 = vcmp.eq.s32.totalorder %v7706_v50, 1  ;;  %v8784_v50 = vld [vmem:[#allocation50_spill] sm:$0xff] }
 0x4ca   :  { %v6486_v1 = vpop.eup %6485  ;;  %5457 = vmatpush1.bf16.msra.mxu0 %v8760_v10  ;;  %5489 = vmatpush1.bf16.msra.mxu1 %v8761_v60 }
 0x4cb   :  { %v6488_v52 = vpop.eup %6487  ;;  %v2296_v42 = vmul.f32 %v6486_v1, %v6484_v47  ;;  %5459 = vmatprep.subr.bf16.mxu0 %v8642_v13  ;;  %5491 = vmatprep.subr.bf16.mxu1 %v8643_v17  ;;  %v8763_v47 = vld [vmem:[#allocation31_spill] sm:$0xff]  ;;  %v8764_v1 = vld [vmem:[#allocation32_spill] sm:$0xff] }
 0x4cc   :  { %v2295_v20 = vmul.f32 %v6488_v52, %v7578_v23  ;;  %v8765_v52 = vld [vmem:[#allocation33_spill] sm:$0xff] }
 0x4ce   :  { %v2297_v56 = vadd.f32 %v2296_v42, %v2295_v20  ;;  %5461 = vmatpush1.bf16.msra.mxu0 %v8702_v57  ;;  %5493 = vmatpush1.bf16.msra.mxu1 %v8703_v46  ;;  %v8766_v42 = vld [vmem:[#allocation34_spill] sm:$0xff] }
 0x4cf   :  { %5463 = vmatprep.subr.bf16.mxu0 %v8704_v28  ;;  %5495 = vmatprep.subr.bf16.mxu1 %v8705_v2  ;;  %v6490_v14 = vpop.eup %6489 }
 0x4d0   :  { %6491 = vtanh.f32 %v2297_v56  ;;  %v7716_v8 = vsel %vm2304_vm12, %v2297_v56, %v7578_v23  ;;  %v8762_v56 = vld [vmem:[#allocation30_spill] sm:$0xff] }
 0x4d2   :  { %5465 = vmatpush1.bf16.msra.mxu0 %v8706_v27  ;;  %5497 = vmatpush1.bf16.msra.mxu1 %v8707_v63 }
 0x4d3   :  { %5467 = vmatprep.subr.bf16.mxu0 %v8708_v32  ;;  %5499 = vmatprep.subr.bf16.mxu1 %v8651_v0 }
 0x4d6   :  { %5469 = vmatpush1.bf16.msra.mxu0 %v8652_v40  ;;  %5501 = vmatpush1.bf16.msra.mxu1 %v8653_v15 }
 0x4d7   :  { %5471 = vmatprep.subr.bf16.mxu0 %v8709_v44  ;;  %5503 = vmatprep.subr.bf16.mxu1 %v8655_v31 }
 0x4da   :  { %v6492_v20 = vpop.eup %6491  ;;  %5473 = vmatpush1.bf16.msra.mxu0 %v8656_v24  ;;  %5505 = vmatpush1.bf16.msra.mxu1 %v8657_v35 }
 0x4db   :  { %v2299_v23 = vmul.f32 %v6492_v20, %v6490_v14  ;;  %5507 = vmatprep.subr.bf16.mxu0 %v8658_v45  ;;  %5539 = vmatprep.subr.bf16.mxu1 %v8659_v53  ;;  %v8767_v14 = vld [vmem:[#allocation35_spill] sm:$0xff]  ;;  %v8768_v20 = vld [vmem:[#allocation36_spill] sm:$0xff] }
 0x4dd   :  { %4681 = vmatmul.mubr.msk.f32.vlgmr.msra.gmra.mrb[22].mxu0 %vm2304_vm12, %v2299_v23  ;;  %4682 = vmatmul.mubr.msk.f32.vlgmr.msra.gmra.mrb[22].mxu1 %vm2304_vm12, %v2299_v23 }
 0x4de   :  { %5509 = vmatpush1.bf16.msra.mxu0 %v6894_v36  ;;  %5541 = vmatpush1.bf16.msra.mxu1 %v6897_v39 }
 0x4df   :  { %5511 = vmatprep.subr.bf16.mxu0 %v6900_v43  ;;  %5543 = vmatprep.subr.bf16.mxu1 %v6906_v48 }
 0x4e0   :  { %2693 = vmatprep.mubr.f32.mxu0 %v8563_v33  ;;  %2764 = vmatprep.mubr.f32.mxu1 %v8563_v33 }
 0x4e2   :  { %5513 = vmatpush1.bf16.msra.mxu0 %v6910_v51  ;;  %5545 = vmatpush1.bf16.msra.mxu1 %v6914_v55 }
 0x4e3   :  { %5515 = vmatprep.subr.bf16.mxu0 %v6918_v58  ;;  %5547 = vmatprep.subr.bf16.mxu1 %v6922_v61 }
 0x4e6   :  { %5517 = vmatpush1.bf16.msra.mxu0 %v6929_v3  ;;  %5549 = vmatpush1.bf16.msra.mxu1 %v6933_v6 }
 0x4e7   :  { %5519 = vmatprep.subr.bf16.mxu0 %v6937_v9  ;;  %5551 = vmatprep.subr.bf16.mxu1 %v6941_v12 }
 0x4ea   :  { %5521 = vmatpush1.bf16.msra.mxu0 %v6948_v16  ;;  %5553 = vmatpush1.bf16.msra.mxu1 %v6952_v19  ;;  %v8769_v19 = vld [vmem:[#allocation37_spill] sm:$0xff] }
 0x4eb   :  { %5523 = vmatprep.subr.bf16.mxu0 %v6956_v22  ;;  %5555 = vmatprep.subr.bf16.mxu1 %v6960_v25  ;;  %v8770_v22 = vld [vmem:[#allocation38_spill] sm:$0xff]  ;;  %v8771_v25 = vld [vmem:[#allocation39_spill] sm:$0xff] }
 0x4ee   :  { %5525 = vmatpush1.bf16.msra.mxu0 %v6967_v29  ;;  %5557 = vmatpush1.bf16.msra.mxu1 %v8762_v56  ;;  %v8772_v29 = vld [vmem:[#allocation40_spill] sm:$0xff]  ;;  %v8773_v56 = vld [vmem:[#allocation41_spill] sm:$0xff] }
 0x4ef   :  { %5527 = vmatprep.subr.bf16.mxu0 %v8763_v47  ;;  %5559 = vmatprep.subr.bf16.mxu1 %v8764_v1  ;;  %v8774_v47 = vld [vmem:[#allocation42_spill] sm:$0xff]  ;;  %v8775_v1 = vld [vmem:[#allocation43_spill] sm:$0xff] }
 0x4f2   :  { %5529 = vmatpush1.bf16.msra.mxu0 %v8765_v52  ;;  %5561 = vmatpush1.bf16.msra.mxu1 %v8766_v42  ;;  %v8776_v52 = vld [vmem:[#allocation44_spill] sm:$0xff]  ;;  %v8777_v42 = vld [vmem:[#allocation91_spill] sm:$0xff] }
 0x4f3   :  { %5531 = vmatprep.subr.bf16.mxu0 %v8767_v14  ;;  %5563 = vmatprep.subr.bf16.mxu1 %v8768_v20  ;;  %v7771_v20 = vsel %vm2304_vm12, %v2299_v23, %v8777_v42  ;;  %v8785_v23 = vld [vmem:[#allocation51_spill] sm:$0xff]  ;;  %v8786_v42 = vld [vmem:[#allocation52_spill] sm:$0xff] }
 0x4f4   :  { %8778 = vst [vmem:[#allocation92_spill] sm:$0xff] %v7771_v20 }
 0x4f6   :  { %5533 = vmatpush1.bf16.msra.mxu0 %v8769_v19  ;;  %5565 = vmatpush1.bf16.msra.mxu1 %v8770_v22  ;;  %v8793_v22 = vld [vmem:[#allocation59_spill] sm:$0xff]  ;;  %v8811_v19 = vld [vmem:[#allocation110_spill] sm:$0xff] }
 0x4f7   :  { %5535 = vmatprep.subr.bf16.mxu0 %v8771_v25  ;;  %5567 = vmatprep.subr.bf16.mxu1 %v8772_v29  ;;  %v8779_v25 = vld [vmem:[#allocation45_spill] sm:$0xff]  ;;  %v8780_v29 = vld [vmem:[#allocation46_spill] sm:$0xff] }
 0x4fa   :  { %5537 = vmatpush1.bf16.msra.mxu0 %v8773_v56  ;;  %5569 = vmatpush1.bf16.msra.mxu1 %v8774_v47  ;;  %v8781_v56 = vld [vmem:[#allocation47_spill] sm:$0xff]  ;;  %v8782_v47 = vld [vmem:[#allocation48_spill] sm:$0xff] }
 0x4fb   :  { %5571 = vmatprep.subr.bf16.mxu0 %v8775_v1  ;;  %5603 = vmatprep.subr.bf16.mxu1 %v8776_v52  ;;  %v8783_v52 = vld [vmem:[#allocation49_spill] sm:$0xff]  ;;  %v8792_v1 = vld [vmem:[#allocation58_spill] sm:$0xff] }
 0x4fd   :  { %2694 = vmatmul.mubr.f32.vlgmr.msra.gmra.mrb[8].mxu0 %v7771_v20  ;;  %2765 = vmatmul.mubr.f32.vlgmr.msra.gmra.mrb[8].mxu1 %v7771_v20  ;;  %v8787_v20 = vld [vmem:[#allocation53_spill] sm:$0xff] }
 0x4fe   :  { %5573 = vmatpush1.bf16.msra.mxu0 %v8779_v25  ;;  %5605 = vmatpush1.bf16.msra.mxu1 %v8780_v29  ;;  %v8788_v25 = vld [vmem:[#allocation54_spill] sm:$0xff]  ;;  %v8789_v29 = vld [vmem:[#allocation55_spill] sm:$0xff] }
 0x4ff   :  { %5575 = vmatprep.subr.bf16.mxu0 %v8781_v56  ;;  %5607 = vmatprep.subr.bf16.mxu1 %v8782_v47  ;;  %v8790_v56 = vld [vmem:[#allocation56_spill] sm:$0xff]  ;;  %v8791_v47 = vld [vmem:[#allocation57_spill] sm:$0xff] }
 0x500   :  { %2871 = vmatprep.mubr.f32.mxu0 %v8563_v33  ;;  %2942 = vmatprep.mubr.f32.mxu1 %v8563_v33 }
 0x502   :  { %5577 = vmatpush1.bf16.msra.mxu0 %v8783_v52  ;;  %5609 = vmatpush1.bf16.msra.mxu1 %v8784_v50  ;;  %v8794_v52 = vld [vmem:[#allocation60_spill] sm:$0xff]  ;;  %v8795_v50 = vld [vmem:[#allocation61_spill] sm:$0xff] }
 0x503   :  { %5579 = vmatprep.subr.bf16.mxu0 %v8785_v23  ;;  %5611 = vmatprep.subr.bf16.mxu1 %v8786_v42  ;;  %v8796_v23 = vld [vmem:[#allocation62_spill] sm:$0xff]  ;;  %v8797_v42 = vld [vmem:[#allocation63_spill] sm:$0xff] }
 0x506   :  { %5581 = vmatpush1.bf16.msra.mxu0 %v8787_v20  ;;  %5613 = vmatpush1.bf16.msra.mxu1 %v8788_v25  ;;  %v8798_v20 = vld [vmem:[#allocation64_spill] sm:$0xff]  ;;  %v8799_v25 = vld [vmem:[#allocation65_spill] sm:$0xff] }
 0x507   :  { %5583 = vmatprep.subr.bf16.mxu0 %v8789_v29  ;;  %5615 = vmatprep.subr.bf16.mxu1 %v8790_v56  ;;  %v8800_v29 = vld [vmem:[#allocation66_spill] sm:$0xff]  ;;  %v8801_v56 = vld [vmem:[#allocation67_spill] sm:$0xff] }
 0x50a   :  { %5585 = vmatpush1.bf16.msra.mxu0 %v8791_v47  ;;  %5617 = vmatpush1.bf16.msra.mxu1 %v8792_v1  ;;  %v8802_v47 = vld [vmem:[#allocation68_spill] sm:$0xff]  ;;  %v8803_v1 = vld [vmem:[#allocation69_spill] sm:$0xff] }
 0x50b   :  { %5587 = vmatprep.subr.bf16.mxu0 %v8793_v22  ;;  %5619 = vmatprep.subr.bf16.mxu1 %v8794_v52  ;;  %v8804_v22 = vld [vmem:[#allocation70_spill] sm:$0xff]  ;;  %v8805_v52 = vld [vmem:[#allocation71_spill] sm:$0xff] }
 0x50e   :  { %5589 = vmatpush1.bf16.msra.mxu0 %v8795_v50  ;;  %5621 = vmatpush1.bf16.msra.mxu1 %v8796_v23  ;;  %v8806_v50 = vld [vmem:[#allocation72_spill] sm:$0xff]  ;;  %v8807_v23 = vld [vmem:[#allocation73_spill] sm:$0xff] }
 0x50f   :  { %5591 = vmatprep.subr.bf16.mxu0 %v8797_v42  ;;  %5623 = vmatprep.subr.bf16.mxu1 %v8798_v20  ;;  %v8808_v42 = vld [vmem:[#allocation74_spill] sm:$0xff]  ;;  %v8809_v20 = vld [vmem:[#allocation75_spill] sm:$0xff] }
 0x512   :  { %5593 = vmatpush1.bf16.msra.mxu0 %v8799_v25  ;;  %5625 = vmatpush1.bf16.msra.mxu1 %v8800_v29  ;;  %v8810_v25 = vld [vmem:[#allocation76_spill] sm:$0xff] }
 0x513   :  { %5595 = vmatprep.subr.bf16.mxu0 %v8801_v56  ;;  %5627 = vmatprep.subr.bf16.mxu1 %v8802_v47 }
 0x516   :  { %5597 = vmatpush1.bf16.msra.mxu0 %v8803_v1  ;;  %5629 = vmatpush1.bf16.msra.mxu1 %v8804_v22 }
 0x517   :  { %5599 = vmatprep.subr.bf16.mxu0 %v8805_v52  ;;  %5631 = vmatprep.subr.bf16.mxu1 %v8806_v50 }
 0x51a   :  { %5601 = vmatpush1.bf16.msra.mxu0 %v8807_v23  ;;  %5633 = vmatpush1.bf16.msra.mxu1 %v8808_v42 }
 0x51b   :  { %5635 = vmatprep.subr.bf16.mxu0 %v8809_v20  ;;  %5667 = vmatprep.subr.bf16.mxu1 %v8810_v25 }
 0x5b0   :  { %v2516_v29 = vpop.f32.mrb[22].mxu0  ;;  %v2587_v56 = vpop.f32.mrb[22].mxu1 }
 0x5b1   :  { %v2592_v47 = vadd.f32 %v2516_v29, %v8811_v19  ;;  %v2518_v14 = vpop.f32.mrb[23].mxu0  ;;  %v2589_v1 = vpop.f32.mrb[23].mxu1  ;;  %v2594_v42 = vadd.f32 %v2587_v56, %v8748_v18  ;;  %v8812_v18 = vld [vmem:[#allocation107_spill] sm:$0xff] }
 0x5b2   :  { %v2593_v22 = vadd.f32 %v2518_v14, %v7393_v37  ;;  %v2595_v23 = vadd.f32 %v2589_v1, %v8685_v26 }
 0x5b3   :  { %v4683_v16 = vmul.f32 -1.442695, %v2592_v47 }
 0x5b4   :  { %v4684_v52 = vmul.f32 -1.442695, %v2593_v22  ;;  %v4685_v50 = vmul.f32 -1.442695, %v2595_v23 }
 0x5b5   :  { %6493 = vpow2.f32 %v4683_v16 }
 0x5b6   :  { %6495 = vpow2.f32 %v4684_v52 }
 0x5b7   :  { %6497 = vpow2.f32 %v4685_v50 }
 0x5b8   :  { %6499 = vtanh.f32 %v2594_v42 }
 0x5bf   :  { %v6494_v20 = vpop.eup %6493 }
 0x5c0   :  { %v6496_v12 = vpop.eup %6495  ;;  %v2599_v25 = vadd.f32 1.0, %v6494_v20 }
 0x5c1   :  { %v2605_v9 = vadd.f32 1.0, %v6496_v12  ;;  %v6498_v29 = vpop.eup %6497 }
 0x5c2   :  { %6501 = vrcp.f32 %v2599_v25  ;;  %v6500_v19 = vpop.eup %6499  ;;  %v2612_v16 = vadd.f32 1.0, %v6498_v29 }
 0x5c3   :  { %6503 = vrcp.f32 %v2605_v9 }
 0x5c4   :  { %6505 = vrcp.f32 %v2612_v16 }
 0x5cc   :  { %v6502_v14 = vpop.eup %6501 }
 0x5cd   :  { %v6504_v47 = vpop.eup %6503  ;;  %v2616_v22 = vmul.f32 %v6502_v14, %v6500_v19 }
 0x5ce   :  { %v2615_v52 = vmul.f32 %v6504_v47, %v7676_v59  ;;  %v6506_v59 = vpop.eup %6505 }
 0x5d0   :  { %v7814_v1 = vadd.f32 %v2616_v22, %v2615_v52  ;;  %v2695_v23 = vpop.f32.mrb[8].mxu0  ;;  %v2766_v56 = vpop.f32.mrb[8].mxu1 }
 0x5d1   :  { %v6282_v20 = vadd.f32 %v2695_v23, %v8812_v18  ;;  %v2697_v50 = vpop.f32.mrb[9].mxu0  ;;  %v2768_v42 = vpop.f32.mrb[9].mxu1  ;;  %v6298_v47 = vadd.f32 %v2766_v56, %v7287_v5  ;;  %v8814_v56 = vld [vmem:[#allocation85_spill] sm:$0xff] }
 0x5d2   :  { %v6283_v12 = vadd.f32 %v2697_v50, %v8625_v54  ;;  %6507 = vtanh.f32 %v7814_v1  ;;  %v6299_v19 = vadd.f32 %v2768_v42, %v8626_v30  ;;  %v8815_v42 = vld [vmem:[#allocation86_spill] sm:$0xff] }
 0x5d3   :  { %v4687_v9 = vmul.f32 -1.442695, %v6282_v20 }
 0x5d4   :  { %v4688_v25 = vmul.f32 -1.442695, %v6283_v12  ;;  %v4689_v14 = vmul.f32 -1.442695, %v6299_v19  ;;  %v8816_v12 = vld [vmem:[#allocation87_spill] sm:$0xff] }
 0x5d5   :  { %6509 = vpow2.f32 %v4687_v9 }
 0x5d6   :  { %6511 = vpow2.f32 %v4688_v25 }
 0x5d7   :  { %6513 = vpow2.f32 %v4689_v14 }
 0x5d8   :  { %6515 = vtanh.f32 %v6298_v47 }
 0x5dc   :  { %v6508_v29 = vpop.eup %6507 }
 0x5dd   :  { %v2619_v22 = vmul.f32 %v6508_v29, %v6506_v59 }
 0x5df   :  { %v6510_v16 = vpop.eup %6509  ;;  %2872 = vmatmul.mubr.f32.vlgmr.msra.gmra.mrb[24].mxu0 %v2619_v22  ;;  %2943 = vmatmul.mubr.f32.vlgmr.msra.gmra.mrb[24].mxu1 %v2619_v22  ;;  %v7822_v52 = vadd.f32 %v2619_v22, %v7685_v41  ;;  %v8813_v41 = vld [vmem:[#allocation83_spill] sm:$0xff]  ;;  %v7843_v22 = vpop.permute.xlu0 %2801 }
 0x5e0   :  { %v6512_v23 = vpop.eup %6511  ;;  %v2778_v50 = vadd.f32 1.0, %v6510_v16  ;;  %5637 = vmatpush1.bf16.msra.mxu0 %v8688_v62  ;;  %5669 = vmatpush1.bf16.msra.mxu1 %v8689_v7  ;;  %vm2803_vm13 = vcmp.eq.s32.totalorder %v7843_v22, 1  ;;  %v8846_v22 = vld [vmem:[#allocation50_spill] sm:$0xff] }
 0x5e1   :  { %v2784_v20 = vadd.f32 1.0, %v6512_v23  ;;  %5639 = vmatprep.subr.bf16.mxu0 %v8750_v38  ;;  %5671 = vmatprep.subr.bf16.mxu1 %v8751_v11  ;;  %v6514_v9 = vpop.eup %6513 }
 0x5e2   :  { %6517 = vrcp.f32 %v2778_v50  ;;  %3013 = vmatprep.mubr.f32.mxu0 %v8563_v33  ;;  %3084 = vmatprep.mubr.f32.mxu1 %v8563_v33  ;;  %v6516_v25 = vpop.eup %6515  ;;  %v2791_v14 = vadd.f32 1.0, %v6514_v9  ;;  %v8817_v9 = vld [vmem:[#allocation23_spill] sm:$0xff] }
 0x5e3   :  { %6519 = vrcp.f32 %v2784_v20 }
 0x5e4   :  { %5641 = vmatpush1.bf16.msra.mxu0 %v8752_v21  ;;  %5673 = vmatpush1.bf16.msra.mxu1 %v8753_v34  ;;  %6521 = vrcp.f32 %v2791_v14  ;;  %v8822_v14 = vld [vmem:[#allocation28_spill] sm:$0xff] }
 0x5e5   :  { %5643 = vmatprep.subr.bf16.mxu0 %v8813_v41  ;;  %5675 = vmatprep.subr.bf16.mxu1 %v8755_v4 }
 0x5e8   :  { %5645 = vmatpush1.bf16.msra.mxu0 %v8814_v56  ;;  %5677 = vmatpush1.bf16.msra.mxu1 %v8815_v42 }
 0x5e9   :  { %5647 = vmatprep.subr.bf16.mxu0 %v8816_v12  ;;  %5679 = vmatprep.subr.bf16.mxu1 %v8759_v49 }
 0x5ec   :  { %v6518_v19 = vpop.eup %6517  ;;  %5649 = vmatpush1.bf16.msra.mxu0 %v8760_v10  ;;  %5681 = vmatpush1.bf16.msra.mxu1 %v8761_v60 }
 0x5ed   :  { %v6520_v59 = vpop.eup %6519  ;;  %v2795_v29 = vmul.f32 %v6518_v19, %v6516_v25  ;;  %5651 = vmatprep.subr.bf16.mxu0 %v8642_v13  ;;  %5683 = vmatprep.subr.bf16.mxu1 %v8643_v17  ;;  %v8818_v25 = vld [vmem:[#allocation24_spill] sm:$0xff]  ;;  %v8819_v19 = vld [vmem:[#allocation25_spill] sm:$0xff] }
 0x5ee   :  { %v2794_v47 = vmul.f32 %v6520_v59, %v7716_v8  ;;  %v6522_v50 = vpop.eup %6521  ;;  %v8820_v59 = vld [vmem:[#allocation26_spill] sm:$0xff] }
 0x5f0   :  { %v2796_v16 = vadd.f32 %v2795_v29, %v2794_v47  ;;  %5653 = vmatpush1.bf16.msra.mxu0 %v8702_v57  ;;  %5685 = vmatpush1.bf16.msra.mxu1 %v8703_v46  ;;  %v8821_v29 = vld [vmem:[#allocation27_spill] sm:$0xff]  ;;  %v8823_v47 = vld [vmem:[#allocation29_spill] sm:$0xff] }
 0x5f1   :  { %5655 = vmatprep.subr.bf16.mxu0 %v8704_v28  ;;  %5687 = vmatprep.subr.bf16.mxu1 %v8705_v2 }
 0x5f2   :  { %6523 = vtanh.f32 %v2796_v16  ;;  %v7853_v23 = vsel %vm2803_vm13, %v2796_v16, %v7716_v8  ;;  %v8824_v16 = vld [vmem:[#allocation30_spill] sm:$0xff] }
 0x5f4   :  { %5657 = vmatpush1.bf16.msra.mxu0 %v8706_v27  ;;  %5689 = vmatpush1.bf16.msra.mxu1 %v8707_v63 }
 0x5f5   :  { %5659 = vmatprep.subr.bf16.mxu0 %v8708_v32  ;;  %5691 = vmatprep.subr.bf16.mxu1 %v8651_v0 }
 0x5f8   :  { %5661 = vmatpush1.bf16.msra.mxu0 %v8652_v40  ;;  %5693 = vmatpush1.bf16.msra.mxu1 %v8653_v15 }
 0x5f9   :  { %5663 = vmatprep.subr.bf16.mxu0 %v8709_v44  ;;  %5695 = vmatprep.subr.bf16.mxu1 %v8655_v31 }
 0x5fc   :  { %v6524_v20 = vpop.eup %6523  ;;  %5665 = vmatpush1.bf16.msra.mxu0 %v8656_v24  ;;  %5697 = vmatpush1.bf16.msra.mxu1 %v8657_v35 }
 0x5fd   :  { %5699 = vmatprep.subr.bf16.mxu0 %v8658_v45  ;;  %5731 = vmatprep.subr.bf16.mxu1 %v8659_v53  ;;  %v2798_v8 = vmul.f32 %v6524_v20, %v6522_v50  ;;  %v8825_v50 = vld [vmem:[#allocation31_spill] sm:$0xff]  ;;  %v8826_v20 = vld [vmem:[#allocation32_spill] sm:$0xff] }
 0x5ff   :  { %4690 = vmatmul.mubr.msk.f32.vlgmr.msra.gmra.mrb[24].mxu0 %vm2803_vm13, %v2798_v8  ;;  %4691 = vmatmul.mubr.msk.f32.vlgmr.msra.gmra.mrb[24].mxu1 %vm2803_vm13, %v2798_v8 }
 0x600   :  { %5701 = vmatpush1.bf16.msra.mxu0 %v6894_v36  ;;  %5733 = vmatpush1.bf16.msra.mxu1 %v6897_v39 }
 0x601   :  { %5703 = vmatprep.subr.bf16.mxu0 %v6900_v43  ;;  %5735 = vmatprep.subr.bf16.mxu1 %v6906_v48 }
 0x602   :  { %3192 = vmatprep.mubr.f32.mxu0 %v8563_v33  ;;  %3263 = vmatprep.mubr.f32.mxu1 %v8563_v33 }
 0x604   :  { %5705 = vmatpush1.bf16.msra.mxu0 %v6910_v51  ;;  %5737 = vmatpush1.bf16.msra.mxu1 %v6914_v55 }
 0x605   :  { %5707 = vmatprep.subr.bf16.mxu0 %v6918_v58  ;;  %5739 = vmatprep.subr.bf16.mxu1 %v6922_v61 }
 0x608   :  { %5709 = vmatpush1.bf16.msra.mxu0 %v6929_v3  ;;  %5741 = vmatpush1.bf16.msra.mxu1 %v6933_v6  ;;  %v8827_v6 = vld [vmem:[#allocation33_spill] sm:$0xff] }
 0x609   :  { %5711 = vmatprep.subr.bf16.mxu0 %v8817_v9  ;;  %5743 = vmatprep.subr.bf16.mxu1 %v8818_v25  ;;  %v8828_v9 = vld [vmem:[#allocation34_spill] sm:$0xff]  ;;  %v8829_v25 = vld [vmem:[#allocation35_spill] sm:$0xff] }
 0x60c   :  { %5713 = vmatpush1.bf16.msra.mxu0 %v8819_v19  ;;  %5745 = vmatpush1.bf16.msra.mxu1 %v8820_v59  ;;  %v8830_v19 = vld [vmem:[#allocation36_spill] sm:$0xff]  ;;  %v8831_v59 = vld [vmem:[#allocation37_spill] sm:$0xff] }
 0x60d   :  { %5715 = vmatprep.subr.bf16.mxu0 %v8821_v29  ;;  %5747 = vmatprep.subr.bf16.mxu1 %v8822_v14  ;;  %v8832_v29 = vld [vmem:[#allocation38_spill] sm:$0xff]  ;;  %v8833_v14 = vld [vmem:[#allocation39_spill] sm:$0xff] }
 0x610   :  { %5717 = vmatpush1.bf16.msra.mxu0 %v8823_v47  ;;  %5749 = vmatpush1.bf16.msra.mxu1 %v8824_v16  ;;  %v8834_v47 = vld [vmem:[#allocation40_spill] sm:$0xff]  ;;  %v8835_v16 = vld [vmem:[#allocation41_spill] sm:$0xff] }
 0x611   :  { %5719 = vmatprep.subr.bf16.mxu0 %v8825_v50  ;;  %5751 = vmatprep.subr.bf16.mxu1 %v8826_v20  ;;  %v8836_v50 = vld [vmem:[#allocation42_spill] sm:$0xff]  ;;  %v8837_v20 = vld [vmem:[#allocation43_spill] sm:$0xff] }
 0x614   :  { %5721 = vmatpush1.bf16.msra.mxu0 %v8827_v6  ;;  %5753 = vmatpush1.bf16.msra.mxu1 %v8828_v9  ;;  %v8838_v6 = vld [vmem:[#allocation44_spill] sm:$0xff] }
 0x615   :  { %5723 = vmatprep.subr.bf16.mxu0 %v8829_v25  ;;  %5755 = vmatprep.subr.bf16.mxu1 %v8830_v19  ;;  %v8839_v9 = vld [vmem:[#allocation92_spill] sm:$0xff] }
 0x616   :  { %v7908_v19 = vsel %vm2803_vm13, %v2798_v8, %v8839_v9  ;;  %v8847_v8 = vld [vmem:[#allocation51_spill] sm:$0xff]  ;;  %v8848_v9 = vld [vmem:[#allocation52_spill] sm:$0xff] }
 0x617   :  { %8840 = vst [vmem:[#allocation100_spill] sm:$0xff] %v7908_v19 }
 0x618   :  { %5725 = vmatpush1.bf16.msra.mxu0 %v8831_v59  ;;  %5757 = vmatpush1.bf16.msra.mxu1 %v8832_v29  ;;  %v8855_v29 = vld [vmem:[#allocation59_spill] sm:$0xff]  ;;  %v8873_v59 = vld [vmem:[#allocation110_spill] sm:$0xff] }
 0x619   :  { %5727 = vmatprep.subr.bf16.mxu0 %v8833_v14  ;;  %5759 = vmatprep.subr.bf16.mxu1 %v8834_v47  ;;  %v8841_v14 = vld [vmem:[#allocation45_spill] sm:$0xff]  ;;  %v8842_v47 = vld [vmem:[#allocation46_spill] sm:$0xff] }
 0x61c   :  { %5729 = vmatpush1.bf16.msra.mxu0 %v8835_v16  ;;  %5761 = vmatpush1.bf16.msra.mxu1 %v8836_v50  ;;  %v8843_v16 = vld [vmem:[#allocation47_spill] sm:$0xff]  ;;  %v8844_v50 = vld [vmem:[#allocation48_spill] sm:$0xff] }
 0x61d   :  { %5763 = vmatprep.subr.bf16.mxu0 %v8837_v20  ;;  %5795 = vmatprep.subr.bf16.mxu1 %v8838_v6  ;;  %v8845_v6 = vld [vmem:[#allocation49_spill] sm:$0xff]  ;;  %v8854_v20 = vld [vmem:[#allocation58_spill] sm:$0xff] }
 0x61f   :  { %3193 = vmatmul.mubr.f32.vlgmr.msra.gmra.mrb[10].mxu0 %v7908_v19  ;;  %3264 = vmatmul.mubr.f32.vlgmr.msra.gmra.mrb[10].mxu1 %v7908_v19  ;;  %v8849_v19 = vld [vmem:[#allocation53_spill] sm:$0xff] }
 0x620   :  { %5765 = vmatpush1.bf16.msra.mxu0 %v8841_v14  ;;  %5797 = vmatpush1.bf16.msra.mxu1 %v8842_v47  ;;  %v8850_v14 = vld [vmem:[#allocation54_spill] sm:$0xff]  ;;  %v8851_v47 = vld [vmem:[#allocation55_spill] sm:$0xff] }
 0x621   :  { %5767 = vmatprep.subr.bf16.mxu0 %v8843_v16  ;;  %5799 = vmatprep.subr.bf16.mxu1 %v8844_v50  ;;  %v8852_v16 = vld [vmem:[#allocation56_spill] sm:$0xff]  ;;  %v8853_v50 = vld [vmem:[#allocation57_spill] sm:$0xff] }
 0x622   :  { %3370 = vmatprep.mubr.f32.mxu0 %v8563_v33  ;;  %3441 = vmatprep.mubr.f32.mxu1 %v8563_v33 }
 0x624   :  { %5769 = vmatpush1.bf16.msra.mxu0 %v8845_v6  ;;  %5801 = vmatpush1.bf16.msra.mxu1 %v8846_v22  ;;  %v8856_v6 = vld [vmem:[#allocation60_spill] sm:$0xff]  ;;  %v8857_v22 = vld [vmem:[#allocation61_spill] sm:$0xff] }
 0x625   :  { %5771 = vmatprep.subr.bf16.mxu0 %v8847_v8  ;;  %5803 = vmatprep.subr.bf16.mxu1 %v8848_v9  ;;  %v8858_v8 = vld [vmem:[#allocation62_spill] sm:$0xff]  ;;  %v8859_v9 = vld [vmem:[#allocation63_spill] sm:$0xff] }
 0x628   :  { %5773 = vmatpush1.bf16.msra.mxu0 %v8849_v19  ;;  %5805 = vmatpush1.bf16.msra.mxu1 %v8850_v14  ;;  %v8860_v19 = vld [vmem:[#allocation64_spill] sm:$0xff]  ;;  %v8861_v14 = vld [vmem:[#allocation65_spill] sm:$0xff] }
 0x629   :  { %5775 = vmatprep.subr.bf16.mxu0 %v8851_v47  ;;  %5807 = vmatprep.subr.bf16.mxu1 %v8852_v16  ;;  %v8862_v47 = vld [vmem:[#allocation66_spill] sm:$0xff]  ;;  %v8863_v16 = vld [vmem:[#allocation67_spill] sm:$0xff] }
 0x62c   :  { %5777 = vmatpush1.bf16.msra.mxu0 %v8853_v50  ;;  %5809 = vmatpush1.bf16.msra.mxu1 %v8854_v20  ;;  %v8864_v50 = vld [vmem:[#allocation68_spill] sm:$0xff]  ;;  %v8865_v20 = vld [vmem:[#allocation69_spill] sm:$0xff] }
 0x62d   :  { %5779 = vmatprep.subr.bf16.mxu0 %v8855_v29  ;;  %5811 = vmatprep.subr.bf16.mxu1 %v8856_v6  ;;  %v8866_v29 = vld [vmem:[#allocation70_spill] sm:$0xff]  ;;  %v8867_v6 = vld [vmem:[#allocation71_spill] sm:$0xff] }
 0x630   :  { %5781 = vmatpush1.bf16.msra.mxu0 %v8857_v22  ;;  %5813 = vmatpush1.bf16.msra.mxu1 %v8858_v8  ;;  %v8868_v22 = vld [vmem:[#allocation72_spill] sm:$0xff]  ;;  %v8869_v8 = vld [vmem:[#allocation73_spill] sm:$0xff] }
 0x631   :  { %5783 = vmatprep.subr.bf16.mxu0 %v8859_v9  ;;  %5815 = vmatprep.subr.bf16.mxu1 %v8860_v19  ;;  %v8870_v9 = vld [vmem:[#allocation74_spill] sm:$0xff]  ;;  %v8871_v19 = vld [vmem:[#allocation75_spill] sm:$0xff] }
 0x634   :  { %5785 = vmatpush1.bf16.msra.mxu0 %v8861_v14  ;;  %5817 = vmatpush1.bf16.msra.mxu1 %v8862_v47  ;;  %v8872_v14 = vld [vmem:[#allocation76_spill] sm:$0xff] }
 0x635   :  { %5787 = vmatprep.subr.bf16.mxu0 %v8863_v16  ;;  %5819 = vmatprep.subr.bf16.mxu1 %v8864_v50 }
 0x638   :  { %5789 = vmatpush1.bf16.msra.mxu0 %v8865_v20  ;;  %5821 = vmatpush1.bf16.msra.mxu1 %v8866_v29 }
 0x639   :  { %5791 = vmatprep.subr.bf16.mxu0 %v8867_v6  ;;  %5823 = vmatprep.subr.bf16.mxu1 %v8868_v22 }
 0x63c   :  { %5793 = vmatpush1.bf16.msra.mxu0 %v8869_v8  ;;  %5825 = vmatpush1.bf16.msra.mxu1 %v8870_v9  ;;  %v8874_v9 = vld [vmem:[#allocation112_spill] sm:$0xff] }
 0x63d   :  { %5827 = vmatprep.subr.bf16.mxu0 %v8871_v19  ;;  %5859 = vmatprep.subr.bf16.mxu1 %v8872_v14 }
 0x6d2   :  { %v3015_v47 = vpop.f32.mrb[24].mxu0  ;;  %v3086_v16 = vpop.f32.mrb[24].mxu1 }
 0x6d3   :  { %v3091_v50 = vadd.f32 %v3015_v47, %v8873_v59  ;;  %v3017_v25 = vpop.f32.mrb[25].mxu0  ;;  %v3088_v20 = vpop.f32.mrb[25].mxu1  ;;  %v3093_v61 = vadd.f32 %v3086_v16, %v8874_v9 }
 0x6d4   :  { %v3092_v29 = vadd.f32 %v3017_v25, %v7393_v37  ;;  %v3094_v8 = vadd.f32 %v3088_v20, %v8685_v26 }
 0x6d5   :  { %v4692_v3 = vmul.f32 -1.442695, %v3091_v50 }
 0x6d6   :  { %v4693_v6 = vmul.f32 -1.442695, %v3092_v29  ;;  %v4694_v22 = vmul.f32 -1.442695, %v3094_v8 }
 0x6d7   :  { %6525 = vpow2.f32 %v4692_v3 }
 0x6d8   :  { %6527 = vpow2.f32 %v4693_v6 }
 0x6d9   :  { %6529 = vpow2.f32 %v4694_v22 }
 0x6da   :  { %6531 = vtanh.f32 %v3093_v61 }
 0x6e1   :  { %v6526_v19 = vpop.eup %6525 }
 0x6e2   :  { %v6528_v58 = vpop.eup %6527  ;;  %v3098_v14 = vadd.f32 1.0, %v6526_v19 }
 0x6e3   :  { %v3104_v55 = vadd.f32 1.0, %v6528_v58  ;;  %v6530_v47 = vpop.eup %6529 }
 0x6e4   :  { %6533 = vrcp.f32 %v3098_v14  ;;  %v6532_v59 = vpop.eup %6531  ;;  %v3111_v3 = vadd.f32 1.0, %v6530_v47 }
 0x6e5   :  { %6535 = vrcp.f32 %v3104_v55 }
 0x6e6   :  { %6537 = vrcp.f32 %v3111_v3 }
 0x6ee   :  { %v6534_v25 = vpop.eup %6533 }
 0x6ef   :  { %v6536_v50 = vpop.eup %6535  ;;  %v3115_v29 = vmul.f32 %v6534_v25, %v6532_v59 }
 0x6f0   :  { %v3114_v6 = vmul.f32 %v6536_v50, %v7814_v1  ;;  %v6538_v1 = vpop.eup %6537 }
 0x6f2   :  { %v7951_v20 = vadd.f32 %v3115_v29, %v3114_v6  ;;  %v3194_v8 = vpop.f32.mrb[10].mxu0  ;;  %v3265_v16 = vpop.f32.mrb[10].mxu1 }
 0x6f3   :  { %v6284_v19 = vadd.f32 %v3194_v8, %v8812_v18  ;;  %v3196_v22 = vpop.f32.mrb[11].mxu0  ;;  %v3267_v61 = vpop.f32.mrb[11].mxu1  ;;  %v6300_v50 = vadd.f32 %v3265_v16, %v7287_v5 }
 0x6f4   :  { %v6285_v58 = vadd.f32 %v3196_v22, %v8625_v54  ;;  %6539 = vtanh.f32 %v7951_v20  ;;  %v6301_v59 = vadd.f32 %v3267_v61, %v8626_v30 }
 0x6f5   :  { %v4696_v55 = vmul.f32 -1.442695, %v6284_v19 }
 0x6f6   :  { %v4697_v14 = vmul.f32 -1.442695, %v6285_v58  ;;  %v4698_v25 = vmul.f32 -1.442695, %v6301_v59 }
 0x6f7   :  { %6541 = vpow2.f32 %v4696_v55 }
 0x6f8   :  { %6543 = vpow2.f32 %v4697_v14 }
 0x6f9   :  { %6545 = vpow2.f32 %v4698_v25 }
 0x6fa   :  { %6547 = vtanh.f32 %v6300_v50 }
 0x6fe   :  { %v6540_v47 = vpop.eup %6539 }
 0x6ff   :  { %v3118_v29 = vmul.f32 %v6540_v47, %v6538_v1  ;;  %v7980_v1 = vpop.permute.xlu1 %3300 }
 0x700   :  { %vm3302_vm14 = vcmp.eq.s32.totalorder %v7980_v1, 1  ;;  %v8909_v1 = vld [vmem:[#allocation50_spill] sm:$0xff] }
 0x701   :  { %v6542_v3 = vpop.eup %6541  ;;  %3371 = vmatmul.mubr.f32.vlgmr.msra.gmra.mrb[26].mxu0 %v3118_v29  ;;  %3442 = vmatmul.mubr.f32.vlgmr.msra.gmra.mrb[26].mxu1 %v3118_v29  ;;  %v7959_v6 = vadd.f32 %v3118_v29, %v7822_v52 }
 0x702   :  { %v6544_v8 = vpop.eup %6543  ;;  %v3277_v22 = vadd.f32 1.0, %v6542_v3  ;;  %5829 = vmatpush1.bf16.msra.mxu0 %v8688_v62  ;;  %5861 = vmatpush1.bf16.msra.mxu1 %v8689_v7  ;;  %v8875_v3 = vld [vmem:[#allocation18_spill] sm:$0xff] }
 0x703   :  { %v3283_v19 = vadd.f32 1.0, %v6544_v8  ;;  %5831 = vmatprep.subr.bf16.mxu0 %v8750_v38  ;;  %5863 = vmatprep.subr.bf16.mxu1 %v8751_v11  ;;  %v6546_v52 = vpop.eup %6545  ;;  %v8876_v8 = vld [vmem:[#allocation19_spill] sm:$0xff] }
 0x704   :  { %6549 = vrcp.f32 %v3277_v22  ;;  %3512 = vmatprep.mubr.f32.mxu0 %v8563_v33  ;;  %3583 = vmatprep.mubr.f32.mxu1 %v8563_v33  ;;  %v6548_v16 = vpop.eup %6547  ;;  %v3290_v14 = vadd.f32 1.0, %v6546_v52  ;;  %v8877_v22 = vld [vmem:[#allocation20_spill] sm:$0xff]  ;;  %v8879_v52 = vld [vmem:[#allocation22_spill] sm:$0xff] }
 0x705   :  { %6551 = vrcp.f32 %v3283_v19  ;;  %v8878_v19 = vld [vmem:[#allocation21_spill] sm:$0xff] }
 0x706   :  { %5833 = vmatpush1.bf16.msra.mxu0 %v8752_v21  ;;  %5865 = vmatpush1.bf16.msra.mxu1 %v8753_v34  ;;  %6553 = vrcp.f32 %v3290_v14  ;;  %v8884_v14 = vld [vmem:[#allocation27_spill] sm:$0xff] }
 0x707   :  { %5835 = vmatprep.subr.bf16.mxu0 %v8813_v41  ;;  %5867 = vmatprep.subr.bf16.mxu1 %v8755_v4 }
 0x70a   :  { %5837 = vmatpush1.bf16.msra.mxu0 %v8814_v56  ;;  %5869 = vmatpush1.bf16.msra.mxu1 %v8815_v42 }
 0x70b   :  { %5839 = vmatprep.subr.bf16.mxu0 %v8816_v12  ;;  %5871 = vmatprep.subr.bf16.mxu1 %v8759_v49 }
 0x70e   :  { %v6550_v61 = vpop.eup %6549  ;;  %5841 = vmatpush1.bf16.msra.mxu0 %v8760_v10  ;;  %5873 = vmatpush1.bf16.msra.mxu1 %v8761_v60 }
 0x70f   :  { %v6552_v58 = vpop.eup %6551  ;;  %v3294_v55 = vmul.f32 %v6550_v61, %v6548_v16  ;;  %5843 = vmatprep.subr.bf16.mxu0 %v8642_v13  ;;  %5875 = vmatprep.subr.bf16.mxu1 %v8643_v17  ;;  %v8880_v16 = vld [vmem:[#allocation23_spill] sm:$0xff]  ;;  %v8881_v61 = vld [vmem:[#allocation24_spill] sm:$0xff] }
 0x710   :  { %v3293_v59 = vmul.f32 %v6552_v58, %v7853_v23  ;;  %v6554_v50 = vpop.eup %6553  ;;  %v8882_v58 = vld [vmem:[#allocation25_spill] sm:$0xff] }
 0x712   :  { %v3295_v47 = vadd.f32 %v3294_v55, %v3293_v59  ;;  %5845 = vmatpush1.bf16.msra.mxu0 %v8702_v57  ;;  %5877 = vmatpush1.bf16.msra.mxu1 %v8703_v46  ;;  %v8883_v55 = vld [vmem:[#allocation26_spill] sm:$0xff]  ;;  %v8885_v59 = vld [vmem:[#allocation28_spill] sm:$0xff] }
 0x713   :  { %5847 = vmatprep.subr.bf16.mxu0 %v8704_v28  ;;  %5879 = vmatprep.subr.bf16.mxu1 %v8705_v2 }
 0x714   :  { %6555 = vtanh.f32 %v3295_v47  ;;  %v7990_v25 = vsel %vm3302_vm14, %v3295_v47, %v7853_v23  ;;  %v8886_v47 = vld [vmem:[#allocation29_spill] sm:$0xff] }
 0x716   :  { %5849 = vmatpush1.bf16.msra.mxu0 %v8706_v27  ;;  %5881 = vmatpush1.bf16.msra.mxu1 %v8707_v63 }
 0x717   :  { %5851 = vmatprep.subr.bf16.mxu0 %v8708_v32  ;;  %5883 = vmatprep.subr.bf16.mxu1 %v8651_v0 }
 0x71a   :  { %5853 = vmatpush1.bf16.msra.mxu0 %v8652_v40  ;;  %5885 = vmatpush1.bf16.msra.mxu1 %v8653_v15 }
 0x71b   :  { %5855 = vmatprep.subr.bf16.mxu0 %v8709_v44  ;;  %5887 = vmatprep.subr.bf16.mxu1 %v8655_v31 }
 0x71e   :  { %v6556_v29 = vpop.eup %6555  ;;  %5857 = vmatpush1.bf16.msra.mxu0 %v8656_v24  ;;  %5889 = vmatpush1.bf16.msra.mxu1 %v8657_v35 }
 0x71f   :  { %v3297_v23 = vmul.f32 %v6556_v29, %v6554_v50  ;;  %5891 = vmatprep.subr.bf16.mxu0 %v8658_v45  ;;  %5923 = vmatprep.subr.bf16.mxu1 %v8659_v53  ;;  %v8887_v50 = vld [vmem:[#allocation30_spill] sm:$0xff]  ;;  %v8888_v29 = vld [vmem:[#allocation31_spill] sm:$0xff] }
 0x721   :  { %4699 = vmatmul.mubr.msk.f32.vlgmr.msra.gmra.mrb[26].mxu0 %vm3302_vm14, %v3297_v23  ;;  %4700 = vmatmul.mubr.msk.f32.vlgmr.msra.gmra.mrb[26].mxu1 %vm3302_vm14, %v3297_v23 }
 0x722   :  { %5893 = vmatpush1.bf16.msra.mxu0 %v6894_v36  ;;  %5925 = vmatpush1.bf16.msra.mxu1 %v6897_v39 }
 0x723   :  { %5895 = vmatprep.subr.bf16.mxu0 %v6900_v43  ;;  %5927 = vmatprep.subr.bf16.mxu1 %v6906_v48 }
 0x724   :  { %3691 = vmatprep.mubr.f32.mxu0 %v8563_v33  ;;  %3762 = vmatprep.mubr.f32.mxu1 %v8563_v33 }
 0x726   :  { %5897 = vmatpush1.bf16.msra.mxu0 %v6910_v51  ;;  %5929 = vmatpush1.bf16.msra.mxu1 %v8875_v3 }
 0x727   :  { %5899 = vmatprep.subr.bf16.mxu0 %v8876_v8  ;;  %5931 = vmatprep.subr.bf16.mxu1 %v8877_v22 }
 0x72a   :  { %5901 = vmatpush1.bf16.msra.mxu0 %v8878_v19  ;;  %5933 = vmatpush1.bf16.msra.mxu1 %v8879_v52  ;;  %v8889_v19 = vld [vmem:[#allocation32_spill] sm:$0xff]  ;;  %v8890_v52 = vld [vmem:[#allocation33_spill] sm:$0xff] }
 0x72b   :  { %5903 = vmatprep.subr.bf16.mxu0 %v8880_v16  ;;  %5935 = vmatprep.subr.bf16.mxu1 %v8881_v61  ;;  %v8891_v16 = vld [vmem:[#allocation34_spill] sm:$0xff]  ;;  %v8892_v61 = vld [vmem:[#allocation35_spill] sm:$0xff] }
 0x72e   :  { %5905 = vmatpush1.bf16.msra.mxu0 %v8882_v58  ;;  %5937 = vmatpush1.bf16.msra.mxu1 %v8883_v55  ;;  %v8893_v58 = vld [vmem:[#allocation36_spill] sm:$0xff]  ;;  %v8894_v55 = vld [vmem:[#allocation37_spill] sm:$0xff] }
 0x72f   :  { %5907 = vmatprep.subr.bf16.mxu0 %v8884_v14  ;;  %5939 = vmatprep.subr.bf16.mxu1 %v8885_v59  ;;  %v8895_v14 = vld [vmem:[#allocation38_spill] sm:$0xff]  ;;  %v8896_v59 = vld [vmem:[#allocation39_spill] sm:$0xff] }
 0x732   :  { %5909 = vmatpush1.bf16.msra.mxu0 %v8886_v47  ;;  %5941 = vmatpush1.bf16.msra.mxu1 %v8887_v50  ;;  %v8897_v47 = vld [vmem:[#allocation40_spill] sm:$0xff]  ;;  %v8898_v50 = vld [vmem:[#allocation41_spill] sm:$0xff] }
 0x733   :  { %5911 = vmatprep.subr.bf16.mxu0 %v8888_v29  ;;  %5943 = vmatprep.subr.bf16.mxu1 %v8889_v19  ;;  %v8899_v29 = vld [vmem:[#allocation42_spill] sm:$0xff]  ;;  %v8900_v19 = vld [vmem:[#allocation43_spill] sm:$0xff] }
 0x736   :  { %5913 = vmatpush1.bf16.msra.mxu0 %v8890_v52  ;;  %5945 = vmatpush1.bf16.msra.mxu1 %v8891_v16  ;;  %v8901_v52 = vld [vmem:[#allocation44_spill] sm:$0xff] }
 0x737   :  { %5915 = vmatprep.subr.bf16.mxu0 %v8892_v61  ;;  %5947 = vmatprep.subr.bf16.mxu1 %v8893_v58  ;;  %v8902_v16 = vld [vmem:[#allocation100_spill] sm:$0xff] }
 0x738   :  { %v8045_v58 = vsel %vm3302_vm14, %v3297_v23, %v8902_v16  ;;  %v8910_v23 = vld [vmem:[#allocation51_spill] sm:$0xff]  ;;  %v8911_v16 = vld [vmem:[#allocation52_spill] sm:$0xff] }
 0x739   :  { %8903 = vst [vmem:[#allocation101_spill] sm:$0xff] %v8045_v58 }
 0x73a   :  { %5917 = vmatpush1.bf16.msra.mxu0 %v8894_v55  ;;  %5949 = vmatpush1.bf16.msra.mxu1 %v8895_v14  ;;  %v8918_v14 = vld [vmem:[#allocation59_spill] sm:$0xff]  ;;  %v8936_v55 = vld [vmem:[#allocation110_spill] sm:$0xff] }
 0x73b   :  { %5919 = vmatprep.subr.bf16.mxu0 %v8896_v59  ;;  %5951 = vmatprep.subr.bf16.mxu1 %v8897_v47  ;;  %v8904_v59 = vld [vmem:[#allocation45_spill] sm:$0xff]  ;;  %v8905_v47 = vld [vmem:[#allocation46_spill] sm:$0xff] }
 0x73e   :  { %5921 = vmatpush1.bf16.msra.mxu0 %v8898_v50  ;;  %5953 = vmatpush1.bf16.msra.mxu1 %v8899_v29  ;;  %v8906_v50 = vld [vmem:[#allocation47_spill] sm:$0xff]  ;;  %v8907_v29 = vld [vmem:[#allocation48_spill] sm:$0xff] }
 0x73f   :  { %5955 = vmatprep.subr.bf16.mxu0 %v8900_v19  ;;  %5987 = vmatprep.subr.bf16.mxu1 %v8901_v52  ;;  %v8908_v52 = vld [vmem:[#allocation49_spill] sm:$0xff]  ;;  %v8917_v19 = vld [vmem:[#allocation58_spill] sm:$0xff] }
 0x741   :  { %3692 = vmatmul.mubr.f32.vlgmr.msra.gmra.mrb[12].mxu0 %v8045_v58  ;;  %3763 = vmatmul.mubr.f32.vlgmr.msra.gmra.mrb[12].mxu1 %v8045_v58  ;;  %v8912_v58 = vld [vmem:[#allocation53_spill] sm:$0xff] }
 0x742   :  { %5957 = vmatpush1.bf16.msra.mxu0 %v8904_v59  ;;  %5989 = vmatpush1.bf16.msra.mxu1 %v8905_v47  ;;  %v8913_v59 = vld [vmem:[#allocation54_spill] sm:$0xff]  ;;  %v8914_v47 = vld [vmem:[#allocation55_spill] sm:$0xff] }
 0x743   :  { %5959 = vmatprep.subr.bf16.mxu0 %v8906_v50  ;;  %5991 = vmatprep.subr.bf16.mxu1 %v8907_v29  ;;  %v8915_v50 = vld [vmem:[#allocation56_spill] sm:$0xff]  ;;  %v8916_v29 = vld [vmem:[#allocation57_spill] sm:$0xff] }
 0x744   :  { %3869 = vmatprep.mubr.f32.mxu0 %v8563_v33  ;;  %3940 = vmatprep.mubr.f32.mxu1 %v8563_v33 }
 0x746   :  { %5961 = vmatpush1.bf16.msra.mxu0 %v8908_v52  ;;  %5993 = vmatpush1.bf16.msra.mxu1 %v8909_v1  ;;  %v8919_v52 = vld [vmem:[#allocation60_spill] sm:$0xff]  ;;  %v8920_v1 = vld [vmem:[#allocation61_spill] sm:$0xff] }
 0x747   :  { %5963 = vmatprep.subr.bf16.mxu0 %v8910_v23  ;;  %5995 = vmatprep.subr.bf16.mxu1 %v8911_v16  ;;  %v8921_v23 = vld [vmem:[#allocation62_spill] sm:$0xff]  ;;  %v8922_v16 = vld [vmem:[#allocation63_spill] sm:$0xff] }
 0x74a   :  { %5965 = vmatpush1.bf16.msra.mxu0 %v8912_v58  ;;  %5997 = vmatpush1.bf16.msra.mxu1 %v8913_v59  ;;  %v8923_v58 = vld [vmem:[#allocation64_spill] sm:$0xff]  ;;  %v8924_v59 = vld [vmem:[#allocation65_spill] sm:$0xff] }
 0x74b   :  { %5967 = vmatprep.subr.bf16.mxu0 %v8914_v47  ;;  %5999 = vmatprep.subr.bf16.mxu1 %v8915_v50  ;;  %v8925_v47 = vld [vmem:[#allocation66_spill] sm:$0xff]  ;;  %v8926_v50 = vld [vmem:[#allocation67_spill] sm:$0xff] }
 0x74e   :  { %5969 = vmatpush1.bf16.msra.mxu0 %v8916_v29  ;;  %6001 = vmatpush1.bf16.msra.mxu1 %v8917_v19  ;;  %v8927_v29 = vld [vmem:[#allocation68_spill] sm:$0xff]  ;;  %v8928_v19 = vld [vmem:[#allocation69_spill] sm:$0xff] }
 0x74f   :  { %5971 = vmatprep.subr.bf16.mxu0 %v8918_v14  ;;  %6003 = vmatprep.subr.bf16.mxu1 %v8919_v52  ;;  %v8929_v14 = vld [vmem:[#allocation70_spill] sm:$0xff]  ;;  %v8930_v52 = vld [vmem:[#allocation71_spill] sm:$0xff] }
 0x752   :  { %5973 = vmatpush1.bf16.msra.mxu0 %v8920_v1  ;;  %6005 = vmatpush1.bf16.msra.mxu1 %v8921_v23  ;;  %v8931_v1 = vld [vmem:[#allocation72_spill] sm:$0xff]  ;;  %v8932_v23 = vld [vmem:[#allocation73_spill] sm:$0xff] }
 0x753   :  { %5975 = vmatprep.subr.bf16.mxu0 %v8922_v16  ;;  %6007 = vmatprep.subr.bf16.mxu1 %v8923_v58  ;;  %v8933_v16 = vld [vmem:[#allocation74_spill] sm:$0xff]  ;;  %v8934_v58 = vld [vmem:[#allocation75_spill] sm:$0xff] }
 0x756   :  { %5977 = vmatpush1.bf16.msra.mxu0 %v8924_v59  ;;  %6009 = vmatpush1.bf16.msra.mxu1 %v8925_v47  ;;  %v8935_v59 = vld [vmem:[#allocation76_spill] sm:$0xff] }
 0x757   :  { %5979 = vmatprep.subr.bf16.mxu0 %v8926_v50  ;;  %6011 = vmatprep.subr.bf16.mxu1 %v8927_v29 }
 0x75a   :  { %5981 = vmatpush1.bf16.msra.mxu0 %v8928_v19  ;;  %6013 = vmatpush1.bf16.msra.mxu1 %v8929_v14 }
 0x75b   :  { %5983 = vmatprep.subr.bf16.mxu0 %v8930_v52  ;;  %6015 = vmatprep.subr.bf16.mxu1 %v8931_v1 }
 0x75e   :  { %5985 = vmatpush1.bf16.msra.mxu0 %v8932_v23  ;;  %6017 = vmatpush1.bf16.msra.mxu1 %v8933_v16 }
 0x75f   :  { %6019 = vmatprep.subr.bf16.mxu0 %v8934_v58  ;;  %6051 = vmatprep.subr.bf16.mxu1 %v8935_v59 }
 0x7f4   :  { %v3514_v47 = vpop.f32.mrb[26].mxu0  ;;  %v3585_v50 = vpop.f32.mrb[26].mxu1 }
 0x7f5   :  { %v3590_v29 = vadd.f32 %v3514_v47, %v8936_v55  ;;  %v3516_v61 = vpop.f32.mrb[27].mxu0  ;;  %v3587_v19 = vpop.f32.mrb[27].mxu1  ;;  %v3592_v16 = vadd.f32 %v3585_v50, %v8874_v9 }
 0x7f6   :  { %v3591_v14 = vadd.f32 %v3516_v61, %v7393_v37  ;;  %v3593_v23 = vadd.f32 %v3587_v19, %v8685_v26 }
 0x7f7   :  { %v4701_v22 = vmul.f32 -1.442695, %v3590_v29 }
 0x7f8   :  { %v4702_v52 = vmul.f32 -1.442695, %v3591_v14  ;;  %v4703_v1 = vmul.f32 -1.442695, %v3593_v23 }
 0x7f9   :  { %6557 = vpow2.f32 %v4701_v22 }
 0x7fa   :  { %6559 = vpow2.f32 %v4702_v52 }
 0x7fb   :  { %6561 = vpow2.f32 %v4703_v1 }
 0x7fc   :  { %6563 = vtanh.f32 %v3592_v16 }
 0x803   :  { %v6558_v58 = vpop.eup %6557 }
 0x804   :  { %v6560_v8 = vpop.eup %6559  ;;  %v3597_v59 = vadd.f32 1.0, %v6558_v58 }
 0x805   :  { %v3603_v3 = vadd.f32 1.0, %v6560_v8  ;;  %v6562_v47 = vpop.eup %6561 }
 0x806   :  { %6565 = vrcp.f32 %v3597_v59  ;;  %v6564_v55 = vpop.eup %6563  ;;  %v3610_v22 = vadd.f32 1.0, %v6562_v47 }
 0x807   :  { %6567 = vrcp.f32 %v3603_v3 }
 0x808   :  { %6569 = vrcp.f32 %v3610_v22 }
 0x810   :  { %v6566_v61 = vpop.eup %6565 }
 0x811   :  { %v6568_v29 = vpop.eup %6567  ;;  %v3614_v14 = vmul.f32 %v6566_v61, %v6564_v55 }
 0x812   :  { %v3613_v52 = vmul.f32 %v6568_v29, %v7951_v20  ;;  %v6570_v20 = vpop.eup %6569 }
 0x814   :  { %v8088_v19 = vadd.f32 %v3614_v14, %v3613_v52  ;;  %v3693_v23 = vpop.f32.mrb[12].mxu0  ;;  %v3764_v50 = vpop.f32.mrb[12].mxu1 }
 0x815   :  { %v6286_v58 = vadd.f32 %v3693_v23, %v8812_v18  ;;  %v3695_v1 = vpop.f32.mrb[13].mxu0  ;;  %v3766_v16 = vpop.f32.mrb[13].mxu1  ;;  %v6302_v29 = vadd.f32 %v3764_v50, %v7287_v5 }
 0x816   :  { %v6287_v8 = vadd.f32 %v3695_v1, %v8625_v54  ;;  %6571 = vtanh.f32 %v8088_v19  ;;  %v6303_v55 = vadd.f32 %v3766_v16, %v8626_v30 }
 0x817   :  { %v4705_v3 = vmul.f32 -1.442695, %v6286_v58 }
 0x818   :  { %v4706_v59 = vmul.f32 -1.442695, %v6287_v8  ;;  %v4707_v61 = vmul.f32 -1.442695, %v6303_v55  ;;  %v8116_v55 = vpop.permute.xlu0 %3799 }
 0x819   :  { %6573 = vpow2.f32 %v4705_v3  ;;  %vm3801_vm15 = vcmp.eq.s32.totalorder %v8116_v55, 1  ;;  %v8971_v55 = vld [vmem:[#allocation51_spill] sm:$0xff] }
 0x81a   :  { %6575 = vpow2.f32 %v4706_v59 }
 0x81b   :  { %6577 = vpow2.f32 %v4707_v61 }
 0x81c   :  { %6579 = vtanh.f32 %v6302_v29 }
 0x820   :  { %v6572_v47 = vpop.eup %6571 }
 0x821   :  { %v3617_v14 = vmul.f32 %v6572_v47, %v6570_v20 }
 0x823   :  { %v6574_v22 = vpop.eup %6573  ;;  %3870 = vmatmul.mubr.f32.vlgmr.msra.gmra.mrb[28].mxu0 %v3617_v14  ;;  %3941 = vmatmul.mubr.f32.vlgmr.msra.gmra.mrb[28].mxu1 %v3617_v14  ;;  %v8096_v52 = vadd.f32 %v3617_v14, %v7959_v6 }
 0x824   :  { %v6576_v23 = vpop.eup %6575  ;;  %v3776_v1 = vadd.f32 1.0, %v6574_v22  ;;  %6021 = vmatpush1.bf16.msra.mxu0 %v8688_v62  ;;  %6053 = vmatpush1.bf16.msra.mxu1 %v8689_v7  ;;  %v8939_v22 = vld [vmem:[#allocation20_spill] sm:$0xff] }
 0x825   :  { %v3782_v58 = vadd.f32 1.0, %v6576_v23  ;;  %6023 = vmatprep.subr.bf16.mxu0 %v8750_v38  ;;  %6055 = vmatprep.subr.bf16.mxu1 %v8751_v11  ;;  %v6578_v6 = vpop.eup %6577  ;;  %v8940_v23 = vld [vmem:[#allocation21_spill] sm:$0xff] }
 0x826   :  { %6581 = vrcp.f32 %v3776_v1  ;;  %4011 = vmatprep.mubr.f32.mxu0 %v8563_v33  ;;  %4082 = vmatprep.mubr.f32.mxu1 %v8563_v33  ;;  %v6580_v50 = vpop.eup %6579  ;;  %v3789_v59 = vadd.f32 1.0, %v6578_v6  ;;  %v8945_v1 = vld [vmem:[#allocation26_spill] sm:$0xff]  ;;  %v8948_v6 = vld [vmem:[#allocation29_spill] sm:$0xff] }
 0x827   :  { %6583 = vrcp.f32 %v3782_v58  ;;  %v8946_v58 = vld [vmem:[#allocation27_spill] sm:$0xff] }
 0x828   :  { %6025 = vmatpush1.bf16.msra.mxu0 %v8752_v21  ;;  %6057 = vmatpush1.bf16.msra.mxu1 %v8753_v34  ;;  %6585 = vrcp.f32 %v3789_v59  ;;  %v8953_v59 = vld [vmem:[#allocation34_spill] sm:$0xff] }
 0x829   :  { %6027 = vmatprep.subr.bf16.mxu0 %v8813_v41  ;;  %6059 = vmatprep.subr.bf16.mxu1 %v8755_v4 }
 0x82c   :  { %6029 = vmatpush1.bf16.msra.mxu0 %v8814_v56  ;;  %6061 = vmatpush1.bf16.msra.mxu1 %v8815_v42 }
 0x82d   :  { %6031 = vmatprep.subr.bf16.mxu0 %v8816_v12  ;;  %6063 = vmatprep.subr.bf16.mxu1 %v8759_v49 }
 0x830   :  { %v6582_v16 = vpop.eup %6581  ;;  %6033 = vmatpush1.bf16.msra.mxu0 %v8760_v10  ;;  %6065 = vmatpush1.bf16.msra.mxu1 %v8761_v60 }
 0x831   :  { %v6584_v8 = vpop.eup %6583  ;;  %v3793_v3 = vmul.f32 %v6582_v16, %v6580_v50  ;;  %6035 = vmatprep.subr.bf16.mxu0 %v8642_v13  ;;  %6067 = vmatprep.subr.bf16.mxu1 %v8643_v17  ;;  %v8949_v50 = vld [vmem:[#allocation30_spill] sm:$0xff]  ;;  %v8950_v16 = vld [vmem:[#allocation31_spill] sm:$0xff] }
 0x832   :  { %v3792_v20 = vmul.f32 %v6584_v8, %v7990_v25  ;;  %v6586_v29 = vpop.eup %6585  ;;  %v8951_v8 = vld [vmem:[#allocation32_spill] sm:$0xff] }
 0x834   :  { %v3794_v47 = vadd.f32 %v3793_v3, %v3792_v20  ;;  %6037 = vmatpush1.bf16.msra.mxu0 %v8702_v57  ;;  %6069 = vmatpush1.bf16.msra.mxu1 %v8703_v46  ;;  %v8952_v3 = vld [vmem:[#allocation33_spill] sm:$0xff]  ;;  %v8954_v20 = vld [vmem:[#allocation35_spill] sm:$0xff] }
 0x835   :  { %6039 = vmatprep.subr.bf16.mxu0 %v8704_v28  ;;  %6071 = vmatprep.subr.bf16.mxu1 %v8705_v2 }
 0x836   :  { %6587 = vtanh.f32 %v3794_v47  ;;  %v8127_v61 = vsel %vm3801_vm15, %v3794_v47, %v7990_v25  ;;  %v8955_v47 = vld [vmem:[#allocation36_spill] sm:$0xff] }
 0x838   :  { %6041 = vmatpush1.bf16.msra.mxu0 %v8706_v27  ;;  %6073 = vmatpush1.bf16.msra.mxu1 %v8707_v63 }
 0x839   :  { %6043 = vmatprep.subr.bf16.mxu0 %v8708_v32  ;;  %6075 = vmatprep.subr.bf16.mxu1 %v8651_v0 }
 0x83c   :  { %6045 = vmatpush1.bf16.msra.mxu0 %v8652_v40  ;;  %6077 = vmatpush1.bf16.msra.mxu1 %v8653_v15 }
 0x83d   :  { %6047 = vmatprep.subr.bf16.mxu0 %v8709_v44  ;;  %6079 = vmatprep.subr.bf16.mxu1 %v8655_v31 }
 0x840   :  { %v6588_v14 = vpop.eup %6587  ;;  %6049 = vmatpush1.bf16.msra.mxu0 %v8656_v24  ;;  %6081 = vmatpush1.bf16.msra.mxu1 %v8657_v35 }
 0x841   :  { %6083 = vmatprep.subr.bf16.mxu0 %v8658_v45  ;;  %6115 = vmatprep.subr.bf16.mxu1 %v8659_v53  ;;  %v3796_v25 = vmul.f32 %v6588_v14, %v6586_v29  ;;  %v8937_v45 = vld [vmem:[#allocation18_spill] sm:$0xff]  ;;  %v8938_v53 = vld [vmem:[#allocation19_spill] sm:$0xff]  ;;  %v8956_v29 = vld [vmem:[#allocation37_spill] sm:$0xff] }
 0x842   :  { %v8957_v14 = vld [vmem:[#allocation38_spill] sm:$0xff] }
 0x843   :  { %4708 = vmatmul.mubr.msk.f32.vlgmr.msra.gmra.mrb[28].mxu0 %vm3801_vm15, %v3796_v25  ;;  %4709 = vmatmul.mubr.msk.f32.vlgmr.msra.gmra.mrb[28].mxu1 %vm3801_vm15, %v3796_v25 }
 0x844   :  { %6085 = vmatpush1.bf16.msra.mxu0 %v6894_v36  ;;  %6117 = vmatpush1.bf16.msra.mxu1 %v6897_v39  ;;  %v8941_v36 = vld [vmem:[#allocation22_spill] sm:$0xff]  ;;  %v8942_v39 = vld [vmem:[#allocation23_spill] sm:$0xff] }
 0x845   :  { %6087 = vmatprep.subr.bf16.mxu0 %v6900_v43  ;;  %6119 = vmatprep.subr.bf16.mxu1 %v6906_v48  ;;  %v8943_v43 = vld [vmem:[#allocation24_spill] sm:$0xff]  ;;  %v8944_v48 = vld [vmem:[#allocation25_spill] sm:$0xff] }
 0x846   :  { %4190 = vmatprep.mubr.f32.mxu0 %v8563_v33  ;;  %4261 = vmatprep.mubr.f32.mxu1 %v8563_v33 }
 0x848   :  { %6089 = vmatpush1.bf16.msra.mxu0 %v6910_v51  ;;  %6121 = vmatpush1.bf16.msra.mxu1 %v8937_v45  ;;  %v8947_v51 = vld [vmem:[#allocation28_spill] sm:$0xff]  ;;  %v8958_v45 = vld [vmem:[#allocation39_spill] sm:$0xff] }
 0x849   :  { %6091 = vmatprep.subr.bf16.mxu0 %v8938_v53  ;;  %6123 = vmatprep.subr.bf16.mxu1 %v8939_v22  ;;  %v8959_v53 = vld [vmem:[#allocation40_spill] sm:$0xff]  ;;  %v8960_v22 = vld [vmem:[#allocation41_spill] sm:$0xff] }
 0x84c   :  { %6093 = vmatpush1.bf16.msra.mxu0 %v8940_v23  ;;  %6125 = vmatpush1.bf16.msra.mxu1 %v8941_v36  ;;  %v8961_v23 = vld [vmem:[#allocation42_spill] sm:$0xff]  ;;  %v8962_v36 = vld [vmem:[#allocation43_spill] sm:$0xff] }
 0x84d   :  { %6095 = vmatprep.subr.bf16.mxu0 %v8942_v39  ;;  %6127 = vmatprep.subr.bf16.mxu1 %v8943_v43  ;;  %v8963_v39 = vld [vmem:[#allocation44_spill] sm:$0xff]  ;;  %v8964_v43 = vld [vmem:[#allocation101_spill] sm:$0xff] }
 0x850   :  { %6097 = vmatpush1.bf16.msra.mxu0 %v8944_v48  ;;  %6129 = vmatpush1.bf16.msra.mxu1 %v8945_v1  ;;  %v3802_v48 = vsel %vm3801_vm15, %v3796_v25, %v8964_v43  ;;  %v8965_v1 = vld [vmem:[#allocation45_spill] sm:$0xff]  ;;  %v8972_v25 = vld [vmem:[#allocation52_spill] sm:$0xff]  ;;  %v8986_v43 = vld [vmem:[#allocation66_spill] sm:$0xff] }
 0x851   :  { %6099 = vmatprep.subr.bf16.mxu0 %v8946_v58  ;;  %6131 = vmatprep.subr.bf16.mxu1 %v8947_v51  ;;  %v8966_v58 = vld [vmem:[#allocation46_spill] sm:$0xff]  ;;  %v8967_v51 = vld [vmem:[#allocation47_spill] sm:$0xff] }
 0x854   :  { %6101 = vmatpush1.bf16.msra.mxu0 %v8948_v6  ;;  %6133 = vmatpush1.bf16.msra.mxu1 %v8949_v50  ;;  %v8968_v6 = vld [vmem:[#allocation48_spill] sm:$0xff]  ;;  %v8969_v50 = vld [vmem:[#allocation49_spill] sm:$0xff] }
 0x855   :  { %6103 = vmatprep.subr.bf16.mxu0 %v8950_v16  ;;  %6135 = vmatprep.subr.bf16.mxu1 %v8951_v8  ;;  %v8970_v16 = vld [vmem:[#allocation50_spill] sm:$0xff]  ;;  %v8973_v8 = vld [vmem:[#allocation53_spill] sm:$0xff] }
 0x858   :  { %6105 = vmatpush1.bf16.msra.mxu0 %v8952_v3  ;;  %6137 = vmatpush1.bf16.msra.mxu1 %v8953_v59  ;;  %v8974_v3 = vld [vmem:[#allocation54_spill] sm:$0xff]  ;;  %v8975_v59 = vld [vmem:[#allocation55_spill] sm:$0xff] }
 0x859   :  { %6107 = vmatprep.subr.bf16.mxu0 %v8954_v20  ;;  %6139 = vmatprep.subr.bf16.mxu1 %v8955_v47  ;;  %v8976_v20 = vld [vmem:[#allocation56_spill] sm:$0xff]  ;;  %v8977_v47 = vld [vmem:[#allocation57_spill] sm:$0xff] }
 0x85c   :  { %6109 = vmatpush1.bf16.msra.mxu0 %v8956_v29  ;;  %6141 = vmatpush1.bf16.msra.mxu1 %v8957_v14  ;;  %v8978_v29 = vld [vmem:[#allocation58_spill] sm:$0xff]  ;;  %v8979_v14 = vld [vmem:[#allocation59_spill] sm:$0xff] }
 0x85d   :  { %6111 = vmatprep.subr.bf16.mxu0 %v8958_v45  ;;  %6143 = vmatprep.subr.bf16.mxu1 %v8959_v53  ;;  %v8980_v45 = vld [vmem:[#allocation60_spill] sm:$0xff]  ;;  %v8981_v53 = vld [vmem:[#allocation61_spill] sm:$0xff] }
 0x860   :  { %6113 = vmatpush1.bf16.msra.mxu0 %v8960_v22  ;;  %6145 = vmatpush1.bf16.msra.mxu1 %v8961_v23  ;;  %v8982_v22 = vld [vmem:[#allocation62_spill] sm:$0xff]  ;;  %v8983_v23 = vld [vmem:[#allocation63_spill] sm:$0xff] }
 0x861   :  { %6147 = vmatprep.subr.bf16.mxu0 %v8962_v36  ;;  %6179 = vmatprep.subr.bf16.mxu1 %v8963_v39  ;;  %v8984_v36 = vld [vmem:[#allocation64_spill] sm:$0xff]  ;;  %v8985_v39 = vld [vmem:[#allocation65_spill] sm:$0xff] }
 0x863   :  { %4191 = vmatmul.mubr.f32.vlgmr.msra.gmra.mrb[14].mxu0 %v3802_v48  ;;  %4262 = vmatmul.mubr.f32.vlgmr.msra.gmra.mrb[14].mxu1 %v3802_v48  ;;  %v8987_v48 = vld [vmem:[#allocation67_spill] sm:$0xff] }
 0x864   :  { %6149 = vmatpush1.bf16.msra.mxu0 %v8965_v1  ;;  %6181 = vmatpush1.bf16.msra.mxu1 %v8966_v58  ;;  %v8988_v1 = vld [vmem:[#allocation68_spill] sm:$0xff]  ;;  %v8989_v58 = vld [vmem:[#allocation69_spill] sm:$0xff] }
 0x865   :  { %6151 = vmatprep.subr.bf16.mxu0 %v8967_v51  ;;  %6183 = vmatprep.subr.bf16.mxu1 %v8968_v6  ;;  %v8990_v51 = vld [vmem:[#allocation70_spill] sm:$0xff]  ;;  %v8991_v6 = vld [vmem:[#allocation71_spill] sm:$0xff] }
 0x866   :  { %4366 = vmatprep.mubr.f32.mxu0 %v8563_v33  ;;  %4437 = vmatprep.mubr.f32.mxu1 %v8563_v33 }
 0x868   :  { %6153 = vmatpush1.bf16.msra.mxu0 %v8969_v50  ;;  %6185 = vmatpush1.bf16.msra.mxu1 %v8970_v16  ;;  %v8992_v50 = vld [vmem:[#allocation72_spill] sm:$0xff]  ;;  %v8993_v16 = vld [vmem:[#allocation73_spill] sm:$0xff] }
 0x869   :  { %6155 = vmatprep.subr.bf16.mxu0 %v8971_v55  ;;  %6187 = vmatprep.subr.bf16.mxu1 %v8972_v25  ;;  %v8994_v55 = vld [vmem:[#allocation74_spill] sm:$0xff]  ;;  %v8995_v25 = vld [vmem:[#allocation75_spill] sm:$0xff] }
 0x86c   :  { %6157 = vmatpush1.bf16.msra.mxu0 %v8973_v8  ;;  %6189 = vmatpush1.bf16.msra.mxu1 %v8974_v3  ;;  %v8996_v8 = vld [vmem:[#allocation76_spill] sm:$0xff] }
 0x86d   :  { %6159 = vmatprep.subr.bf16.mxu0 %v8975_v59  ;;  %6191 = vmatprep.subr.bf16.mxu1 %v8976_v20  ;;  %v8997_v20 = vld [vmem:[#allocation110_spill] sm:$0xff] }
 0x870   :  { %6161 = vmatpush1.bf16.msra.mxu0 %v8977_v47  ;;  %6193 = vmatpush1.bf16.msra.mxu1 %v8978_v29 }
 0x871   :  { %6163 = vmatprep.subr.bf16.mxu0 %v8979_v14  ;;  %6195 = vmatprep.subr.bf16.mxu1 %v8980_v45 }
 0x874   :  { %6165 = vmatpush1.bf16.msra.mxu0 %v8981_v53  ;;  %6197 = vmatpush1.bf16.msra.mxu1 %v8982_v22 }
 0x875   :  { %6167 = vmatprep.subr.bf16.mxu0 %v8983_v23  ;;  %6199 = vmatprep.subr.bf16.mxu1 %v8984_v36 }
 0x878   :  { %6169 = vmatpush1.bf16.msra.mxu0 %v8985_v39  ;;  %6201 = vmatpush1.bf16.msra.mxu1 %v8986_v43 }
 0x879   :  { %6171 = vmatprep.subr.bf16.mxu0 %v8987_v48  ;;  %6203 = vmatprep.subr.bf16.mxu1 %v8988_v1 }
 0x87c   :  { %6173 = vmatpush1.bf16.msra.mxu0 %v8989_v58  ;;  %6205 = vmatpush1.bf16.msra.mxu1 %v8990_v51 }
 0x87d   :  { %6175 = vmatprep.subr.bf16.mxu0 %v8991_v6  ;;  %6207 = vmatprep.subr.bf16.mxu1 %v8992_v50 }
 0x880   :  { %6177 = vmatpush1.bf16.msra.mxu0 %v8993_v16  ;;  %6209 = vmatpush1.bf16.msra.mxu1 %v8994_v55 }
 0x881   :  { %6211 = vmatprep.subr.bf16.mxu0 %v8995_v25  ;;  %6243 = vmatprep.subr.bf16.mxu1 %v8996_v8 }
 0x916   :  { %v4013_v3 = vpop.f32.mrb[28].mxu0  ;;  %v4084_v59 = vpop.f32.mrb[28].mxu1 }
 0x917   :  { %v4089_v47 = vadd.f32 %v4013_v3, %v8997_v20  ;;  %v4015_v29 = vpop.f32.mrb[29].mxu0  ;;  %v4086_v14 = vpop.f32.mrb[29].mxu1  ;;  %v4091_v39 = vadd.f32 %v4084_v59, %v8874_v9 }
 0x918   :  { %v4090_v45 = vadd.f32 %v4015_v29, %v7393_v37  ;;  %v4092_v23 = vadd.f32 %v4086_v14, %v8685_v26 }
 0x919   :  { %v4710_v53 = vmul.f32 -1.442695, %v4089_v47 }
 0x91a   :  { %v4711_v22 = vmul.f32 -1.442695, %v4090_v45  ;;  %v4712_v36 = vmul.f32 -1.442695, %v4092_v23 }
 0x91b   :  { %6589 = vpow2.f32 %v4710_v53 }
 0x91c   :  { %6591 = vpow2.f32 %v4711_v22 }
 0x91d   :  { %6593 = vpow2.f32 %v4712_v36 }
 0x91e   :  { %6595 = vtanh.f32 %v4091_v39 }
 0x925   :  { %v6590_v43 = vpop.eup %6589 }
 0x926   :  { %v6592_v48 = vpop.eup %6591  ;;  %v4096_v1 = vadd.f32 1.0, %v6590_v43 }
 0x927   :  { %v4102_v58 = vadd.f32 1.0, %v6592_v48  ;;  %v6594_v51 = vpop.eup %6593 }
 0x928   :  { %6597 = vrcp.f32 %v4096_v1  ;;  %v6596_v6 = vpop.eup %6595  ;;  %v4109_v25 = vadd.f32 1.0, %v6594_v51 }
 0x929   :  { %6599 = vrcp.f32 %v4102_v58 }
 0x92a   :  { %6601 = vrcp.f32 %v4109_v25 }
 0x932   :  { %v6598_v50 = vpop.eup %6597 }
 0x933   :  { %v6600_v16 = vpop.eup %6599  ;;  %v4113_v55 = vmul.f32 %v6598_v50, %v6596_v6 }
 0x934   :  { %v4112_v8 = vmul.f32 %v6600_v16, %v8088_v19  ;;  %v6602_v19 = vpop.eup %6601 }
 0x936   :  { %v8221_v3 = vadd.f32 %v4113_v55, %v4112_v8  ;;  %v4192_v47 = vpop.f32.mrb[14].mxu0  ;;  %v4263_v59 = vpop.f32.mrb[14].mxu1 }
 0x937   :  { %v6288_v29 = vadd.f32 %v4192_v47, %v8812_v18  ;;  %v4194_v14 = vpop.f32.mrb[15].mxu0  ;;  %v4265_v45 = vpop.f32.mrb[15].mxu1  ;;  %v6304_v48 = vadd.f32 %v4263_v59, %v7287_v5 }
 0x938   :  { %v6289_v53 = vadd.f32 %v4194_v14, %v8625_v54  ;;  %6603 = vtanh.f32 %v8221_v3  ;;  %v6305_v36 = vadd.f32 %v4265_v45, %v8626_v30 }
 0x939   :  { %v4714_v22 = vmul.f32 -1.442695, %v6288_v29 }
 0x93a   :  { %v4715_v23 = vmul.f32 -1.442695, %v6289_v53  ;;  %v4716_v43 = vmul.f32 -1.442695, %v6305_v36 }
 0x93b   :  { %6605 = vpow2.f32 %v4714_v22 }
 0x93c   :  { %6607 = vpow2.f32 %v4715_v23 }
 0x93d   :  { %6609 = vpow2.f32 %v4716_v43 }
 0x93e   :  { %6611 = vtanh.f32 %v6304_v48 }
 0x942   :  { %v6604_v39 = vpop.eup %6603 }
 0x943   :  { %v4116_v1 = vmul.f32 %v6604_v39, %v6602_v19 }
 0x945   :  { %v6606_v58 = vpop.eup %6605  ;;  %4367 = vmatmul.mubr.f32.vlgmr.msra.gmra.mrb[30].mxu0 %v4116_v1  ;;  %4438 = vmatmul.mubr.f32.vlgmr.msra.gmra.mrb[30].mxu1 %v4116_v1  ;;  %v8229_v18 = vadd.f32 %v4116_v1, %v8096_v52 }
 0x946   :  { %v6608_v54 = vpop.eup %6607  ;;  %v4275_v51 = vadd.f32 1.0, %v6606_v58  ;;  %6213 = vmatpush1.bf16.msra.mxu0 %v8688_v62  ;;  %6245 = vmatpush1.bf16.msra.mxu1 %v8689_v7 }
 0x947   :  { %v4281_v30 = vadd.f32 1.0, %v6608_v54  ;;  %6215 = vmatprep.subr.bf16.mxu0 %v8750_v38  ;;  %6247 = vmatprep.subr.bf16.mxu1 %v8751_v11  ;;  %v6610_v5 = vpop.eup %6609 }
 0x948   :  { %6613 = vrcp.f32 %v4275_v51  ;;  %4508 = vmatprep.mubr.f32.mxu0 %v8563_v33  ;;  %4579 = vmatprep.mubr.f32.mxu1 %v8563_v33  ;;  %v6612_v62 = vpop.eup %6611  ;;  %v4288_v11 = vadd.f32 1.0, %v6610_v5 }
 0x949   :  { %6615 = vrcp.f32 %v4281_v30 }
 0x94a   :  { %6217 = vmatpush1.bf16.msra.mxu0 %v8752_v21  ;;  %6249 = vmatpush1.bf16.msra.mxu1 %v8753_v34  ;;  %6617 = vrcp.f32 %v4288_v11 }
 0x94b   :  { %6219 = vmatprep.subr.bf16.mxu0 %v8813_v41  ;;  %6251 = vmatprep.subr.bf16.mxu1 %v8755_v4 }
 0x94e   :  { %6221 = vmatpush1.bf16.msra.mxu0 %v8814_v56  ;;  %6253 = vmatpush1.bf16.msra.mxu1 %v8815_v42 }
 0x94f   :  { %6223 = vmatprep.subr.bf16.mxu0 %v8816_v12  ;;  %6255 = vmatprep.subr.bf16.mxu1 %v8759_v49 }
 0x952   :  { %v6614_v33 = vpop.eup %6613  ;;  %6225 = vmatpush1.bf16.msra.mxu0 %v8760_v10  ;;  %6257 = vmatpush1.bf16.msra.mxu1 %v8761_v60 }
 0x953   :  { %v6616_v7 = vpop.eup %6615  ;;  %v4292_v38 = vmul.f32 %v6614_v33, %v6612_v62  ;;  %6227 = vmatprep.subr.bf16.mxu0 %v8642_v13  ;;  %6259 = vmatprep.subr.bf16.mxu1 %v8643_v17  ;;  %v4299_v17 = vpop.permute.xlu1 %4298 }
 0x954   :  { %v4291_v21 = vmul.f32 %v6616_v7, %v8127_v61  ;;  %v6618_v13 = vpop.eup %6617  ;;  %vm4300_vm0 = vcmp.eq.s32.totalorder %v4299_v17, 1 }
 0x956   :  { %v4293_v34 = vadd.f32 %v4292_v38, %v4291_v21  ;;  %6229 = vmatpush1.bf16.msra.mxu0 %v8702_v57  ;;  %6261 = vmatpush1.bf16.msra.mxu1 %v8703_v46 }
 0x957   :  { %6231 = vmatprep.subr.bf16.mxu0 %v8704_v28  ;;  %6263 = vmatprep.subr.bf16.mxu1 %v8705_v2 }
 0x958   :  { %6619 = vtanh.f32 %v4293_v34 }
 0x95a   :  { %6233 = vmatpush1.bf16.msra.mxu0 %v8706_v27  ;;  %6265 = vmatpush1.bf16.msra.mxu1 %v8707_v63 }
 0x95b   :  { %6235 = vmatprep.subr.bf16.mxu0 %v8708_v32  ;;  %6267 = vmatprep.subr.bf16.mxu1 %v8651_v0 }
 0x95e   :  { %6237 = vmatpush1.bf16.msra.mxu0 %v8652_v40  ;;  %6269 = vmatpush1.bf16.msra.mxu1 %v8653_v15 }
 0x95f   :  { %6239 = vmatprep.subr.bf16.mxu0 %v8709_v44  ;;  %6271 = vmatprep.subr.bf16.mxu1 %v8655_v31 }
 0x962   :  { %v6620_v28 = vpop.eup %6619  ;;  %6241 = vmatpush1.bf16.msra.mxu0 %v8656_v24  ;;  %6273 = vmatpush1.bf16.msra.mxu1 %v8657_v35 }
 0x963   :  { %v4295_v2 = vmul.f32 %v6620_v28, %v6618_v13 }
 0x965   :  { %4717 = vmatmul.mubr.msk.f32.vlgmr.msra.gmra.mrb[30].mxu0 %vm4300_vm0, %v4295_v2  ;;  %4718 = vmatmul.mubr.msk.f32.vlgmr.msra.gmra.mrb[30].mxu1 %vm4300_vm0, %v4295_v2 }
 0xa38   :  { %v4510_v0 = vpop.f32.mrb[30].mxu0  ;;  %v4581_v46 = vpop.f32.mrb[30].mxu1 }
 0xa39   :  { %v4586_v40 = vadd.f32 %v4510_v0, %v8997_v20  ;;  %v4512_v15 = vpop.f32.mrb[31].mxu0  ;;  %v4583_v57 = vpop.f32.mrb[31].mxu1  ;;  %v4588_v35 = vadd.f32 %v4581_v46, %v8874_v9 }
 0xa3a   :  { %v4587_v27 = vadd.f32 %v4512_v15, %v7393_v37  ;;  %v4589_v24 = vadd.f32 %v4583_v57, %v8685_v26 }
 0xa3b   :  { %v4719_v31 = vmul.f32 -1.442695, %v4586_v40 }
 0xa3c   :  { %v4720_v63 = vmul.f32 -1.442695, %v4587_v27  ;;  %v4721_v32 = vmul.f32 -1.442695, %v4589_v24 }
 0xa3d   :  { %6621 = vpow2.f32 %v4719_v31 }
 0xa3e   :  { %6623 = vpow2.f32 %v4720_v63 }
 0xa3f   :  { %6625 = vpow2.f32 %v4721_v32 }
 0xa40   :  { %6627 = vtanh.f32 %v4588_v35 }
 0xa47   :  { %v6622_v44 = vpop.eup %6621 }
 0xa48   :  { %v6624_v4 = vpop.eup %6623  ;;  %v4593_v49 = vadd.f32 1.0, %v6622_v44 }
 0xa49   :  { %v4599_v10 = vadd.f32 1.0, %v6624_v4  ;;  %v6626_v60 = vpop.eup %6625 }
 0xa4a   :  { %6629 = vrcp.f32 %v4593_v49  ;;  %v6628_v41 = vpop.eup %6627  ;;  %v4606_v12 = vadd.f32 1.0, %v6626_v60 }
 0xa4b   :  { %6631 = vrcp.f32 %v4599_v10 }
 0xa4c   :  { %6633 = vrcp.f32 %v4606_v12 }
 0xa54   :  { %v6630_v37 = vpop.eup %6629 }
 0xa55   :  { %v6632_v56 = vpop.eup %6631  ;;  %v4610_v42 = vmul.f32 %v6630_v37, %v6628_v41 }
 0xa56   :  { %v4609_v52 = vmul.f32 %v6632_v56, %v8221_v3  ;;  %v6634_v9 = vpop.eup %6633 }
 0xa58   :  { %v4611_v26 = vadd.f32 %v4610_v42, %v4609_v52 }
 0xa5a   :  { %6635 = vtanh.f32 %v4611_v26 }
 0xa64   :  { %v6636_v61 = vpop.eup %6635 }
 0xa65   :  { %v4613_v20 = vmul.f32 %v6636_v61, %v6634_v9 }
 0xa67   :  { %v4614_v6 = vadd.f32 %v4613_v20, %v8229_v18 }
 0xa69   :  { %4615 = vst [vmem:[#allocation11] sm:$0xff] %v4614_v6 }
 0xa6a   :  { %6736 = shalt.err (!%p6733_p8)
}
 0xa6b   :  { %s6737_s20 = scalar_lea.hbm %s8290_s8, 128 }
 0xa6c   :  { %p6738_p9 = scmp.ne.s32.totalorder %s8290_s8, %s6737_s20  ;;  %p6741_p10 = scmp.lt.u32.totalorder %s6737_s20, %s8290_s8 }
 0xa6e   :  { %p6743_p11 = pnand %p6741_p10, %p6738_p9 }
 0xa70   :  { %6746 = shalt.err (!%p6743_p11)
}
 0xa71   :  { %4625 = dma.vmem_to_hbm [thread:$0]  %s4623_s7, 128, %s8290_s8, [#allocation5]  }
 0xa72   :  { %6753 = dma.done.wait [#allocation5], 128  }
 0xa73   :  { %6754 = vsyncadd [#allocation5], 4294967168 }
 0xa74   :  { %4629 = vsyncpa [#allocation4], 1 }
 0xa75   :  { %4630 = vsyncpa [#allocation7], 1 }
 0xa76   :  { %4631 = vsyncpa [#allocation10], 1 }
 0xa77   :  { %4632 = vsyncpa [#allocation5], 1 }

</bundles_post_ra>
